<compile_context>
chip_gen: v5e
topology: v5e:2x2
jax: 0.10.0
libtpu: 0.0.40
codegen_flags: <defaults>
</compile_context>

<pallas_src>
import functools

import jax
import jax.numpy as jnp
from jax import lax
from jax.experimental import pallas as pl
from jax.experimental.pallas import tpu as pltpu


# ---------------------------------------------------------------------------
# Fused Pallas kernel (one batch image per grid step)
# ---------------------------------------------------------------------------
def _ghost_bottleneck_kernel(
    x_ref, mask_ref,
    w1_ref, b1_ref, dw1_ref, db1_ref,
    w2a_ref, w2b_ref, b2_ref, dw2_ref, db2_ref,
    o_ref,
    y1_ref, z1_ref, y2_ref,
    *, H, W, k):
  """Fused GhostBottleneck (s=1) forward for one image, padded-flat layout.

  x_ref:   (1, C1, Np)  zero-padded input, flattened spatially (Np=(H+2p)*(W+2p))
  mask_ref:(1, Np)      1.0 on valid pixels, 0.0 on the padding halo
  w1/b1:   (G1, C1), (G1, 1)   first GhostConv 1x1 conv (BN folded)
  dw1/db1: (G1, k*k), (G1, 1)  first GhostConv 5x5 depthwise (BN folded)
  w2a/w2b: (G2, G1) each       second GhostConv 1x1 conv split over [y1 | z1]
  b2:      (G2, 1)
  dw2/db2: (G2, k*k), (G2, 1)  second GhostConv 5x5 depthwise (BN folded)
  o_ref:   (1, C2, Np)         padded-flat output (halo columns are garbage,
                               sliced away by the wrapper)
  y1/z1/y2_ref: VMEM scratch (G1,Np), (G1,Np), (G2,Np) f32
  """
  f32 = jnp.float32
  p = k // 2
  Wp = W + 2 * p
  Np = (H + 2 * p) * Wp
  M = (H - 1) * Wp + W           # flat span covering every valid output pixel
  off = p * Wp + p               # flat index of output pixel (0, 0)
  G1 = w1_ref.shape[0]
  G2 = w2a_ref.shape[0]

  mask = mask_ref[...]           # (1, Np)
  x = x_ref[0].astype(f32)       # (C1, Np)

  # ---- GhostConv1.cv1: 1x1 conv + BN + SiLU (MXU) --------------------------
  y1 = jnp.dot(w1_ref[...], x, preferred_element_type=f32) + b1_ref[...]
  y1 = y1 * jax.nn.sigmoid(y1)                    # SiLU
  y1_ref[...] = y1 * mask        # zero the halo -> emulates dw conv zero pad

  # ---- GhostConv1.cv2: 5x5 depthwise conv + BN + SiLU (shifted FMAs) -------
  dw1 = dw1_ref[...]
  acc1 = jnp.zeros((G1, M), f32)
  for kh in range(k):
    for kw in range(k):
      t = kh * k + kw
      acc1 = acc1 + dw1[:, t:t + 1] * y1_ref[:, pl.ds(kh * Wp + kw, M)]
  acc1 = acc1 + db1_ref[...]
  acc1 = acc1 * jax.nn.sigmoid(acc1)              # SiLU
  z1_ref[...] = jnp.zeros((G1, Np), f32)          # keep halo columns finite/zero
  z1_ref[:, pl.ds(off, M)] = acc1

  # ---- GhostConv2.cv1: 1x1 conv on concat([y1, z1]) via weight split, no act
  y2 = (jnp.dot(w2a_ref[...], y1_ref[...], preferred_element_type=f32)
        + jnp.dot(w2b_ref[...], z1_ref[...], preferred_element_type=f32)
        + b2_ref[...])
  y2 = y2 * mask                 # zero halo for the second depthwise conv
  y2_ref[...] = y2

  # ---- GhostConv2.cv2: 5x5 depthwise conv, no act ---------------------------
  dw2 = dw2_ref[...]
  acc2 = jnp.zeros((G2, M), f32)
  for kh in range(k):
    for kw in range(k):
      t = kh * k + kw
      acc2 = acc2 + dw2[:, t:t + 1] * y2_ref[:, pl.ds(kh * Wp + kw, M)]
  acc2 = acc2 + db2_ref[...]

  # ---- concat([y2, z2]) + residual x (shortcut = Identity for s=1) ----------
  x_hi = x_ref[0, pl.ds(0, G2), :].astype(f32)
  o_ref[0, pl.ds(0, G2), :] = (y2 + x_hi).astype(o_ref.dtype)
  x_lo = x_ref[0, pl.ds(G2, G2), :].astype(f32)
  o_ref[0, pl.ds(G2, G2), :] = x_lo.astype(o_ref.dtype)      # define halo cols
  res = x_ref[0, pl.ds(G2, G2), pl.ds(off, M)].astype(f32)
  o_ref[0, pl.ds(G2, G2), pl.ds(off, M)] = (acc2 + res).astype(o_ref.dtype)


# ---------------------------------------------------------------------------
# BN folding + wrapper (layout plumbing + pallas_call)
# ---------------------------------------------------------------------------
def _fold_bn(p):
  """Inference-mode BatchNorm as a per-channel affine (scale, bias)."""
  s = p["gamma"] / jnp.sqrt(p["var"] + p["eps"])
  return s, p["beta"] - s * p["mean"]


def _fold_pointwise(p):
  s, b = _fold_bn(p)
  w = (p["w"][:, :, 0, 0] * s[:, None]).astype(jnp.float32)        # (Cout, Cin)
  return w, b.reshape(-1, 1).astype(jnp.float32)


def _fold_depthwise(p):
  s, b = _fold_bn(p)
  c, _, kh, kw = p["w"].shape
  w = (p["w"][:, 0] * s[:, None, None]).reshape(c, kh * kw).astype(jnp.float32)
  return w, b.reshape(-1, 1).astype(jnp.float32)


def ghost_bottleneck_forward(x, params, *, k_dw=5):
  """GhostBottleneck.forward for stride s=1 (middle DWConv & shortcut = Identity)."""
  B, C1, H, W = x.shape
  w1, b1 = _fold_pointwise(params["gc1_cv1"])
  dw1, db1 = _fold_depthwise(params["gc1_cv2"])
  w2, b2 = _fold_pointwise(params["gc2_cv1"])
  dw2, db2 = _fold_depthwise(params["gc2_cv2"])
  G1, G2 = w1.shape[0], w2.shape[0]
  C2 = 2 * G2
  assert C1 == C2, "stride-1 GhostBottleneck shortcut (Identity) needs c1 == c2"
  w2a, w2b = w2[:, :G1], w2[:, G1:]                 # concat -> weight split

  p = k_dw // 2
  Hp, Wp = H + 2 * p, W + 2 * p
  Np = Hp * Wp
  # Layout plumbing (XLA): zero-pad the spatial halo once and flatten H,W so
  # every in-kernel activation is lane-dense.
  xp = jnp.pad(x, ((0, 0), (0, 0), (p, p), (p, p))).reshape(B, C1, Np)
  mask = jnp.zeros((Hp, Wp), jnp.float32).at[p:p + H, p:p + W].set(1.0)
  mask = mask.reshape(1, Np)

  def whole(a):
    return pl.BlockSpec(a.shape, lambda b_: (0,) * a.ndim)

  out_pad = pl.pallas_call(
      functools.partial(_ghost_bottleneck_kernel, H=H, W=W, k=k_dw),
      out_shape=jax.ShapeDtypeStruct((B, C2, Np), x.dtype),
      grid=(B,),
      in_specs=[
          pl.BlockSpec((1, C1, Np), lambda b_: (b_, 0, 0)),
          whole(mask),
          whole(w1), whole(b1), whole(dw1), whole(db1),
          whole(w2a), whole(w2b), whole(b2), whole(dw2), whole(db2),
      ],
      out_specs=pl.BlockSpec((1, C2, Np), lambda b_: (b_, 0, 0)),
      scratch_shapes=[
          pltpu.VMEM((G1, Np), jnp.float32),   # y1 (zero-padded, flat)
          pltpu.VMEM((G1, Np), jnp.float32),   # z1 (zero-padded, flat)
          pltpu.VMEM((G2, Np), jnp.float32),   # y2 (zero-padded, flat)
      ],
      compiler_params=pltpu.CompilerParams(dimension_semantics=("parallel",)),
  )(xp, mask, w1, b1, dw1, db1, w2a, w2b, b2, dw2, db2)

  # Drop the padding halo (layout plumbing only).
  return out_pad.reshape(B, C2, Hp, Wp)[:, :, p:p + H, p:p + W]


# ---------------------------------------------------------------------------
# Parameter init + thin module wrapper + pure-JAX reference
# ---------------------------------------------------------------------------
def _init_conv_bn(key, c_out, c_in_per_group, k):
  kw, kg, kb, km, kv = jax.random.split(key, 5)
  return {
      "w": 0.2 * jax.random.normal(kw, (c_out, c_in_per_group, k, k), jnp.float32),
      "gamma": 1.0 + 0.1 * jax.random.normal(kg, (c_out,), jnp.float32),
      "beta": 0.1 * jax.random.normal(kb, (c_out,), jnp.float32),
      "mean": 0.1 * jax.random.normal(km, (c_out,), jnp.float32),
      "var": jax.random.uniform(kv, (c_out,), jnp.float32, 0.5, 1.5),
      "eps": 1e-5,
  }


def init_ghost_bottleneck_params(key, c1, c2, k=3, s=1):
  assert s == 1, "TODO(synk): stride-2 GhostBottleneck variant not implemented"
  c_ = c2 // 2
  g1, g2 = c_ // 2, c2 // 2
  k1, k2, k3, k4 = jax.random.split(key, 4)
  return {
      "gc1_cv1": _init_conv_bn(k1, g1, c1, 1),   # 1x1 c1 -> c_//2, SiLU
      "gc1_cv2": _init_conv_bn(k2, g1, 1, 5),    # 5x5 depthwise,   SiLU
      "gc2_cv1": _init_conv_bn(k3, g2, c_, 1),   # 1x1 c_ -> c2//2, no act
      "gc2_cv2": _init_conv_bn(k4, g2, 1, 5),    # 5x5 depthwise,   no act
  }


class GhostBottleneck:
  """Forward-only mirror of the PyTorch GhostBottleneck (inference-mode BN)."""

  def __init__(self, key, c1, c2, k=3, s=1):
    assert s == 1, "TODO(synk): stride-2 variant not implemented"
    self.params = init_ghost_bottleneck_params(key, c1, c2, k, s)

  def __call__(self, x):
    return ghost_bottleneck_forward(x, self.params)


# Pure-JAX reference (correctness check for the fused Pallas kernel).
def _conv_bn_ref(x, p, stride, padding, groups, act):
  y = lax.conv_general_dilated(
      x, p["w"], window_strides=(stride, stride),
      padding=[(padding, padding), (padding, padding)],
      dimension_numbers=("NCHW", "OIHW", "NCHW"),
      feature_group_count=groups)
  s = p["gamma"] / jnp.sqrt(p["var"] + p["eps"])
  y = y * s[None, :, None, None] + (p["beta"] - s * p["mean"])[None, :, None, None]
  return y * jax.nn.sigmoid(y) if act else y


def ghost_bottleneck_ref(x, params):
  ya = _conv_bn_ref(x, params["gc1_cv1"], 1, 0, 1, True)
  yb = _conv_bn_ref(ya, params["gc1_cv2"], 1, 2, ya.shape[1], True)
  y = jnp.concatenate([ya, yb], axis=1)
  za = _conv_bn_ref(y, params["gc2_cv1"], 1, 0, 1, False)
  zb = _conv_bn_ref(za, params["gc2_cv2"], 1, 2, za.shape[1], False)
  z = jnp.concatenate([za, zb], axis=1)
  return z + x


if __name__ == "__main__":
  key = jax.random.PRNGKey(0)
  k_x, k_p = jax.random.split(key)
  B, c1, c2, H, W = 2, 8, 8, 16, 16

  x = jax.random.normal(k_x, (B, c1, H, W), dtype=jnp.float32)
  module = GhostBottleneck(k_p, c1, c2, k=3, s=1)

  fwd = jax.jit(ghost_bottleneck_forward)
  y = jax.block_until_ready(fwd(x, module.params))
  assert y.shape == (B, c2, H, W), y.shape

  y_ref = jax.block_until_ready(ghost_bottleneck_ref(x, module.params))
  err = float(jnp.max(jnp.abs(y - y_ref)))
  assert err < 2e-2, f"Pallas output mismatch vs reference: max abs err = {err}"

  print("KERNEL_OK")
</pallas_src>

<mosaic_0001>
module attributes {stable_mosaic.version = 11 : i64} {
  func.func @_ghost_bottleneck_kernel(%arg0: i32, %arg1: memref<1x8x400xf32, #tpu.memory_space<vmem>>, %arg2: memref<1x400xf32, #tpu.memory_space<vmem>>, %arg3: memref<2x8xf32, #tpu.memory_space<vmem>>, %arg4: memref<2x1xf32, #tpu.memory_space<vmem>>, %arg5: memref<2x25xf32, #tpu.memory_space<vmem>>, %arg6: memref<2x1xf32, #tpu.memory_space<vmem>>, %arg7: memref<4x2xf32, #tpu.memory_space<vmem>>, %arg8: memref<4x2xf32, #tpu.memory_space<vmem>>, %arg9: memref<4x1xf32, #tpu.memory_space<vmem>>, %arg10: memref<4x25xf32, #tpu.memory_space<vmem>>, %arg11: memref<4x1xf32, #tpu.memory_space<vmem>>, %arg12: memref<1x8x400xf32, #tpu.memory_space<vmem>>, %arg13: memref<2x400xf32, #tpu.memory_space<vmem>>, %arg14: memref<2x400xf32, #tpu.memory_space<vmem>>, %arg15: memref<4x400xf32, #tpu.memory_space<vmem>>) attributes {dimension_semantics = [#tpu.dimension_semantics<parallel>], iteration_bounds = array<i64: 2>, scalar_prefetch = 0 : i64, scratch_operands = 3 : i64, tpu.core_type = #tpu.core_type<tc>, window_params = [{transform_indices = @transform_0, window_bounds = array<i64: 1, 8, 400>}, {pipeline_mode = #tpu.pipeline_mode<synchronous>, transform_indices = @transform_1, window_bounds = array<i64: 1, 400>}, {pipeline_mode = #tpu.pipeline_mode<synchronous>, transform_indices = @transform_2, window_bounds = array<i64: 2, 8>}, {pipeline_mode = #tpu.pipeline_mode<synchronous>, transform_indices = @transform_3, window_bounds = array<i64: 2, 1>}, {pipeline_mode = #tpu.pipeline_mode<synchronous>, transform_indices = @transform_4, window_bounds = array<i64: 2, 25>}, {pipeline_mode = #tpu.pipeline_mode<synchronous>, transform_indices = @transform_5, window_bounds = array<i64: 2, 1>}, {pipeline_mode = #tpu.pipeline_mode<synchronous>, transform_indices = @transform_6, window_bounds = array<i64: 4, 2>}, {pipeline_mode = #tpu.pipeline_mode<synchronous>, transform_indices = @transform_7, window_bounds = array<i64: 4, 2>}, {pipeline_mode = #tpu.pipeline_mode<synchronous>, transform_indices = @transform_8, window_bounds = array<i64: 4, 1>}, {pipeline_mode = #tpu.pipeline_mode<synchronous>, transform_indices = @transform_9, window_bounds = array<i64: 4, 25>}, {pipeline_mode = #tpu.pipeline_mode<synchronous>, transform_indices = @transform_10, window_bounds = array<i64: 4, 1>}, {transform_indices = @transform_11, window_bounds = array<i64: 1, 8, 400>}]} {
    %c0 = arith.constant 0 : index
    %c0_0 = arith.constant 0 : index
    %0 = vector.load %arg2[%c0, %c0_0] : memref<1x400xf32, #tpu.memory_space<vmem>>, vector<1x400xf32>
    %c0_1 = arith.constant 0 : index
    %c0_2 = arith.constant 0 : index
    %c0_3 = arith.constant 0 : index
    %1 = vector.load %arg1[%c0_1, %c0_2, %c0_3] : memref<1x8x400xf32, #tpu.memory_space<vmem>>, vector<1x8x400xf32>
    %2 = vector.shape_cast %1 : vector<1x8x400xf32> to vector<8x400xf32>
    %c0_4 = arith.constant 0 : index
    %c0_5 = arith.constant 0 : index
    %3 = vector.load %arg3[%c0_4, %c0_5] : memref<2x8xf32, #tpu.memory_space<vmem>>, vector<2x8xf32>
    %cst = arith.constant dense<0.000000e+00> : vector<2x400xf32>
    %4 = tpu.matmul %3, %2, %cst {dimension_numbers = #tpu.dot_dimension_numbers<[1], [0], [0], [1], [0, 0, 1, 1], [], []>} : vector<2x8xf32>, vector<8x400xf32>, vector<2x400xf32> -> vector<2x400xf32>
    %c0_6 = arith.constant 0 : index
    %c0_7 = arith.constant 0 : index
    %5 = vector.load %arg4[%c0_6, %c0_7] : memref<2x1xf32, #tpu.memory_space<vmem>>, vector<2x1xf32>
    %6 = vector.broadcast %5 : vector<2x1xf32> to vector<2x400xf32>
    %7 = arith.addf %4, %6 : vector<2x400xf32>
    %8 = arith.negf %7 : vector<2x400xf32>
    %9 = math.exp %8 : vector<2x400xf32>
    %cst_8 = arith.constant 1.000000e+00 : f32
    %10 = vector.broadcast %cst_8 : f32 to vector<2x400xf32>
    %11 = arith.addf %10, %9 : vector<2x400xf32>
    %12 = arith.divf %10, %11 : vector<2x400xf32>
    %13 = arith.mulf %7, %12 : vector<2x400xf32>
    %14 = vector.broadcast %0 : vector<1x400xf32> to vector<2x400xf32>
    %15 = arith.mulf %13, %14 : vector<2x400xf32>
    %c0_9 = arith.constant 0 : index
    %c0_10 = arith.constant 0 : index
    %16 = vector.load %arg13[%c0_9, %c0_10] : memref<2x400xf32, #tpu.memory_space<vmem>>, vector<2x400xf32>
    tpu.vector_store %arg13[%c0_9, %c0_10], %15 {strides = array<i32>} : memref<2x400xf32, #tpu.memory_space<vmem>>, vector<2x400xf32>,
    %c0_11 = arith.constant 0 : index
    %c0_12 = arith.constant 0 : index
    %17 = vector.load %arg5[%c0_11, %c0_12] : memref<2x25xf32, #tpu.memory_space<vmem>>, vector<2x25xf32>
    %cst_13 = arith.constant 0.000000e+00 : f32
    %18 = vector.broadcast %cst_13 : f32 to vector<2x316xf32>
    %19 = vector.extract_strided_slice %17 {offsets = [0, 0], sizes = [2, 1], strides = [1, 1]} : vector<2x25xf32> to vector<2x1xf32>
    %c0_14 = arith.constant 0 : index
    %c0_15 = arith.constant 0 : index
    %20 = vector.load %arg13[%c0_14, %c0_15] : memref<2x400xf32, #tpu.memory_space<vmem>>, vector<2x316xf32>
    %21 = vector.broadcast %19 : vector<2x1xf32> to vector<2x316xf32>
    %22 = arith.mulf %21, %20 : vector<2x316xf32>
    %23 = arith.addf %18, %22 : vector<2x316xf32>
    %24 = vector.extract_strided_slice %17 {offsets = [0, 1], sizes = [2, 1], strides = [1, 1]} : vector<2x25xf32> to vector<2x1xf32>
    %c0_16 = arith.constant 0 : index
    %c1 = arith.constant 1 : index
    %25 = vector.load %arg13[%c0_16, %c1] : memref<2x400xf32, #tpu.memory_space<vmem>>, vector<2x316xf32>
    %26 = vector.broadcast %24 : vector<2x1xf32> to vector<2x316xf32>
    %27 = arith.mulf %26, %25 : vector<2x316xf32>
    %28 = arith.addf %23, %27 : vector<2x316xf32>
    %29 = vector.extract_strided_slice %17 {offsets = [0, 2], sizes = [2, 1], strides = [1, 1]} : vector<2x25xf32> to vector<2x1xf32>
    %c0_17 = arith.constant 0 : index
    %c2 = arith.constant 2 : index
    %30 = vector.load %arg13[%c0_17, %c2] : memref<2x400xf32, #tpu.memory_space<vmem>>, vector<2x316xf32>
    %31 = vector.broadcast %29 : vector<2x1xf32> to vector<2x316xf32>
    %32 = arith.mulf %31, %30 : vector<2x316xf32>
    %33 = arith.addf %28, %32 : vector<2x316xf32>
    %34 = vector.extract_strided_slice %17 {offsets = [0, 3], sizes = [2, 1], strides = [1, 1]} : vector<2x25xf32> to vector<2x1xf32>
    %c0_18 = arith.constant 0 : index
    %c3 = arith.constant 3 : index
    %35 = vector.load %arg13[%c0_18, %c3] : memref<2x400xf32, #tpu.memory_space<vmem>>, vector<2x316xf32>
    %36 = vector.broadcast %34 : vector<2x1xf32> to vector<2x316xf32>
    %37 = arith.mulf %36, %35 : vector<2x316xf32>
    %38 = arith.addf %33, %37 : vector<2x316xf32>
    %39 = vector.extract_strided_slice %17 {offsets = [0, 4], sizes = [2, 1], strides = [1, 1]} : vector<2x25xf32> to vector<2x1xf32>
    %c0_19 = arith.constant 0 : index
    %c4 = arith.constant 4 : index
    %40 = vector.load %arg13[%c0_19, %c4] : memref<2x400xf32, #tpu.memory_space<vmem>>, vector<2x316xf32>
    %41 = vector.broadcast %39 : vector<2x1xf32> to vector<2x316xf32>
    %42 = arith.mulf %41, %40 : vector<2x316xf32>
    %43 = arith.addf %38, %42 : vector<2x316xf32>
    %44 = vector.extract_strided_slice %17 {offsets = [0, 5], sizes = [2, 1], strides = [1, 1]} : vector<2x25xf32> to vector<2x1xf32>
    %c0_20 = arith.constant 0 : index
    %c20 = arith.constant 20 : index
    %45 = vector.load %arg13[%c0_20, %c20] : memref<2x400xf32, #tpu.memory_space<vmem>>, vector<2x316xf32>
    %46 = vector.broadcast %44 : vector<2x1xf32> to vector<2x316xf32>
    %47 = arith.mulf %46, %45 : vector<2x316xf32>
    %48 = arith.addf %43, %47 : vector<2x316xf32>
    %49 = vector.extract_strided_slice %17 {offsets = [0, 6], sizes = [2, 1], strides = [1, 1]} : vector<2x25xf32> to vector<2x1xf32>
    %c0_21 = arith.constant 0 : index
    %c21 = arith.constant 21 : index
    %50 = vector.load %arg13[%c0_21, %c21] : memref<2x400xf32, #tpu.memory_space<vmem>>, vector<2x316xf32>
    %51 = vector.broadcast %49 : vector<2x1xf32> to vector<2x316xf32>
    %52 = arith.mulf %51, %50 : vector<2x316xf32>
    %53 = arith.addf %48, %52 : vector<2x316xf32>
    %54 = vector.extract_strided_slice %17 {offsets = [0, 7], sizes = [2, 1], strides = [1, 1]} : vector<2x25xf32> to vector<2x1xf32>
    %c0_22 = arith.constant 0 : index
    %c22 = arith.constant 22 : index
    %55 = vector.load %arg13[%c0_22, %c22] : memref<2x400xf32, #tpu.memory_space<vmem>>, vector<2x316xf32>
    %56 = vector.broadcast %54 : vector<2x1xf32> to vector<2x316xf32>
    %57 = arith.mulf %56, %55 : vector<2x316xf32>
    %58 = arith.addf %53, %57 : vector<2x316xf32>
    %59 = vector.extract_strided_slice %17 {offsets = [0, 8], sizes = [2, 1], strides = [1, 1]} : vector<2x25xf32> to vector<2x1xf32>
    %c0_23 = arith.constant 0 : index
    %c23 = arith.constant 23 : index
    %60 = vector.load %arg13[%c0_23, %c23] : memref<2x400xf32, #tpu.memory_space<vmem>>, vector<2x316xf32>
    %61 = vector.broadcast %59 : vector<2x1xf32> to vector<2x316xf32>
    %62 = arith.mulf %61, %60 : vector<2x316xf32>
    %63 = arith.addf %58, %62 : vector<2x316xf32>
    %64 = vector.extract_strided_slice %17 {offsets = [0, 9], sizes = [2, 1], strides = [1, 1]} : vector<2x25xf32> to vector<2x1xf32>
    %c0_24 = arith.constant 0 : index
    %c24 = arith.constant 24 : index
    %65 = vector.load %arg13[%c0_24, %c24] : memref<2x400xf32, #tpu.memory_space<vmem>>, vector<2x316xf32>
    %66 = vector.broadcast %64 : vector<2x1xf32> to vector<2x316xf32>
    %67 = arith.mulf %66, %65 : vector<2x316xf32>
    %68 = arith.addf %63, %67 : vector<2x316xf32>
    %69 = vector.extract_strided_slice %17 {offsets = [0, 10], sizes = [2, 1], strides = [1, 1]} : vector<2x25xf32> to vector<2x1xf32>
    %c0_25 = arith.constant 0 : index
    %c40 = arith.constant 40 : index
    %70 = vector.load %arg13[%c0_25, %c40] : memref<2x400xf32, #tpu.memory_space<vmem>>, vector<2x316xf32>
    %71 = vector.broadcast %69 : vector<2x1xf32> to vector<2x316xf32>
    %72 = arith.mulf %71, %70 : vector<2x316xf32>
    %73 = arith.addf %68, %72 : vector<2x316xf32>
    %74 = vector.extract_strided_slice %17 {offsets = [0, 11], sizes = [2, 1], strides = [1, 1]} : vector<2x25xf32> to vector<2x1xf32>
    %c0_26 = arith.constant 0 : index
    %c41 = arith.constant 41 : index
    %75 = vector.load %arg13[%c0_26, %c41] : memref<2x400xf32, #tpu.memory_space<vmem>>, vector<2x316xf32>
    %76 = vector.broadcast %74 : vector<2x1xf32> to vector<2x316xf32>
    %77 = arith.mulf %76, %75 : vector<2x316xf32>
    %78 = arith.addf %73, %77 : vector<2x316xf32>
    %79 = vector.extract_strided_slice %17 {offsets = [0, 12], sizes = [2, 1], strides = [1, 1]} : vector<2x25xf32> to vector<2x1xf32>
    %c0_27 = arith.constant 0 : index
    %c42 = arith.constant 42 : index
    %80 = vector.load %arg13[%c0_27, %c42] : memref<2x400xf32, #tpu.memory_space<vmem>>, vector<2x316xf32>
    %81 = vector.broadcast %79 : vector<2x1xf32> to vector<2x316xf32>
    %82 = arith.mulf %81, %80 : vector<2x316xf32>
    %83 = arith.addf %78, %82 : vector<2x316xf32>
    %84 = vector.extract_strided_slice %17 {offsets = [0, 13], sizes = [2, 1], strides = [1, 1]} : vector<2x25xf32> to vector<2x1xf32>
    %c0_28 = arith.constant 0 : index
    %c43 = arith.constant 43 : index
    %85 = vector.load %arg13[%c0_28, %c43] : memref<2x400xf32, #tpu.memory_space<vmem>>, vector<2x316xf32>
    %86 = vector.broadcast %84 : vector<2x1xf32> to vector<2x316xf32>
    %87 = arith.mulf %86, %85 : vector<2x316xf32>
    %88 = arith.addf %83, %87 : vector<2x316xf32>
    %89 = vector.extract_strided_slice %17 {offsets = [0, 14], sizes = [2, 1], strides = [1, 1]} : vector<2x25xf32> to vector<2x1xf32>
    %c0_29 = arith.constant 0 : index
    %c44 = arith.constant 44 : index
    %90 = vector.load %arg13[%c0_29, %c44] : memref<2x400xf32, #tpu.memory_space<vmem>>, vector<2x316xf32>
    %91 = vector.broadcast %89 : vector<2x1xf32> to vector<2x316xf32>
    %92 = arith.mulf %91, %90 : vector<2x316xf32>
    %93 = arith.addf %88, %92 : vector<2x316xf32>
    %94 = vector.extract_strided_slice %17 {offsets = [0, 15], sizes = [2, 1], strides = [1, 1]} : vector<2x25xf32> to vector<2x1xf32>
    %c0_30 = arith.constant 0 : index
    %c60 = arith.constant 60 : index
    %95 = vector.load %arg13[%c0_30, %c60] : memref<2x400xf32, #tpu.memory_space<vmem>>, vector<2x316xf32>
    %96 = vector.broadcast %94 : vector<2x1xf32> to vector<2x316xf32>
    %97 = arith.mulf %96, %95 : vector<2x316xf32>
    %98 = arith.addf %93, %97 : vector<2x316xf32>
    %99 = vector.extract_strided_slice %17 {offsets = [0, 16], sizes = [2, 1], strides = [1, 1]} : vector<2x25xf32> to vector<2x1xf32>
    %c0_31 = arith.constant 0 : index
    %c61 = arith.constant 61 : index
    %100 = vector.load %arg13[%c0_31, %c61] : memref<2x400xf32, #tpu.memory_space<vmem>>, vector<2x316xf32>
    %101 = vector.broadcast %99 : vector<2x1xf32> to vector<2x316xf32>
    %102 = arith.mulf %101, %100 : vector<2x316xf32>
    %103 = arith.addf %98, %102 : vector<2x316xf32>
    %104 = vector.extract_strided_slice %17 {offsets = [0, 17], sizes = [2, 1], strides = [1, 1]} : vector<2x25xf32> to vector<2x1xf32>
    %c0_32 = arith.constant 0 : index
    %c62 = arith.constant 62 : index
    %105 = vector.load %arg13[%c0_32, %c62] : memref<2x400xf32, #tpu.memory_space<vmem>>, vector<2x316xf32>
    %106 = vector.broadcast %104 : vector<2x1xf32> to vector<2x316xf32>
    %107 = arith.mulf %106, %105 : vector<2x316xf32>
    %108 = arith.addf %103, %107 : vector<2x316xf32>
    %109 = vector.extract_strided_slice %17 {offsets = [0, 18], sizes = [2, 1], strides = [1, 1]} : vector<2x25xf32> to vector<2x1xf32>
    %c0_33 = arith.constant 0 : index
    %c63 = arith.constant 63 : index
    %110 = vector.load %arg13[%c0_33, %c63] : memref<2x400xf32, #tpu.memory_space<vmem>>, vector<2x316xf32>
    %111 = vector.broadcast %109 : vector<2x1xf32> to vector<2x316xf32>
    %112 = arith.mulf %111, %110 : vector<2x316xf32>
    %113 = arith.addf %108, %112 : vector<2x316xf32>
    %114 = vector.extract_strided_slice %17 {offsets = [0, 19], sizes = [2, 1], strides = [1, 1]} : vector<2x25xf32> to vector<2x1xf32>
    %c0_34 = arith.constant 0 : index
    %c64 = arith.constant 64 : index
    %115 = vector.load %arg13[%c0_34, %c64] : memref<2x400xf32, #tpu.memory_space<vmem>>, vector<2x316xf32>
    %116 = vector.broadcast %114 : vector<2x1xf32> to vector<2x316xf32>
    %117 = arith.mulf %116, %115 : vector<2x316xf32>
    %118 = arith.addf %113, %117 : vector<2x316xf32>
    %119 = vector.extract_strided_slice %17 {offsets = [0, 20], sizes = [2, 1], strides = [1, 1]} : vector<2x25xf32> to vector<2x1xf32>
    %c0_35 = arith.constant 0 : index
    %c80 = arith.constant 80 : index
    %120 = vector.load %arg13[%c0_35, %c80] : memref<2x400xf32, #tpu.memory_space<vmem>>, vector<2x316xf32>
    %121 = vector.broadcast %119 : vector<2x1xf32> to vector<2x316xf32>
    %122 = arith.mulf %121, %120 : vector<2x316xf32>
    %123 = arith.addf %118, %122 : vector<2x316xf32>
    %124 = vector.extract_strided_slice %17 {offsets = [0, 21], sizes = [2, 1], strides = [1, 1]} : vector<2x25xf32> to vector<2x1xf32>
    %c0_36 = arith.constant 0 : index
    %c81 = arith.constant 81 : index
    %125 = vector.load %arg13[%c0_36, %c81] : memref<2x400xf32, #tpu.memory_space<vmem>>, vector<2x316xf32>
    %126 = vector.broadcast %124 : vector<2x1xf32> to vector<2x316xf32>
    %127 = arith.mulf %126, %125 : vector<2x316xf32>
    %128 = arith.addf %123, %127 : vector<2x316xf32>
    %129 = vector.extract_strided_slice %17 {offsets = [0, 22], sizes = [2, 1], strides = [1, 1]} : vector<2x25xf32> to vector<2x1xf32>
    %c0_37 = arith.constant 0 : index
    %c82 = arith.constant 82 : index
    %130 = vector.load %arg13[%c0_37, %c82] : memref<2x400xf32, #tpu.memory_space<vmem>>, vector<2x316xf32>
    %131 = vector.broadcast %129 : vector<2x1xf32> to vector<2x316xf32>
    %132 = arith.mulf %131, %130 : vector<2x316xf32>
    %133 = arith.addf %128, %132 : vector<2x316xf32>
    %134 = vector.extract_strided_slice %17 {offsets = [0, 23], sizes = [2, 1], strides = [1, 1]} : vector<2x25xf32> to vector<2x1xf32>
    %c0_38 = arith.constant 0 : index
    %c83 = arith.constant 83 : index
    %135 = vector.load %arg13[%c0_38, %c83] : memref<2x400xf32, #tpu.memory_space<vmem>>, vector<2x316xf32>
    %136 = vector.broadcast %134 : vector<2x1xf32> to vector<2x316xf32>
    %137 = arith.mulf %136, %135 : vector<2x316xf32>
    %138 = arith.addf %133, %137 : vector<2x316xf32>
    %139 = vector.extract_strided_slice %17 {offsets = [0, 24], sizes = [2, 1], strides = [1, 1]} : vector<2x25xf32> to vector<2x1xf32>
    %c0_39 = arith.constant 0 : index
    %c84 = arith.constant 84 : index
    %140 = vector.load %arg13[%c0_39, %c84] : memref<2x400xf32, #tpu.memory_space<vmem>>, vector<2x316xf32>
    %141 = vector.broadcast %139 : vector<2x1xf32> to vector<2x316xf32>
    %142 = arith.mulf %141, %140 : vector<2x316xf32>
    %143 = arith.addf %138, %142 : vector<2x316xf32>
    %c0_40 = arith.constant 0 : index
    %c0_41 = arith.constant 0 : index
    %144 = vector.load %arg6[%c0_40, %c0_41] : memref<2x1xf32, #tpu.memory_space<vmem>>, vector<2x1xf32>
    %145 = vector.broadcast %144 : vector<2x1xf32> to vector<2x316xf32>
    %146 = arith.addf %143, %145 : vector<2x316xf32>
    %147 = arith.negf %146 : vector<2x316xf32>
    %148 = math.exp %147 : vector<2x316xf32>
    %cst_42 = arith.constant 1.000000e+00 : f32
    %149 = vector.broadcast %cst_42 : f32 to vector<2x316xf32>
    %150 = arith.addf %149, %148 : vector<2x316xf32>
    %151 = arith.divf %149, %150 : vector<2x316xf32>
    %152 = arith.mulf %146, %151 : vector<2x316xf32>
    %cst_43 = arith.constant 0.000000e+00 : f32
    %153 = vector.broadcast %cst_43 : f32 to vector<2x400xf32>
    %c0_44 = arith.constant 0 : index
    %c0_45 = arith.constant 0 : index
    %154 = vector.load %arg14[%c0_44, %c0_45] : memref<2x400xf32, #tpu.memory_space<vmem>>, vector<2x400xf32>
    tpu.vector_store %arg14[%c0_44, %c0_45], %153 {strides = array<i32>} : memref<2x400xf32, #tpu.memory_space<vmem>>, vector<2x400xf32>,
    %c0_46 = arith.constant 0 : index
    %c42_47 = arith.constant 42 : index
    %155 = vector.load %arg14[%c0_46, %c42_47] : memref<2x400xf32, #tpu.memory_space<vmem>>, vector<2x316xf32>
    tpu.vector_store %arg14[%c0_46, %c42_47], %152 {strides = array<i32>} : memref<2x400xf32, #tpu.memory_space<vmem>>, vector<2x316xf32>,
    %c0_48 = arith.constant 0 : index
    %c0_49 = arith.constant 0 : index
    %156 = vector.load %arg7[%c0_48, %c0_49] : memref<4x2xf32, #tpu.memory_space<vmem>>, vector<4x2xf32>
    %c0_50 = arith.constant 0 : index
    %c0_51 = arith.constant 0 : index
    %157 = vector.load %arg13[%c0_50, %c0_51] : memref<2x400xf32, #tpu.memory_space<vmem>>, vector<2x400xf32>
    %cst_52 = arith.constant dense<0.000000e+00> : vector<4x400xf32>
    %158 = tpu.matmul %156, %157, %cst_52 {dimension_numbers = #tpu.dot_dimension_numbers<[1], [0], [0], [1], [0, 0, 1, 1], [], []>} : vector<4x2xf32>, vector<2x400xf32>, vector<4x400xf32> -> vector<4x400xf32>
    %c0_53 = arith.constant 0 : index
    %c0_54 = arith.constant 0 : index
    %159 = vector.load %arg8[%c0_53, %c0_54] : memref<4x2xf32, #tpu.memory_space<vmem>>, vector<4x2xf32>
    %c0_55 = arith.constant 0 : index
    %c0_56 = arith.constant 0 : index
    %160 = vector.load %arg14[%c0_55, %c0_56] : memref<2x400xf32, #tpu.memory_space<vmem>>, vector<2x400xf32>
    %cst_57 = arith.constant dense<0.000000e+00> : vector<4x400xf32>
    %161 = tpu.matmul %159, %160, %cst_57 {dimension_numbers = #tpu.dot_dimension_numbers<[1], [0], [0], [1], [0, 0, 1, 1], [], []>} : vector<4x2xf32>, vector<2x400xf32>, vector<4x400xf32> -> vector<4x400xf32>
    %162 = arith.addf %158, %161 : vector<4x400xf32>
    %c0_58 = arith.constant 0 : index
    %c0_59 = arith.constant 0 : index
    %163 = vector.load %arg9[%c0_58, %c0_59] : memref<4x1xf32, #tpu.memory_space<vmem>>, vector<4x1xf32>
    %164 = vector.broadcast %163 : vector<4x1xf32> to vector<4x400xf32>
    %165 = arith.addf %162, %164 : vector<4x400xf32>
    %166 = vector.broadcast %0 : vector<1x400xf32> to vector<4x400xf32>
    %167 = arith.mulf %165, %166 : vector<4x400xf32>
    %c0_60 = arith.constant 0 : index
    %c0_61 = arith.constant 0 : index
    %168 = vector.load %arg15[%c0_60, %c0_61] : memref<4x400xf32, #tpu.memory_space<vmem>>, vector<4x400xf32>
    tpu.vector_store %arg15[%c0_60, %c0_61], %167 {strides = array<i32>} : memref<4x400xf32, #tpu.memory_space<vmem>>, vector<4x400xf32>,
    %c0_62 = arith.constant 0 : index
    %c0_63 = arith.constant 0 : index
    %169 = vector.load %arg10[%c0_62, %c0_63] : memref<4x25xf32, #tpu.memory_space<vmem>>, vector<4x25xf32>
    %cst_64 = arith.constant 0.000000e+00 : f32
    %170 = vector.broadcast %cst_64 : f32 to vector<4x316xf32>
    %171 = vector.extract_strided_slice %169 {offsets = [0, 0], sizes = [4, 1], strides = [1, 1]} : vector<4x25xf32> to vector<4x1xf32>
    %c0_65 = arith.constant 0 : index
    %c0_66 = arith.constant 0 : index
    %172 = vector.load %arg15[%c0_65, %c0_66] : memref<4x400xf32, #tpu.memory_space<vmem>>, vector<4x316xf32>
    %173 = vector.broadcast %171 : vector<4x1xf32> to vector<4x316xf32>
    %174 = arith.mulf %173, %172 : vector<4x316xf32>
    %175 = arith.addf %170, %174 : vector<4x316xf32>
    %176 = vector.extract_strided_slice %169 {offsets = [0, 1], sizes = [4, 1], strides = [1, 1]} : vector<4x25xf32> to vector<4x1xf32>
    %c0_67 = arith.constant 0 : index
    %c1_68 = arith.constant 1 : index
    %177 = vector.load %arg15[%c0_67, %c1_68] : memref<4x400xf32, #tpu.memory_space<vmem>>, vector<4x316xf32>
    %178 = vector.broadcast %176 : vector<4x1xf32> to vector<4x316xf32>
    %179 = arith.mulf %178, %177 : vector<4x316xf32>
    %180 = arith.addf %175, %179 : vector<4x316xf32>
    %181 = vector.extract_strided_slice %169 {offsets = [0, 2], sizes = [4, 1], strides = [1, 1]} : vector<4x25xf32> to vector<4x1xf32>
    %c0_69 = arith.constant 0 : index
    %c2_70 = arith.constant 2 : index
    %182 = vector.load %arg15[%c0_69, %c2_70] : memref<4x400xf32, #tpu.memory_space<vmem>>, vector<4x316xf32>
    %183 = vector.broadcast %181 : vector<4x1xf32> to vector<4x316xf32>
    %184 = arith.mulf %183, %182 : vector<4x316xf32>
    %185 = arith.addf %180, %184 : vector<4x316xf32>
    %186 = vector.extract_strided_slice %169 {offsets = [0, 3], sizes = [4, 1], strides = [1, 1]} : vector<4x25xf32> to vector<4x1xf32>
    %c0_71 = arith.constant 0 : index
    %c3_72 = arith.constant 3 : index
    %187 = vector.load %arg15[%c0_71, %c3_72] : memref<4x400xf32, #tpu.memory_space<vmem>>, vector<4x316xf32>
    %188 = vector.broadcast %186 : vector<4x1xf32> to vector<4x316xf32>
    %189 = arith.mulf %188, %187 : vector<4x316xf32>
    %190 = arith.addf %185, %189 : vector<4x316xf32>
    %191 = vector.extract_strided_slice %169 {offsets = [0, 4], sizes = [4, 1], strides = [1, 1]} : vector<4x25xf32> to vector<4x1xf32>
    %c0_73 = arith.constant 0 : index
    %c4_74 = arith.constant 4 : index
    %192 = vector.load %arg15[%c0_73, %c4_74] : memref<4x400xf32, #tpu.memory_space<vmem>>, vector<4x316xf32>
    %193 = vector.broadcast %191 : vector<4x1xf32> to vector<4x316xf32>
    %194 = arith.mulf %193, %192 : vector<4x316xf32>
    %195 = arith.addf %190, %194 : vector<4x316xf32>
    %196 = vector.extract_strided_slice %169 {offsets = [0, 5], sizes = [4, 1], strides = [1, 1]} : vector<4x25xf32> to vector<4x1xf32>
    %c0_75 = arith.constant 0 : index
    %c20_76 = arith.constant 20 : index
    %197 = vector.load %arg15[%c0_75, %c20_76] : memref<4x400xf32, #tpu.memory_space<vmem>>, vector<4x316xf32>
    %198 = vector.broadcast %196 : vector<4x1xf32> to vector<4x316xf32>
    %199 = arith.mulf %198, %197 : vector<4x316xf32>
    %200 = arith.addf %195, %199 : vector<4x316xf32>
    %201 = vector.extract_strided_slice %169 {offsets = [0, 6], sizes = [4, 1], strides = [1, 1]} : vector<4x25xf32> to vector<4x1xf32>
    %c0_77 = arith.constant 0 : index
    %c21_78 = arith.constant 21 : index
    %202 = vector.load %arg15[%c0_77, %c21_78] : memref<4x400xf32, #tpu.memory_space<vmem>>, vector<4x316xf32>
    %203 = vector.broadcast %201 : vector<4x1xf32> to vector<4x316xf32>
    %204 = arith.mulf %203, %202 : vector<4x316xf32>
    %205 = arith.addf %200, %204 : vector<4x316xf32>
    %206 = vector.extract_strided_slice %169 {offsets = [0, 7], sizes = [4, 1], strides = [1, 1]} : vector<4x25xf32> to vector<4x1xf32>
    %c0_79 = arith.constant 0 : index
    %c22_80 = arith.constant 22 : index
    %207 = vector.load %arg15[%c0_79, %c22_80] : memref<4x400xf32, #tpu.memory_space<vmem>>, vector<4x316xf32>
    %208 = vector.broadcast %206 : vector<4x1xf32> to vector<4x316xf32>
    %209 = arith.mulf %208, %207 : vector<4x316xf32>
    %210 = arith.addf %205, %209 : vector<4x316xf32>
    %211 = vector.extract_strided_slice %169 {offsets = [0, 8], sizes = [4, 1], strides = [1, 1]} : vector<4x25xf32> to vector<4x1xf32>
    %c0_81 = arith.constant 0 : index
    %c23_82 = arith.constant 23 : index
    %212 = vector.load %arg15[%c0_81, %c23_82] : memref<4x400xf32, #tpu.memory_space<vmem>>, vector<4x316xf32>
    %213 = vector.broadcast %211 : vector<4x1xf32> to vector<4x316xf32>
    %214 = arith.mulf %213, %212 : vector<4x316xf32>
    %215 = arith.addf %210, %214 : vector<4x316xf32>
    %216 = vector.extract_strided_slice %169 {offsets = [0, 9], sizes = [4, 1], strides = [1, 1]} : vector<4x25xf32> to vector<4x1xf32>
    %c0_83 = arith.constant 0 : index
    %c24_84 = arith.constant 24 : index
    %217 = vector.load %arg15[%c0_83, %c24_84] : memref<4x400xf32, #tpu.memory_space<vmem>>, vector<4x316xf32>
    %218 = vector.broadcast %216 : vector<4x1xf32> to vector<4x316xf32>
    %219 = arith.mulf %218, %217 : vector<4x316xf32>
    %220 = arith.addf %215, %219 : vector<4x316xf32>
    %221 = vector.extract_strided_slice %169 {offsets = [0, 10], sizes = [4, 1], strides = [1, 1]} : vector<4x25xf32> to vector<4x1xf32>
    %c0_85 = arith.constant 0 : index
    %c40_86 = arith.constant 40 : index
    %222 = vector.load %arg15[%c0_85, %c40_86] : memref<4x400xf32, #tpu.memory_space<vmem>>, vector<4x316xf32>
    %223 = vector.broadcast %221 : vector<4x1xf32> to vector<4x316xf32>
    %224 = arith.mulf %223, %222 : vector<4x316xf32>
    %225 = arith.addf %220, %224 : vector<4x316xf32>
    %226 = vector.extract_strided_slice %169 {offsets = [0, 11], sizes = [4, 1], strides = [1, 1]} : vector<4x25xf32> to vector<4x1xf32>
    %c0_87 = arith.constant 0 : index
    %c41_88 = arith.constant 41 : index
    %227 = vector.load %arg15[%c0_87, %c41_88] : memref<4x400xf32, #tpu.memory_space<vmem>>, vector<4x316xf32>
    %228 = vector.broadcast %226 : vector<4x1xf32> to vector<4x316xf32>
    %229 = arith.mulf %228, %227 : vector<4x316xf32>
    %230 = arith.addf %225, %229 : vector<4x316xf32>
    %231 = vector.extract_strided_slice %169 {offsets = [0, 12], sizes = [4, 1], strides = [1, 1]} : vector<4x25xf32> to vector<4x1xf32>
    %c0_89 = arith.constant 0 : index
    %c42_90 = arith.constant 42 : index
    %232 = vector.load %arg15[%c0_89, %c42_90] : memref<4x400xf32, #tpu.memory_space<vmem>>, vector<4x316xf32>
    %233 = vector.broadcast %231 : vector<4x1xf32> to vector<4x316xf32>
    %234 = arith.mulf %233, %232 : vector<4x316xf32>
    %235 = arith.addf %230, %234 : vector<4x316xf32>
    %236 = vector.extract_strided_slice %169 {offsets = [0, 13], sizes = [4, 1], strides = [1, 1]} : vector<4x25xf32> to vector<4x1xf32>
    %c0_91 = arith.constant 0 : index
    %c43_92 = arith.constant 43 : index
    %237 = vector.load %arg15[%c0_91, %c43_92] : memref<4x400xf32, #tpu.memory_space<vmem>>, vector<4x316xf32>
    %238 = vector.broadcast %236 : vector<4x1xf32> to vector<4x316xf32>
    %239 = arith.mulf %238, %237 : vector<4x316xf32>
    %240 = arith.addf %235, %239 : vector<4x316xf32>
    %241 = vector.extract_strided_slice %169 {offsets = [0, 14], sizes = [4, 1], strides = [1, 1]} : vector<4x25xf32> to vector<4x1xf32>
    %c0_93 = arith.constant 0 : index
    %c44_94 = arith.constant 44 : index
    %242 = vector.load %arg15[%c0_93, %c44_94] : memref<4x400xf32, #tpu.memory_space<vmem>>, vector<4x316xf32>
    %243 = vector.broadcast %241 : vector<4x1xf32> to vector<4x316xf32>
    %244 = arith.mulf %243, %242 : vector<4x316xf32>
    %245 = arith.addf %240, %244 : vector<4x316xf32>
    %246 = vector.extract_strided_slice %169 {offsets = [0, 15], sizes = [4, 1], strides = [1, 1]} : vector<4x25xf32> to vector<4x1xf32>
    %c0_95 = arith.constant 0 : index
    %c60_96 = arith.constant 60 : index
    %247 = vector.load %arg15[%c0_95, %c60_96] : memref<4x400xf32, #tpu.memory_space<vmem>>, vector<4x316xf32>
    %248 = vector.broadcast %246 : vector<4x1xf32> to vector<4x316xf32>
    %249 = arith.mulf %248, %247 : vector<4x316xf32>
    %250 = arith.addf %245, %249 : vector<4x316xf32>
    %251 = vector.extract_strided_slice %169 {offsets = [0, 16], sizes = [4, 1], strides = [1, 1]} : vector<4x25xf32> to vector<4x1xf32>
    %c0_97 = arith.constant 0 : index
    %c61_98 = arith.constant 61 : index
    %252 = vector.load %arg15[%c0_97, %c61_98] : memref<4x400xf32, #tpu.memory_space<vmem>>, vector<4x316xf32>
    %253 = vector.broadcast %251 : vector<4x1xf32> to vector<4x316xf32>
    %254 = arith.mulf %253, %252 : vector<4x316xf32>
    %255 = arith.addf %250, %254 : vector<4x316xf32>
    %256 = vector.extract_strided_slice %169 {offsets = [0, 17], sizes = [4, 1], strides = [1, 1]} : vector<4x25xf32> to vector<4x1xf32>
    %c0_99 = arith.constant 0 : index
    %c62_100 = arith.constant 62 : index
    %257 = vector.load %arg15[%c0_99, %c62_100] : memref<4x400xf32, #tpu.memory_space<vmem>>, vector<4x316xf32>
    %258 = vector.broadcast %256 : vector<4x1xf32> to vector<4x316xf32>
    %259 = arith.mulf %258, %257 : vector<4x316xf32>
    %260 = arith.addf %255, %259 : vector<4x316xf32>
    %261 = vector.extract_strided_slice %169 {offsets = [0, 18], sizes = [4, 1], strides = [1, 1]} : vector<4x25xf32> to vector<4x1xf32>
    %c0_101 = arith.constant 0 : index
    %c63_102 = arith.constant 63 : index
    %262 = vector.load %arg15[%c0_101, %c63_102] : memref<4x400xf32, #tpu.memory_space<vmem>>, vector<4x316xf32>
    %263 = vector.broadcast %261 : vector<4x1xf32> to vector<4x316xf32>
    %264 = arith.mulf %263, %262 : vector<4x316xf32>
    %265 = arith.addf %260, %264 : vector<4x316xf32>
    %266 = vector.extract_strided_slice %169 {offsets = [0, 19], sizes = [4, 1], strides = [1, 1]} : vector<4x25xf32> to vector<4x1xf32>
    %c0_103 = arith.constant 0 : index
    %c64_104 = arith.constant 64 : index
    %267 = vector.load %arg15[%c0_103, %c64_104] : memref<4x400xf32, #tpu.memory_space<vmem>>, vector<4x316xf32>
    %268 = vector.broadcast %266 : vector<4x1xf32> to vector<4x316xf32>
    %269 = arith.mulf %268, %267 : vector<4x316xf32>
    %270 = arith.addf %265, %269 : vector<4x316xf32>
    %271 = vector.extract_strided_slice %169 {offsets = [0, 20], sizes = [4, 1], strides = [1, 1]} : vector<4x25xf32> to vector<4x1xf32>
    %c0_105 = arith.constant 0 : index
    %c80_106 = arith.constant 80 : index
    %272 = vector.load %arg15[%c0_105, %c80_106] : memref<4x400xf32, #tpu.memory_space<vmem>>, vector<4x316xf32>
    %273 = vector.broadcast %271 : vector<4x1xf32> to vector<4x316xf32>
    %274 = arith.mulf %273, %272 : vector<4x316xf32>
    %275 = arith.addf %270, %274 : vector<4x316xf32>
    %276 = vector.extract_strided_slice %169 {offsets = [0, 21], sizes = [4, 1], strides = [1, 1]} : vector<4x25xf32> to vector<4x1xf32>
    %c0_107 = arith.constant 0 : index
    %c81_108 = arith.constant 81 : index
    %277 = vector.load %arg15[%c0_107, %c81_108] : memref<4x400xf32, #tpu.memory_space<vmem>>, vector<4x316xf32>
    %278 = vector.broadcast %276 : vector<4x1xf32> to vector<4x316xf32>
    %279 = arith.mulf %278, %277 : vector<4x316xf32>
    %280 = arith.addf %275, %279 : vector<4x316xf32>
    %281 = vector.extract_strided_slice %169 {offsets = [0, 22], sizes = [4, 1], strides = [1, 1]} : vector<4x25xf32> to vector<4x1xf32>
    %c0_109 = arith.constant 0 : index
    %c82_110 = arith.constant 82 : index
    %282 = vector.load %arg15[%c0_109, %c82_110] : memref<4x400xf32, #tpu.memory_space<vmem>>, vector<4x316xf32>
    %283 = vector.broadcast %281 : vector<4x1xf32> to vector<4x316xf32>
    %284 = arith.mulf %283, %282 : vector<4x316xf32>
    %285 = arith.addf %280, %284 : vector<4x316xf32>
    %286 = vector.extract_strided_slice %169 {offsets = [0, 23], sizes = [4, 1], strides = [1, 1]} : vector<4x25xf32> to vector<4x1xf32>
    %c0_111 = arith.constant 0 : index
    %c83_112 = arith.constant 83 : index
    %287 = vector.load %arg15[%c0_111, %c83_112] : memref<4x400xf32, #tpu.memory_space<vmem>>, vector<4x316xf32>
    %288 = vector.broadcast %286 : vector<4x1xf32> to vector<4x316xf32>
    %289 = arith.mulf %288, %287 : vector<4x316xf32>
    %290 = arith.addf %285, %289 : vector<4x316xf32>
    %291 = vector.extract_strided_slice %169 {offsets = [0, 24], sizes = [4, 1], strides = [1, 1]} : vector<4x25xf32> to vector<4x1xf32>
    %c0_113 = arith.constant 0 : index
    %c84_114 = arith.constant 84 : index
    %292 = vector.load %arg15[%c0_113, %c84_114] : memref<4x400xf32, #tpu.memory_space<vmem>>, vector<4x316xf32>
    %293 = vector.broadcast %291 : vector<4x1xf32> to vector<4x316xf32>
    %294 = arith.mulf %293, %292 : vector<4x316xf32>
    %295 = arith.addf %290, %294 : vector<4x316xf32>
    %c0_115 = arith.constant 0 : index
    %c0_116 = arith.constant 0 : index
    %296 = vector.load %arg11[%c0_115, %c0_116] : memref<4x1xf32, #tpu.memory_space<vmem>>, vector<4x1xf32>
    %297 = vector.broadcast %296 : vector<4x1xf32> to vector<4x316xf32>
    %298 = arith.addf %295, %297 : vector<4x316xf32>
    %c0_117 = arith.constant 0 : index
    %c0_118 = arith.constant 0 : index
    %c0_119 = arith.constant 0 : index
    %299 = vector.load %arg1[%c0_117, %c0_118, %c0_119] : memref<1x8x400xf32, #tpu.memory_space<vmem>>, vector<1x4x400xf32>
    %300 = vector.shape_cast %299 : vector<1x4x400xf32> to vector<4x400xf32>
    %301 = arith.addf %167, %300 : vector<4x400xf32>
    %c0_120 = arith.constant 0 : index
    %c0_121 = arith.constant 0 : index
    %c0_122 = arith.constant 0 : index
    %302 = vector.load %arg12[%c0_120, %c0_121, %c0_122] : memref<1x8x400xf32, #tpu.memory_space<vmem>>, vector<1x4x400xf32>
    %303 = vector.shape_cast %302 : vector<1x4x400xf32> to vector<4x400xf32>
    %304 = vector.shape_cast %301 : vector<4x400xf32> to vector<1x4x400xf32>
    tpu.vector_store %arg12[%c0_120, %c0_121, %c0_122], %304 {strides = array<i32>} : memref<1x8x400xf32, #tpu.memory_space<vmem>>, vector<1x4x400xf32>,
    %c0_123 = arith.constant 0 : index
    %c4_124 = arith.constant 4 : index
    %c0_125 = arith.constant 0 : index
    %305 = vector.load %arg1[%c0_123, %c4_124, %c0_125] : memref<1x8x400xf32, #tpu.memory_space<vmem>>, vector<1x4x400xf32>
    %306 = vector.shape_cast %305 : vector<1x4x400xf32> to vector<4x400xf32>
    %c0_126 = arith.constant 0 : index
    %c4_127 = arith.constant 4 : index
    %c0_128 = arith.constant 0 : index
    %307 = vector.load %arg12[%c0_126, %c4_127, %c0_128] : memref<1x8x400xf32, #tpu.memory_space<vmem>>, vector<1x4x400xf32>
    %308 = vector.shape_cast %307 : vector<1x4x400xf32> to vector<4x400xf32>
    %309 = vector.shape_cast %306 : vector<4x400xf32> to vector<1x4x400xf32>
    tpu.vector_store %arg12[%c0_126, %c4_127, %c0_128], %309 {strides = array<i32>} : memref<1x8x400xf32, #tpu.memory_space<vmem>>, vector<1x4x400xf32>,
    %c0_129 = arith.constant 0 : index
    %c4_130 = arith.constant 4 : index
    %c42_131 = arith.constant 42 : index
    %310 = vector.load %arg1[%c0_129, %c4_130, %c42_131] : memref<1x8x400xf32, #tpu.memory_space<vmem>>, vector<1x4x316xf32>
    %311 = vector.shape_cast %310 : vector<1x4x316xf32> to vector<4x316xf32>
    %312 = arith.addf %298, %311 : vector<4x316xf32>
    %c0_132 = arith.constant 0 : index
    %c4_133 = arith.constant 4 : index
    %c42_134 = arith.constant 42 : index
    %313 = vector.load %arg12[%c0_132, %c4_133, %c42_134] : memref<1x8x400xf32, #tpu.memory_space<vmem>>, vector<1x4x316xf32>
    %314 = vector.shape_cast %313 : vector<1x4x316xf32> to vector<4x316xf32>
    %315 = vector.shape_cast %312 : vector<4x316xf32> to vector<1x4x316xf32>
    tpu.vector_store %arg12[%c0_132, %c4_133, %c42_134], %315 {strides = array<i32>} : memref<1x8x400xf32, #tpu.memory_space<vmem>>, vector<1x4x316xf32>,
    return
  }
  func.func @transform_0(%arg0: i32) -> (i32, i32, i32) {
    %c0_i32 = arith.constant 0 : i32
    %c0_i32_0 = arith.constant 0 : i32
    %c0_i32_1 = arith.constant 0 : i32
    return %arg0, %c0_i32, %c0_i32_0 : i32, i32, i32
  }
  func.func @transform_1(%arg0: i32) -> (i32, i32) {
    %c0_i32 = arith.constant 0 : i32
    %c0_i32_0 = arith.constant 0 : i32
    %c0_i32_1 = arith.constant 0 : i32
    return %c0_i32, %c0_i32_0 : i32, i32
  }
  func.func @transform_2(%arg0: i32) -> (i32, i32) {
    %c0_i32 = arith.constant 0 : i32
    %c0_i32_0 = arith.constant 0 : i32
    %c0_i32_1 = arith.constant 0 : i32
    return %c0_i32, %c0_i32_0 : i32, i32
  }
  func.func @transform_3(%arg0: i32) -> (i32, i32) {
    %c0_i32 = arith.constant 0 : i32
    %c0_i32_0 = arith.constant 0 : i32
    %c0_i32_1 = arith.constant 0 : i32
    return %c0_i32, %c0_i32_0 : i32, i32
  }
  func.func @transform_4(%arg0: i32) -> (i32, i32) {
    %c0_i32 = arith.constant 0 : i32
    %c0_i32_0 = arith.constant 0 : i32
    %c0_i32_1 = arith.constant 0 : i32
    return %c0_i32, %c0_i32_0 : i32, i32
  }
  func.func @transform_5(%arg0: i32) -> (i32, i32) {
    %c0_i32 = arith.constant 0 : i32
    %c0_i32_0 = arith.constant 0 : i32
    %c0_i32_1 = arith.constant 0 : i32
    return %c0_i32, %c0_i32_0 : i32, i32
  }
  func.func @transform_6(%arg0: i32) -> (i32, i32) {
    %c0_i32 = arith.constant 0 : i32
    %c0_i32_0 = arith.constant 0 : i32
    %c0_i32_1 = arith.constant 0 : i32
    return %c0_i32, %c0_i32_0 : i32, i32
  }
  func.func @transform_7(%arg0: i32) -> (i32, i32) {
    %c0_i32 = arith.constant 0 : i32
    %c0_i32_0 = arith.constant 0 : i32
    %c0_i32_1 = arith.constant 0 : i32
    return %c0_i32, %c0_i32_0 : i32, i32
  }
  func.func @transform_8(%arg0: i32) -> (i32, i32) {
    %c0_i32 = arith.constant 0 : i32
    %c0_i32_0 = arith.constant 0 : i32
    %c0_i32_1 = arith.constant 0 : i32
    return %c0_i32, %c0_i32_0 : i32, i32
  }
  func.func @transform_9(%arg0: i32) -> (i32, i32) {
    %c0_i32 = arith.constant 0 : i32
    %c0_i32_0 = arith.constant 0 : i32
    %c0_i32_1 = arith.constant 0 : i32
    return %c0_i32, %c0_i32_0 : i32, i32
  }
  func.func @transform_10(%arg0: i32) -> (i32, i32) {
    %c0_i32 = arith.constant 0 : i32
    %c0_i32_0 = arith.constant 0 : i32
    %c0_i32_1 = arith.constant 0 : i32
    return %c0_i32, %c0_i32_0 : i32, i32
  }
  func.func @transform_11(%arg0: i32) -> (i32, i32, i32) {
    %c0_i32 = arith.constant 0 : i32
    %c0_i32_0 = arith.constant 0 : i32
    %c0_i32_1 = arith.constant 0 : i32
    return %arg0, %c0_i32, %c0_i32_0 : i32, i32, i32
  }
}

</mosaic_0001>

<bundles_post_ra>
// kernel: ghost_bottleneck_forward.1
= control target key start
LH: loop header
LB: loop body
LE: loop exit
PB: predicated region body
PF: predicated region fallthrough
CT: control target
= control target key end

     0   :  { %s2843_s17 = smov 0   ;;  %s4051_s0 = inlined_call_operand.vmem [shape: f32[2,8,400], index: 0, kind: input, shape index: {}]   ;;  %s4052_s1 = inlined_call_operand.vmem [shape: f32[1,400], index: 1, kind: input, shape index: {}]   ;;  %s4053_s2 = inlined_call_operand.vmem [shape: f32[2,8], index: 2, kind: input, shape index: {}]   ;;  %s4054_s3 = inlined_call_operand.vmem [shape: f32[2,1], index: 3, kind: input, shape index: {}]   ;;  %s4055_s4 = inlined_call_operand.vmem [shape: f32[2,25], index: 4, kind: input, shape index: {}]   ;;  %s4056_s5 = inlined_call_operand.vmem [shape: f32[2,1], index: 5, kind: input, shape index: {}]   ;;  %s4057_s6 = inlined_call_operand.vmem [shape: f32[4,2], index: 6, kind: input, shape index: {}]   ;;  %s4058_s7 = inlined_call_operand.vmem [shape: f32[4,2], index: 7, kind: input, shape index: {}]   ;;  %s4059_s8 = inlined_call_operand.vmem [shape: f32[4,1], index: 8, kind: input, shape index: {}]   ;;  %s4060_s9 = inlined_call_operand.vmem [shape: f32[4,25], index: 9, kind: input, shape index: {}]   ;;  %s4061_s10 = inlined_call_operand.vmem [shape: f32[4,1], index: 10, kind: input, shape index: {}]   ;;  %s4062_s11 = inlined_call_operand.vmem [shape: f32[2,8,400], index: 11, kind: output, shape index: {}]  }
   0x1 LB: > { %s2543_s18 = sadd.s32 4294967295, %s2730_s17   ;;  %p2547_p0 = scmp.ge.s32.totalorder %s2730_s17, 1  ;;  %s2730_s17 = sphi %s2843_s17, %s21_s17  }
   0x2   : > { %p337_p1 = scmp.lt.s32.totalorder %s2730_s17, 3 }
   0x4   : > { %p338_p2 = pnand %p2547_p0, %p337_p1 }
   0x6   : > { %341 = sbr.rel (%p338_p2) target bundleno = 1469 (0x5bd), region = 64 }
   0xb   : > { %p377_p3 = scmp.lt.s32.totalorder %s2543_s18, 1  ;;  %v4107_v0 = vmov 0   ;;  %v393_v1 = vld [vmem:[%s4054_s3] sm:$0x3]  ;;  %v4102_v3 = vmov 3   ;;  %vm399_vm0 = vcmask 64512  }
   0xc   : > { %2642 = vset.pattern.permute.xlu0 %v4107_v0  ;;  %v2858_v2 = vld [vmem:[%s4055_s4] sm:$0x3]  ;;  %2645 = vset.pattern.permute.xlu2 %v4102_v3  ;;  %v4101_v9 = vmov 5   ;;  %v4106_v10 = vmov 2   ;;  %v4098_v11 = vmov 7   ;;  %v4089_v12 = vmov 4  }
   0xd   : > { %s4354_s18 = smov (!%p377_p3, %s2543_s18), 1  ;;  %396 = vperm.xlu0 %2642, %v393_v1   ;;  %675 = vperm.xlu2 %2645, %v2858_v2   ;;  %v392_v4 = vld [vmem:[%s4053_s2] sm:$0x3]  ;;  %v4088_v13 = vmov 6   ;;  %v4097_v14 = vmov 9   ;;  %v4087_v15 = vmov 8  }
   0xe   : > { %s2581_s23 = sshll.u32 %s4354_s18, 5  ;;  %v4096_v16 = vmov 11   ;;  %v4084_v24 = vmov 10   ;;  %v4095_v27 = vmov 13   ;;  %v4083_v36 = vmov 12   ;;  %s2756_s12 = smov 127  }
   0xf   : > { %s2870_s26 = scalar_lea.vmem %s4051_s0, %s2581_s23  ;;  %v4082_v38 = vmov 14   ;;  %v2932_v47 = vld [vmem:[%s4052_s1] sm:$0xf]  ;;  %v4094_v53 = vmov 15   ;;  %v4081_v57 = vmov 16   ;;  %vm583_vm8 = vcmask 1041408  }
  0x10   : > { %v388_v5 = vld [vmem:[%s2870_s26] sm:$0xff]  ;;  %v389_v6 = vld [vmem:[%s2870_s26 + $0x8] sm:$0xff]  ;;  %v390_v7 = vld [vmem:[%s2870_s26 + $0x10] sm:$0xff]  ;;  %4177 = vst [vmem:[#allocation5_spill] sm:$0xff] %v2932_v47  ;;  %v4072_v55 = vperm.slane %v2932_v47, 1  ;;  %v4067_v56 = vperm.slane %v2932_v47, 2 }
  0x11   : > { %418 = vmatpush.msra.mxu0 %v388_v5  ;;  %438 = vmatpush.msra.mxu1 %v389_v6  ;;  %v391_v8 = vld [vmem:[%s2870_s26 + $0x18] sm:$0xff]  ;;  %vm590_vm14 = vcmask 1043458   ;;  %s2757_s13 = smov 126   ;;  %s2758_s14 = smov 125  }
  0x12   : > { %458 = vmatpush.msra.mxu2 %v390_v7  ;;  %478 = vmatpush.msra.mxu3 %v391_v8  ;;  %s2759_s15 = smov 124   ;;  %s2760_s16 = smov 108  }
  0x13   : > { %2552 = vmatmul.msk.f32.vlgmr.msra.gmra.mxu0 %vm399_vm0, %v392_v4  ;;  %2553 = vmatmul.msk.f32.vlgmr.msra.gmra.mxu1 %vm399_vm0, %v392_v4  ;;  %s2761_s19 = smov 107   ;;  %s2762_s20 = smov 106  }
  0x14   : > { %2554 = vmatmul.msk.f32.vlgmr.msra.gmra.mxu2 %vm399_vm0, %v392_v4  ;;  %2555 = vmatmul.msk.f32.vlgmr.msra.gmra.mxu3 %vm399_vm0, %v392_v4  ;;  %s2763_s21 = smov 105   ;;  %s2764_s22 = smov 104  }
  0x15   : > { %600 = vperm.xlu0 %2642, %v2858_v2   ;;  %2647 = vset.pattern.permute.xlu2 %v4101_v9  ;;  %s4063_s24 = smov 88   ;;  %s4065_s25 = smov 87  }
  0x16   : > { %731 = vperm.xlu2 %2647, %v2858_v2   ;;  %s4068_s27 = smov 86   ;;  %s4074_s28 = smov 85  }
  0x17   : > { %s4077_s29 = smov 84   ;;  %s4085_s30 = smov 68  }
  0x18   : > { %s4285_s18 = smov 87  }
  0x1d   : > { %2644 = vset.pattern.permute.xlu0 %v4106_v10 }
  0x1e   : > { %647 = vperm.xlu0 %2644, %v2858_v2   ;;  %2649 = vset.pattern.permute.xlu2 %v4098_v11 }
  0x1f   : > { %787 = vperm.xlu2 %2649, %v2858_v2  }
  0x26   : > { %2646 = vset.pattern.permute.xlu0 %v4089_v12 }
  0x27   : > { %703 = vperm.xlu0 %2646, %v2858_v2   ;;  %2651 = vset.pattern.permute.xlu2 %v4097_v14 }
  0x28   : > { %843 = vperm.xlu2 %2651, %v2858_v2  }
  0x2f   : > { %2648 = vset.pattern.permute.xlu0 %v4088_v13 }
  0x30   : > { %759 = vperm.xlu0 %2648, %v2858_v2   ;;  %2653 = vset.pattern.permute.xlu2 %v4096_v16 }
  0x31   : > { %899 = vperm.xlu2 %2653, %v2858_v2  }
  0x38   : > { %2650 = vset.pattern.permute.xlu0 %v4087_v15 }
  0x39   : > { %815 = vperm.xlu0 %2650, %v2858_v2   ;;  %2655 = vset.pattern.permute.xlu2 %v4095_v27 }
  0x3a   : > { %955 = vperm.xlu2 %2655, %v2858_v2  }
  0x41   : > { %2652 = vset.pattern.permute.xlu0 %v4084_v24 }
  0x42   : > { %871 = vperm.xlu0 %2652, %v2858_v2   ;;  %2656 = vset.pattern.permute.xlu2 %v4082_v38 }
  0x43   : > { %983 = vperm.xlu2 %2656, %v2858_v2  }
  0x4a   : > { %2654 = vset.pattern.permute.xlu0 %v4083_v36 }
  0x4b   : > { %927 = vperm.xlu0 %2654, %v2858_v2   ;;  %2658 = vset.pattern.permute.xlu2 %v4081_v57 }
  0x4c   : > { %1039 = vperm.xlu2 %2658, %v2858_v2  }
  0x53   : > { %2657 = vset.pattern.permute.xlu0 %v4094_v53 }
  0x54   : > { %1011 = vperm.xlu0 %2657, %v2858_v2  }
  0x7f   : > { %v397_v17 = vpop.permute.xlu0 %396 }
  0x90   : > { %v420_v18 = vpop.f32.mrf.mxu0  ;;  %v440_v19 = vpop.f32.mrf.mxu1 }
  0x91   : > { %v2896_v20 = vadd.f32 %v420_v18, %v397_v17  ;;  %v2898_v21 = vadd.f32 %v440_v19, %v397_v17 }
  0x93   : > { %v2556_v22 = vmul.f32 -1.442695, %v2896_v20  ;;  %v2557_v23 = vmul.f32 -1.442695, %v2898_v21 }
  0x95   : > { %2695 = vpow2.f32 %v2556_v22 }
  0x96   : > { %2697 = vpow2.f32 %v2557_v23 }
  0x97   : > { %v460_v25 = vpop.f32.mrf.mxu2  ;;  %v480_v26 = vpop.f32.mrf.mxu3 }
  0x98   : > { %v2905_v28 = vadd.f32 %v460_v25, %v397_v17  ;;  %v2907_v29 = vadd.f32 %v480_v26, %v397_v17 }
  0x9a   : > { %v2558_v30 = vmul.f32 -1.442695, %v2905_v28  ;;  %v2559_v31 = vmul.f32 -1.442695, %v2907_v29 }
  0x9b   : > { %v2696_v32 = vpop.eup %2695 }
  0x9c   : > { %v2698_v33 = vpop.eup %2697  ;;  %v2912_v34 = vadd.f32 1.0, %v2696_v32  ;;  %2699 = vpow2.f32 %v2558_v30 }
  0x9d   : > { %v496_v35 = vadd.f32 1.0, %v2698_v33  ;;  %2701 = vpow2.f32 %v2559_v31  ;;  %v2748_v33 = vmov 1  }
  0x9e   : > { %2703 = vrcp.f32 %v2912_v34  ;;  %vm504_vm3 = vweird.f32 %v2912_v34  ;;  %v508_v58 = vand.u32 2147483647, %v2912_v34  ;;  %v510_v59 = vand.u32 2147483648, %v2912_v34  ;;  %2643 = vset.pattern.permute.xlu1 %v2748_v33 }
  0x9f   : > { %2705 = vrcp.f32 %v496_v35  ;;  %v523_v49 = vand.u32 2147483647, %v496_v35  ;;  %v525_v50 = vand.u32 2147483648, %v496_v35  ;;  %vm519_vm1 = vweird.f32 %v496_v35  ;;  %619 = vperm.xlu1 %2643, %v2858_v2  }
  0xa0   : > { %vm509_vm12 = vcmp.eq.f32.partialorder %v508_v58, 8.507059e+37 }
  0xa1   : > { %vm524_vm6 = vcmp.eq.f32.partialorder %v523_v49, 8.507059e+37  ;;  %v526_v63 = vor.u32 1.1754944e-38, %v525_v50 }
  0xa2   : > { %v2700_v37 = vpop.eup %2699 }
  0xa3   : > { %v2702_v39 = vpop.eup %2701  ;;  %v2918_v40 = vadd.f32 1.0, %v2700_v37  ;;  %v4091_v37 = vmov 17  }
  0xa4   : > { %v2921_v41 = vpop.eup %2703  ;;  %v2923_v42 = vadd.f32 1.0, %v2702_v39  ;;  %2659 = vset.pattern.permute.xlu0 %v4091_v37 }
  0xa5   : > { %v2706_v43 = vpop.eup %2705  ;;  %v500_v44 = vmul.f32 %v2921_v41, %v2912_v34  ;;  %2707 = vrcp.f32 %v2918_v40  ;;  %vm505_vm4 = vweird.f32 %v2921_v41  ;;  %vm534_vm7 = vweird.f32 %v2918_v40  ;;  %1067 = vperm.xlu0 %2659, %v2858_v2  }
  0xa6   : > { %v515_v45 = vmul.f32 %v2706_v43, %v496_v35  ;;  %2709 = vrcp.f32 %v2923_v42  ;;  %vm520_vm2 = vweird.f32 %v2706_v43  ;;  %v538_v8 = vand.u32 2147483647, %v2918_v40  ;;  %vm2958_vm10 = vmor %vm504_vm3, %vm505_vm4 }
  0xa7   : > { %v501_v46 = vsub.f32 1.0, %v500_v44  ;;  %vm521_vm5 = vmor %vm519_vm1, %vm520_vm2  ;;  %v540_v17 = vand.u32 2147483648, %v2918_v40  ;;  %v553_v18 = vand.u32 2147483647, %v2923_v42  ;;  %v555_v26 = vand.u32 2147483648, %v2923_v42 }
  0xa8   : > { %v516_v48 = vsub.f32 1.0, %v515_v45  ;;  %v511_v35 = vor.u32 1.1754944e-38, %v510_v59  ;;  %vm539_vm15 = vcmp.eq.f32.partialorder %v538_v8, 8.507059e+37  ;;  %vm549_vm0 = vweird.f32 %v2923_v42  ;;  %vm591_vm4 = vmor %vm590_vm14, %vm583_vm8 }
  0xa9   : > { %v502_v51 = vmul.f32 %v2921_v41, %v501_v46  ;;  %v556_v46 = vor.u32 1.1754944e-38, %v555_v26  ;;  %vm554_vm2 = vcmp.eq.f32.partialorder %v553_v18, 8.507059e+37  ;;  %vm585_vm3 = vcmask 1045508  }
  0xaa   : > { %v517_v52 = vmul.f32 %v2706_v43, %v516_v48 }
  0xab   : > { %v2708_v54 = vpop.eup %2707  ;;  %v503_v1 = vadd.f32 %v2921_v41, %v502_v51 }
  0xac   : > { %v518_v60 = vadd.f32 %v2706_v43, %v517_v52  ;;  %v530_v61 = vmul.f32 %v2708_v54, %v2918_v40  ;;  %v2710_v62 = vpop.eup %2709  ;;  %vm535_vm9 = vweird.f32 %v2708_v54  ;;  %v4080_v40 = vmov 18  }
  0xad   : > { %v545_v6 = vmul.f32 %v2710_v62, %v2923_v42  ;;  %v507_v30 = vsel %vm2958_vm10, %v2921_v41, %v503_v1  ;;  %vm550_vm11 = vweird.f32 %v2710_v62  ;;  %vm2969_vm13 = vmor %vm534_vm7, %vm535_vm9  ;;  %2660 = vset.pattern.permute.xlu2 %v4080_v40  ;;  %v4070_v42 = vperm.slane %v2932_v47, 3 }
  0xae   : > { %v522_v4 = vsel %vm521_vm5, %v2706_v43, %v518_v60  ;;  %v531_v5 = vsub.f32 1.0, %v530_v61  ;;  %v512_v43 = vsel %vm509_vm12, %v511_v35, %v507_v30  ;;  %vm551_vm1 = vmor %vm549_vm0, %vm550_vm11  ;;  %1095 = vperm.xlu2 %2660, %v2858_v2   ;;  %v4071_v52 = vperm.slane %v2932_v47, 0 }
  0xaf   : > { %v527_v7 = vsel %vm524_vm6, %v526_v63, %v522_v4  ;;  %v546_v22 = vsub.f32 1.0, %v545_v6  ;;  %v559_v51 = vmul.f32 %v512_v43, %v2896_v20  ;;  %vm593_vm5 = vcmask 130054   ;;  %vm592_vm6 = vmor %vm585_vm3, %vm591_vm4 }
  0xb0   : > { %v532_v19 = vmul.f32 %v2708_v54, %v531_v5  ;;  %v560_v25 = vmul.f32 %v527_v7, %v2898_v21  ;;  %v541_v21 = vor.u32 1.1754944e-38, %v540_v17  ;;  %v4103_v61 = vmov 21   ;;  %vm3001_vm9 = vmor %vm593_vm5, %vm592_vm6 }
  0xb1   : > { %v547_v32 = vmul.f32 %v2710_v62, %v546_v22  ;;  %2663 = vset.pattern.permute.xlu1 %v4103_v61  ;;  %v572_v20 = vmul.f32 %v4071_v52, %v559_v51  ;;  %vm587_vm7 = vcmask 1043456   ;;  %v4090_v63 = vmov 19  }
  0xb2   : > { %v533_v31 = vadd.f32 %v2708_v54, %v532_v19  ;;  %v573_v44 = vmul.f32 %v4072_v55, %v560_v25  ;;  %2661 = vset.pattern.permute.xlu0 %v4090_v63  ;;  %1183 = vperm.xlu1 %2663, %v2858_v2   ;;  %v4079_v1 = vmov 20   ;;  %v4076_v7 = vmov 22   ;;  %v3123_v55 = vpop.permute.xlu0 %600 }
  0xb3   : > { %v548_v41 = vadd.f32 %v2710_v62, %v547_v32  ;;  %1123 = vperm.xlu0 %2661, %v2858_v2   ;;  %v4073_v19 = vmov 23   ;;  %vm633_vm10 = vcmask 1039360   ;;  %vm4174_vm11 = vcmask 1031168  }
  0xb4   : > { %v537_v39 = vsel %vm2969_vm13, %v2708_v54, %v533_v31  ;;  %v580_v59 = vrot.slane %v573_v44, 6  ;;  %v3031_v44 = vpop.permute.xlu2 %675  ;;  %vm4173_vm12 = vcmask 1022976   ;;  %vm4172_vm13 = vcmask 1014784  }
  0xb5   : > { %v542_v45 = vsel %vm539_vm15, %v541_v21, %v537_v39  ;;  %v552_v49 = vsel %vm551_vm1, %v2710_v62, %v548_v41  ;;  %vm4171_vm15 = vcmask 883712   ;;  %vm4170_vm0 = vcmask 875520  }
  0xb6   : > { %v561_v48 = vmul.f32 %v542_v45, %v2905_v28  ;;  %v557_v50 = vsel %vm554_vm2, %v556_v46, %v552_v49  ;;  %2662 = vset.pattern.permute.xlu2 %v4079_v1  ;;  %v584_v4 = vsel %vm583_vm8, %v572_v20, %v580_v59  ;;  %vm4169_vm1 = vcmask 867328  }
  0xb7   : > { %v562_v58 = vmul.f32 %v557_v50, %v2907_v29  ;;  %v4182_v29 = vmov 0  ;;  %1151 = vperm.xlu2 %2662, %v2858_v2   ;;  %vm4152_vm2 = vcmask 859136   ;;  %vm4153_vm4 = vcmask 719872  }
  0xb8   : > { %v574_v54 = vmul.f32 %v4067_v56, %v561_v48  ;;  %v4183_v29 = vsel %vm3001_vm9, 4294967295, %v4182_v29  ;;  %vm4154_vm5 = vcmask 711680   ;;  %vm4158_vm6 = vcmask 703488  }
  0xb9   : > { %v575_v60 = vmul.f32 %v4070_v42, %v562_v58  ;;  %4184 = vst [vmem:[#allocation6_spill] sm:$0xff] %v4183_v29  ;;  %v4117_v29 = vmov 24  }
  0xba   : > { %v581_v28 = vrot.slane %v574_v54, 4  ;;  %2667 = vset.pattern.permute.xlu1 %v4107_v0 }
  0xbb   : > { %v582_v62 = vrot.slane %v575_v60, 2  ;;  %2664 = vset.pattern.permute.xlu0 %v4076_v7 }
  0xbc   : > { %1215 = vperm.xlu0 %2664, %v2858_v2   ;;  %v3037_v50 = vpop.permute.xlu2 %731 }
  0xbd   : > { %v586_v5 = vsel %vm585_vm3, %v581_v28, %v582_v62  ;;  %vm4168_vm3 = vcmask 850944  }
  0xbe   : > { %v588_v6 = vsel %vm587_vm7, %v584_v4, %v586_v5 }
  0xbf   : > { %595 = vst.msk [vmem:[#allocation2] sm:$0xff] %vm3001_vm9, %v588_v6  ;;  %2669 = vset.pattern.permute.xlu2 %v2748_v33 }
  0xc4   : > { %2665 = vset.pattern.permute.xlu0 %v4073_v19  ;;  %v3042_v20 = vpop.permute.xlu2 %787 }
  0xc5   : > { %1247 = vperm.xlu0 %2665, %v2858_v2  }
  0xc6   : > { %v597_v8 = vld [vmem:[#allocation2] sm:$0x3f] }
  0xc7   : > { %604 = vst [vmem:[#allocation1] ss:$4 sm:$0xff] %v597_v8  ;;  %v617_v23 = vld [vmem:[#allocation2] sm:$0x3f] }
  0xc8   : > { %v645_v31 = vld [vmem:[#allocation2] sm:$0x3f] }
  0xc9   : > { %v673_v34 = vld [vmem:[#allocation2] sm:$0x3f] }
  0xca   : > { %v701_v43 = vld [vmem:[#allocation2] sm:$0x3f] }
  0xcb   : > { %v729_v49 = vld [vmem:[#allocation2] sm:$0x3f] }
  0xcc   : > { %v757_v59 = vld [vmem:[#allocation2] sm:$0x3f] }
  0xcd   : > { %v785_v4 = vld [vmem:[#allocation2] sm:$0x3f]  ;;  %2666 = vset.pattern.permute.xlu0 %v4117_v29 }
  0xce   : > { %v3016_v17 = vld.sshfl [vmem:[#allocation1] sm:$0xff pattern:$0x73625140]  ;;  %v3018_v18 = vld.sshfl [vmem:[#allocation1 + $0x8] sm:$0xff pattern:$0x73625140] }
  0xcf   : > { %v3021_v22 = vld.sshfl [vmem:[#allocation1 + $0x10] sm:$0xff pattern:$0x73625140]  ;;  %v3125_v19 = vld [vmem:[#allocation2] sm:$0xff] }
  0xd0   : > { %623 = vst [vmem:[#allocation1] ss:$4 sm:$0xff] %v617_v23  ;;  %v813_v23 = vld [vmem:[#allocation2] sm:$0x3f] }
  0xd1   : > { %4191 = vst [vmem:[#allocation13_spill] sm:$0xff] %v3125_v19 }
  0xd7   : > { %v624_v25 = vld.sshfl [vmem:[#allocation1] sm:$0xff pattern:$0x73625140]  ;;  %v625_v26 = vld.sshfl [vmem:[#allocation1 + $0x8] sm:$0xff pattern:$0x73625140] }
  0xd8   : > { %v626_v30 = vld.sshfl [vmem:[#allocation1 + $0x10] sm:$0xff pattern:$0x73625140]  ;;  %629 = vrot.lane.b32.xlu2 %v625_v26, %s2756_s12  ;;  %627 = vrot.lane.b32.xlu1 %v624_v25, %s2756_s12  ;;  %v3046_v25 = vpop.permute.xlu2 %843 }
  0xd9   : > { %651 = vst [vmem:[#allocation1] ss:$4 sm:$0xff] %v645_v31 }
  0xe0   : > { %v652_v32 = vld.sshfl [vmem:[#allocation1] sm:$0xff pattern:$0x73625140]  ;;  %v653_v33 = vld.sshfl [vmem:[#allocation1 + $0x8] sm:$0xff pattern:$0x73625140]  ;;  %631 = vrot.lane.b32.xlu2 %v626_v30, %s2756_s12 }
  0xe1   : > { %v654_v35 = vld.sshfl [vmem:[#allocation1 + $0x10] sm:$0xff pattern:$0x73625140]  ;;  %655 = vrot.lane.b32.xlu1 %v652_v32, %s2757_s13  ;;  %v841_v32 = vld [vmem:[#allocation2] sm:$0x3f] }
  0xe2   : > { %679 = vst [vmem:[#allocation1] ss:$4 sm:$0xff] %v673_v34 }
  0xe8   : > { %657 = vrot.lane.b32.xlu2 %v653_v33, %s2757_s13  ;;  %v3051_v33 = vpop.permute.xlu2 %899 }
  0xe9   : > { %v680_v21 = vld.sshfl [vmem:[#allocation1] sm:$0xff pattern:$0x73625140]  ;;  %v681_v39 = vld.sshfl [vmem:[#allocation1 + $0x8] sm:$0xff pattern:$0x73625140]  ;;  %659 = vrot.lane.b32.xlu1 %v654_v35, %s2757_s13 }
  0xea   : > { %v682_v41 = vld.sshfl [vmem:[#allocation1 + $0x10] sm:$0xff pattern:$0x73625140]  ;;  %683 = vrot.lane.b32.xlu0 %v680_v21, %s2758_s14 }
  0xeb   : > { %707 = vst [vmem:[#allocation1] ss:$4 sm:$0xff] %v701_v43 }
  0xf0   : > { %687 = vrot.lane.b32.xlu2 %v682_v41, %s2758_s14  ;;  %v3058_v41 = vpop.permute.xlu2 %955 }
  0xf1   : > { %685 = vrot.lane.b32.xlu1 %v681_v39, %s2758_s14  ;;  %v869_v39 = vld [vmem:[#allocation2] sm:$0x3f]  ;;  %4185 = vst [vmem:[#allocation7_spill] sm:$0xff] %v3058_v41 }
  0xf2   : > { %v708_v45 = vld.sshfl [vmem:[#allocation1] sm:$0xff pattern:$0x73625140]  ;;  %v709_v46 = vld.sshfl [vmem:[#allocation1 + $0x8] sm:$0xff pattern:$0x73625140] }
  0xf3   : > { %v710_v48 = vld.sshfl [vmem:[#allocation1 + $0x10] sm:$0xff pattern:$0x73625140] }
  0xf4   : > { %735 = vst [vmem:[#allocation1] ss:$4 sm:$0xff] %v729_v49 }
  0xf8   : > { %713 = vrot.lane.b32.xlu2 %v709_v46, %s2759_s15  ;;  %v3062_v49 = vpop.permute.xlu2 %983 }
  0xf9   : > { %711 = vrot.lane.b32.xlu1 %v708_v45, %s2759_s15  ;;  %4186 = vst [vmem:[#allocation8_spill] sm:$0xff] %v3062_v49 }
  0xfb   : > { %v736_v51 = vld.sshfl [vmem:[#allocation1] sm:$0xff pattern:$0x73625140]  ;;  %v737_v54 = vld.sshfl [vmem:[#allocation1 + $0x8] sm:$0xff pattern:$0x73625140] }
  0xfc   : > { %v738_v58 = vld.sshfl [vmem:[#allocation1 + $0x10] sm:$0xff pattern:$0x73625140]  ;;  %739 = vrot.lane.b32.xlu0 %v736_v51, %s2760_s16 }
  0xfd   : > { %763 = vst [vmem:[#allocation1] ss:$4 sm:$0xff] %v757_v59  ;;  %v925_v59 = vld [vmem:[#allocation2] sm:$0x3f] }
 0x100   : > { %743 = vrot.lane.b32.xlu2 %v738_v58, %s2760_s16 }
 0x101   : > { %715 = vrot.lane.b32.xlu1 %v710_v48, %s2759_s15  ;;  %v897_v48 = vld [vmem:[#allocation2] sm:$0x3f] }
 0x104   : > { %v764_v28 = vld.sshfl [vmem:[#allocation1] sm:$0xff pattern:$0x73625140]  ;;  %v765_v60 = vld.sshfl [vmem:[#allocation1 + $0x8] sm:$0xff pattern:$0x73625140] }
 0x105   : > { %v766_v62 = vld.sshfl [vmem:[#allocation1 + $0x10] sm:$0xff pattern:$0x73625140] }
 0x106   : > { %791 = vst [vmem:[#allocation1] ss:$4 sm:$0xff] %v785_v4 }
 0x108   : > { %769 = vrot.lane.b32.xlu2 %v765_v60, %s2761_s19 }
 0x109   : > { %741 = vrot.lane.b32.xlu1 %v737_v54, %s2760_s16 }
 0x10d   : > { %v792_v5 = vld.sshfl [vmem:[#allocation1] sm:$0xff pattern:$0x73625140]  ;;  %v793_v6 = vld.sshfl [vmem:[#allocation1 + $0x8] sm:$0xff pattern:$0x73625140] }
 0x10e   : > { %v794_v8 = vld.sshfl [vmem:[#allocation1 + $0x10] sm:$0xff pattern:$0x73625140]  ;;  %795 = vrot.lane.b32.xlu0 %v792_v5, %s2762_s20  ;;  %v953_v5 = vld [vmem:[#allocation2] sm:$0x3f] }
 0x10f   : > { %819 = vst [vmem:[#allocation1] ss:$4 sm:$0xff] %v813_v23 }
 0x110   : > { %799 = vrot.lane.b32.xlu2 %v794_v8, %s2762_s20 }
 0x111   : > { %767 = vrot.lane.b32.xlu1 %v764_v28, %s2761_s19  ;;  %v3067_v28 = vpop.permute.xlu2 %1039  ;;  %v3069_v60 = vpop.permute.xlu1 %619 }
 0x112   : > { %4187 = vst [vmem:[#allocation9_spill] sm:$0xff] %v3067_v28 }
 0x116   : > { %v820_v26 = vld.sshfl [vmem:[#allocation1] sm:$0xff pattern:$0x73625140]  ;;  %v821_v30 = vld.sshfl [vmem:[#allocation1 + $0x8] sm:$0xff pattern:$0x73625140] }
 0x117   : > { %v822_v31 = vld.sshfl [vmem:[#allocation1 + $0x10] sm:$0xff pattern:$0x73625140] }
 0x118   : > { %847 = vst [vmem:[#allocation1] ss:$4 sm:$0xff] %v841_v32  ;;  %825 = vrot.lane.b32.xlu2 %v821_v30, %s2763_s21 }
 0x119   : > { %771 = vrot.lane.b32.xlu1 %v766_v62, %s2761_s19  ;;  %v3073_v8 = vpop.permute.xlu2 %1095 }
 0x11a   : > { %4188 = vst [vmem:[#allocation10_spill] sm:$0xff] %v3073_v8 }
 0x11f   : > { %v848_v35 = vld.sshfl [vmem:[#allocation1] sm:$0xff pattern:$0x73625140]  ;;  %v849_v34 = vld.sshfl [vmem:[#allocation1 + $0x8] sm:$0xff pattern:$0x73625140] }
 0x120   : > { %v850_v21 = vld.sshfl [vmem:[#allocation1 + $0x10] sm:$0xff pattern:$0x73625140]  ;;  %851 = vrot.lane.b32.xlu0 %v848_v35, %s2764_s22 }
 0x121   : > { %875 = vst [vmem:[#allocation1] ss:$4 sm:$0xff] %v869_v39  ;;  %797 = vrot.lane.b32.xlu1 %v793_v6, %s2762_s20  ;;  %855 = vrot.lane.b32.xlu2 %v850_v21, %s2764_s22  ;;  %v3081_v35 = vpop.permute.xlu2 %1151 }
 0x122   : > { %4190 = vst [vmem:[#allocation12_spill] sm:$0xff] %v3081_v35 }
 0x124   : > { %v3075_v23 = vpop.permute.xlu1 %1183 }
 0x125   : > { %4189 = vst [vmem:[#allocation11_spill] sm:$0xff] %v3075_v23 }
 0x128   : > { %v876_v43 = vld.sshfl [vmem:[#allocation1] sm:$0xff pattern:$0x73625140]  ;;  %v877_v45 = vld.sshfl [vmem:[#allocation1 + $0x8] sm:$0xff pattern:$0x73625140] }
 0x129   : > { %v878_v46 = vld.sshfl [vmem:[#allocation1 + $0x10] sm:$0xff pattern:$0x73625140]  ;;  %823 = vrot.lane.b32.xlu1 %v820_v26, %s2763_s21  ;;  %881 = vrot.lane.b32.xlu2 %v877_v45, %s4063_s24  ;;  %v1009_v45 = vld [vmem:[#allocation2] sm:$0x3f] }
 0x12a   : > { %903 = vst [vmem:[#allocation1] ss:$4 sm:$0xff] %v897_v48 }
 0x131   : > { %v904_v51 = vld.sshfl [vmem:[#allocation1] sm:$0xff pattern:$0x73625140]  ;;  %v905_v54 = vld.sshfl [vmem:[#allocation1 + $0x8] sm:$0xff pattern:$0x73625140]  ;;  %827 = vrot.lane.b32.xlu1 %v822_v31, %s2763_s21 }
 0x132   : > { %v906_v58 = vld.sshfl [vmem:[#allocation1 + $0x10] sm:$0xff pattern:$0x73625140]  ;;  %907 = vrot.lane.b32.xlu0 %v904_v51, %s4065_s25  ;;  %v981_v31 = vld [vmem:[#allocation2] sm:$0x3f]  ;;  %v3089_v51 = vpop.permute.xlu2 %629 }
 0x133   : > { %931 = vst [vmem:[#allocation1] ss:$4 sm:$0xff] %v925_v59  ;;  %911 = vrot.lane.b32.xlu2 %v906_v58, %s4065_s25  ;;  %v1037_v59 = vld [vmem:[#allocation2] sm:$0x3f] }
 0x139   : > { %853 = vrot.lane.b32.xlu1 %v849_v34, %s2764_s22 }
 0x13a   : > { %v932_v62 = vld.sshfl [vmem:[#allocation1] sm:$0xff pattern:$0x73625140]  ;;  %v934_v4 = vld.sshfl [vmem:[#allocation1 + $0x10] sm:$0xff pattern:$0x73625140] }
 0x13b   : > { %v933_v6 = vld.sshfl [vmem:[#allocation1 + $0x8] sm:$0xff pattern:$0x73625140] }
 0x13c   : > { %937 = vrot.lane.b32.xlu2 %v933_v6, %s4068_s27  ;;  %959 = vst [vmem:[#allocation1] ss:$4 sm:$0xff] %v953_v5 }
 0x141   : > { %879 = vrot.lane.b32.xlu1 %v876_v43, %s4063_s24 }
 0x143   : > { %v960_v26 = vld.sshfl [vmem:[#allocation1] sm:$0xff pattern:$0x73625140]  ;;  %v961_v30 = vld.sshfl [vmem:[#allocation1 + $0x8] sm:$0xff pattern:$0x73625140] }
 0x144   : > { %963 = vrot.lane.b32.xlu0 %v960_v26, %s4074_s28  ;;  %v962_v32 = vld.sshfl [vmem:[#allocation1 + $0x10] sm:$0xff pattern:$0x73625140]  ;;  %v3096_v26 = vpop.permute.xlu2 %631 }
 0x145   : > { %967 = vrot.lane.b32.xlu2 %v962_v32, %s4074_s28  ;;  %987 = vst [vmem:[#allocation1] ss:$4 sm:$0xff] %v981_v31  ;;  %v1065_v32 = vld [vmem:[#allocation2] sm:$0x3f] }
 0x149   : > { %883 = vrot.lane.b32.xlu1 %v878_v46, %s4063_s24  ;;  %s4092_s24 = smov 67  }
 0x14a   : > { %v3083_v34 = vpop.permute.xlu1 %627 }
 0x14c   : > { %v989_v21 = vld.sshfl [vmem:[#allocation1 + $0x8] sm:$0xff pattern:$0x73625140]  ;;  %v990_v39 = vld.sshfl [vmem:[#allocation1 + $0x10] sm:$0xff pattern:$0x73625140] }
 0x14d   : > { %993 = vrot.lane.b32.xlu0 %v989_v21, %s4077_s29  ;;  %v988_v43 = vld.sshfl [vmem:[#allocation1] sm:$0xff pattern:$0x73625140] }
 0x14e   : > { %1015 = vst [vmem:[#allocation1] ss:$4 sm:$0xff] %v1009_v45 }
 0x151   : > { %909 = vrot.lane.b32.xlu1 %v905_v54, %s4065_s25  ;;  %s2772_s25 = smov 66  }
 0x153   : > { %v3087_v48 = vpop.permute.xlu1 %655 }
 0x155   : > { %991 = vrot.lane.b32.xlu0 %v988_v43, %s4077_s29  ;;  %v1018_v46 = vld.sshfl [vmem:[#allocation1 + $0x10] sm:$0xff pattern:$0x73625140]  ;;  %v1016_v58 = vld.sshfl [vmem:[#allocation1] sm:$0xff pattern:$0x73625140] }
 0x156   : > { %1023 = vrot.lane.b32.xlu2 %v1018_v46, %s4085_s30  ;;  %v1017_v5 = vld.sshfl [vmem:[#allocation1 + $0x8] sm:$0xff pattern:$0x73625140] }
 0x157   : > { %1043 = vst [vmem:[#allocation1] ss:$4 sm:$0xff] %v1037_v59  ;;  %v1093_v46 = vld [vmem:[#allocation2] sm:$0x3f]  ;;  %v3105_v59 = vpop.permute.xlu2 %657 }
 0x159   : > { %935 = vrot.lane.b32.xlu1 %v932_v62, %s4068_s27 }
 0x15b   : > { %v3094_v6 = vpop.permute.xlu1 %659 }
 0x15e   : > { %v1045_v54 = vld.sshfl [vmem:[#allocation1 + $0x8] sm:$0xff pattern:$0x73625140]  ;;  %v1046_v31 = vld.sshfl [vmem:[#allocation1 + $0x10] sm:$0xff pattern:$0x73625140] }
 0x15f   : > { %1049 = vrot.lane.b32.xlu2 %v1045_v54, %s4092_s24  ;;  %v1044_v21 = vld.sshfl [vmem:[#allocation1] sm:$0xff pattern:$0x73625140]  ;;  %v3115_v52 = vpop.permute.xlu2 %687 }
 0x160   : > { %1047 = vrot.lane.b32.xlu0 %v1044_v21, %s4092_s24  ;;  %1071 = vst [vmem:[#allocation1] ss:$4 sm:$0xff] %v1065_v32 }
 0x161   : > { %939 = vrot.lane.b32.xlu1 %v934_v4, %s4068_s27  ;;  %v1121_v4 = vld [vmem:[#allocation2] sm:$0x3f]  ;;  %s4104_s27 = smov 65  }
 0x163   : > { %v3101_v45 = vpop.permute.xlu1 %685 }
 0x167   : > { %v1074_v43 = vld.sshfl [vmem:[#allocation1 + $0x10] sm:$0xff pattern:$0x73625140]  ;;  %v3103_v62 = vld.sshfl [vmem:[#allocation1] sm:$0xff pattern:$0x73625140] }
 0x168   : > { %1079 = vrot.lane.b32.xlu2 %v1074_v43, %s2772_s25  ;;  %v1073_v56 = vld.sshfl [vmem:[#allocation1 + $0x8] sm:$0xff pattern:$0x73625140] }
 0x169   : > { %1099 = vst [vmem:[#allocation1] ss:$4 sm:$0xff] %v1093_v46  ;;  %965 = vrot.lane.b32.xlu1 %v961_v30, %s4074_s28  ;;  %s4129_s28 = smov 64  }
 0x16b   : > { %v3109_v54 = vpop.permute.xlu1 %711 }
 0x170   : > { %v1101_v32 = vld.sshfl [vmem:[#allocation1 + $0x8] sm:$0xff pattern:$0x73625140]  ;;  %v3111_v21 = vld.sshfl [vmem:[#allocation1 + $0x10] sm:$0xff pattern:$0x73625140] }
 0x171   : > { %1105 = vrot.lane.b32.xlu2 %v1101_v32, %s4104_s27  ;;  %v1100_v42 = vld.sshfl [vmem:[#allocation1] sm:$0xff pattern:$0x73625140]  ;;  %995 = vrot.lane.b32.xlu1 %v990_v39, %s4077_s29  ;;  %s4127_s29 = smov 48  }
 0x172   : > { %1103 = vrot.lane.b32.xlu0 %v1100_v42, %s4104_s27  ;;  %1127 = vst [vmem:[#allocation1] ss:$4 sm:$0xff] %v1121_v4  ;;  %v3131_v42 = vpop.permute.xlu2 %713  ;;  %v3134_v4 = vpop.permute.xlu0 %647 }
 0x173   : > { %v3118_v43 = vpop.permute.xlu1 %715 }
 0x179   : > { %v1130_v30 = vld.sshfl [vmem:[#allocation1 + $0x10] sm:$0xff pattern:$0x73625140]  ;;  %v3120_v46 = vld.sshfl [vmem:[#allocation1] sm:$0xff pattern:$0x73625140]  ;;  %1021 = vrot.lane.b32.xlu1 %v1017_v5, %s4085_s30 }
 0x17a   : > { %1135 = vrot.lane.b32.xlu2 %v1130_v30, %s4129_s28  ;;  %v1129_v39 = vld.sshfl [vmem:[#allocation1 + $0x8] sm:$0xff pattern:$0x73625140]  ;;  %v3141_v30 = vpop.permute.xlu2 %743  ;;  %v3146_v24 = vpop.permute.xlu0 %703 }
 0x17b   : > { %1155 = vst [vmem:[#allocation1] ss:$4 sm:$0xff] %v3125_v19  ;;  %v3129_v32 = vpop.permute.xlu1 %741 }
 0x181   : > { %1019 = vrot.lane.b32.xlu1 %v1016_v58, %s4085_s30  ;;  %s4099_s30 = smov 47  }
 0x182   : > { %v1159_v7 = vld.sshfl [vmem:[#allocation1 + $0x18] sm:$0xff pattern:$0x73625140]  ;;  %v1156_v5 = vld.sshfl [vmem:[#allocation1] sm:$0xff pattern:$0x73625140]  ;;  %v3158_v37 = vpop.permute.xlu0 %759 }
 0x183   : > { %1166 = vrot.lane.b32.xlu0 %v1159_v7, %s4127_s29  ;;  %v1158_v1 = vld.sshfl [vmem:[#allocation1 + $0x10] sm:$0xff pattern:$0x73625140]  ;;  %v1157_v40 = vld.sshfl [vmem:[#allocation1 + $0x8] sm:$0xff pattern:$0x73625140]  ;;  %v3137_v57 = vpop.permute.xlu1 %767 }
 0x184   : > { %1162 = vrot.lane.b32.xlu2 %v1157_v40, %s4127_s29  ;;  %1187 = vst [vmem:[#allocation1] ss:$4 sm:$0xff] %v3125_v19  ;;  %v3151_v40 = vpop.permute.xlu2 %769 }
 0x189   : > { %1051 = vrot.lane.b32.xlu1 %v1046_v31, %s4092_s24  ;;  %s4123_s24 = smov 46  }
 0x18a   : > { %v3169_v16 = vpop.permute.xlu0 %815 }
 0x18b   : > { %v1190_v58 = vld.sshfl [vmem:[#allocation1 + $0x10] sm:$0xff pattern:$0x73625140]  ;;  %v1189_v38 = vld.sshfl [vmem:[#allocation1 + $0x8] sm:$0xff pattern:$0x73625140]  ;;  %v3144_v36 = vpop.permute.xlu1 %771 }
 0x18c   : > { %1196 = vrot.lane.b32.xlu0 %v1190_v58, %s4099_s30  ;;  %1194 = vrot.lane.b32.xlu2 %v1189_v38, %s4099_s30  ;;  %v1191_v7 = vld.sshfl [vmem:[#allocation1 + $0x18] sm:$0xff pattern:$0x73625140]  ;;  %v1188_v15 = vld.sshfl [vmem:[#allocation1] sm:$0xff pattern:$0x73625140]  ;;  %v3163_v38 = vpop.permute.xlu2 %799 }
 0x18d   : > { %1219 = vst [vmem:[#allocation1] ss:$4 sm:$0xff] %v3125_v19 }
 0x191   : > { %1077 = vrot.lane.b32.xlu1 %v1073_v56, %s2772_s25 }
 0x193   : > { %v3154_v31 = vpop.permute.xlu1 %797 }
 0x194   : > { %1198 = vrot.lane.b32.xlu2 %v1191_v7, %s4099_s30  ;;  %1192 = vrot.lane.b32.xlu0 %v1188_v15, %s4099_s30  ;;  %v1222_v13 = vld.sshfl [vmem:[#allocation1 + $0x10] sm:$0xff pattern:$0x73625140]  ;;  %v1223_v12 = vld.sshfl [vmem:[#allocation1 + $0x18] sm:$0xff pattern:$0x73625140] }
 0x195   : > { %v1221_v63 = vld.sshfl [vmem:[#allocation1 + $0x8] sm:$0xff pattern:$0x73625140]  ;;  %v1220_v58 = vld.sshfl [vmem:[#allocation1] sm:$0xff pattern:$0x73625140] }
 0x196   : > { %1251 = vst [vmem:[#allocation1] ss:$4 sm:$0xff] %v3125_v19  ;;  %s4121_s30 = smov 45  }
 0x199   : > { %1075 = vrot.lane.b32.xlu1 %v3103_v62, %s2772_s25  ;;  %v3175_v62 = vpop.permute.xlu2 %825 }
 0x19b   : > { %v3165_v56 = vpop.permute.xlu1 %823 }
 0x19c   : > { %1228 = vrot.lane.b32.xlu2 %v1222_v13, %s4123_s24  ;;  %v3179_v13 = vpop.permute.xlu0 %871  ;;  %1279 = vperm.xlu0 %2666, %v2858_v2  }
 0x19d   : > { %v1254_v7 = vld.sshfl [vmem:[#allocation1 + $0x10] sm:$0xff pattern:$0x73625140]  ;;  %v1255_v15 = vld.sshfl [vmem:[#allocation1 + $0x18] sm:$0xff pattern:$0x73625140] }
 0x19e   : > { %v1253_v53 = vld.sshfl [vmem:[#allocation1 + $0x8] sm:$0xff pattern:$0x73625140]  ;;  %v1252_v27 = vld.sshfl [vmem:[#allocation1] sm:$0xff pattern:$0x73625140] }
 0x19f   : > { %1283 = vst [vmem:[#allocation1] ss:$4 sm:$0xff] %v3125_v19 }
 0x1a1   : > { %1107 = vrot.lane.b32.xlu1 %v3111_v21, %s4104_s27  ;;  %v3184_v9 = vpop.permute.xlu2 %855  ;;  %s2779_s27 = smov 44  }
 0x1a3   : > { %v3173_v14 = vpop.permute.xlu1 %827 }
 0x1a4   : > { %1224 = vrot.lane.b32.xlu2 %v1220_v58, %s4123_s24  ;;  %v3190_v3 = vpop.permute.xlu0 %927 }
 0x1a6   : > { %v1284_v10 = vld.sshfl [vmem:[#allocation1] sm:$0xff pattern:$0x73625140]  ;;  %v1285_v8 = vld.sshfl [vmem:[#allocation1 + $0x8] sm:$0xff pattern:$0x73625140] }
 0x1a9   : > { %1133 = vrot.lane.b32.xlu1 %v1129_v39, %s4129_s28  ;;  %v3193_v58 = vpop.permute.xlu2 %881  ;;  %v1286_v39 = vld.sshfl [vmem:[#allocation1 + $0x10] sm:$0xff pattern:$0x73625140] }
 0x1ab   : > { %v3181_v11 = vpop.permute.xlu1 %853 }
 0x1ac   : > { %1260 = vrot.lane.b32.xlu2 %v1254_v7, %s4121_s30  ;;  %v3199_v7 = vpop.permute.xlu0 %1011 }
 0x1ad   : > { %4192 = vst [vmem:[#allocation14_spill] sm:$0xff] %v3199_v7 }
 0x1b1   : > { %1131 = vrot.lane.b32.xlu1 %v3120_v46, %s4129_s28  ;;  %v3202_v46 = vpop.permute.xlu2 %911  ;;  %s4305_s28 = smov 46  }
 0x1b3   : > { %v3188_v21 = vpop.permute.xlu1 %879 }
 0x1b4   : > { %1256 = vrot.lane.b32.xlu2 %v1252_v27, %s4121_s30  ;;  %v3207_v27 = vpop.permute.xlu0 %1067 }
 0x1b5   : > { %4193 = vst [vmem:[#allocation15_spill] sm:$0xff] %v3207_v27  ;;  %v1287_v27 = vld.sshfl [vmem:[#allocation1 + $0x18] sm:$0xff pattern:$0x73625140] }
 0x1b9   : > { %1164 = vrot.lane.b32.xlu1 %v1158_v1, %s4127_s29  ;;  %v3212_v47 = vpop.permute.xlu2 %937 }
 0x1bb   : > { %v3196_v61 = vpop.permute.xlu1 %883 }
 0x1bc   : > { %1292 = vrot.lane.b32.xlu2 %v1286_v39, %s2779_s27  ;;  %v3215_v39 = vpop.permute.xlu0 %1123 }
 0x1bd   : > { %4194 = vst [vmem:[#allocation16_spill] sm:$0xff] %v3215_v39 }
 0x1c1   : > { %1160 = vrot.lane.b32.xlu1 %v1156_v5, %s4127_s29  ;;  %v3219_v19 = vpop.permute.xlu2 %967 }
 0x1c2   : > { %4195 = vst [vmem:[#allocation17_spill] sm:$0xff] %v3219_v19 }
 0x1c3   : > { %v3204_v0 = vpop.permute.xlu1 %909 }
 0x1c4   : > { %1288 = vrot.lane.b32.xlu2 %v1284_v10, %s2779_s27 }
 0x1c9   : > { %1226 = vrot.lane.b32.xlu1 %v1221_v63, %s4123_s24  ;;  %v3226_v63 = vpop.permute.xlu0 %1215  ;;  %v3228_v23 = vpop.permute.xlu2 %1023 }
 0x1ca   : > { %4196 = vst [vmem:[#allocation18_spill] sm:$0xff] %v3226_v63 }
 0x1cb   : > { %v3210_v1 = vpop.permute.xlu1 %935  ;;  %4197 = vst [vmem:[#allocation19_spill] sm:$0xff] %v3228_v23 }
 0x1d1   : > { %1230 = vrot.lane.b32.xlu1 %v1223_v12, %s4123_s24  ;;  %v4198_v12 = vmov 0   ;;  %v3234_v39 = vpop.permute.xlu0 %1247  ;;  %v3237_v2 = vpop.permute.xlu2 %1049  ;;  %s4175_s24 = smov 42  }
 0x1d2   : > { %2668 = vset.pattern.permute.xlu0 %v4198_v12  ;;  %4200 = vst [vmem:[#allocation21_spill] sm:$0xff] %v3234_v39 }
 0x1d3   : > { %v3217_v5 = vpop.permute.xlu1 %939  ;;  %4201 = vst [vmem:[#allocation22_spill] sm:$0xff] %v3237_v2  ;;  %v3256_v2 = vld [vmem:[%s4060_s9] sm:$0xf] }
 0x1d4   : > { %4207 = vst [vmem:[#allocation28_spill] sm:$0xff] %v3256_v2 }
 0x1d9   : > { %1258 = vrot.lane.b32.xlu1 %v1253_v53, %s4121_s30  ;;  %v684_v29 = vpop.permute.xlu0 %683  ;;  %v3244_v28 = vpop.permute.xlu2 %1079 }
 0x1da   : > { %4204 = vst [vmem:[#allocation25_spill] sm:$0xff] %v3244_v28 }
 0x1db   : > { %v3224_v10 = vpop.permute.xlu1 %965 }
 0x1e1   : > { %1262 = vrot.lane.b32.xlu1 %v1255_v15, %s4121_s30  ;;  %v1309_v15 = vld [vmem:[%s4056_s5] sm:$0x3]  ;;  %v740_v39 = vpop.permute.xlu0 %739 }
 0x1e3   : > { %v3232_v35 = vpop.permute.xlu1 %995 }
 0x1e4   : > { %4199 = vst [vmem:[#allocation20_spill] sm:$0xff] %v3232_v35  ;;  %v4213_v35 = vmov 21  }
 0x1e9   : > { %1290 = vrot.lane.b32.xlu1 %v1285_v8, %s2779_s27  ;;  %v3251_v8 = vpop.permute.xlu2 %1105 }
 0x1ea   : > { %4206 = vst [vmem:[#allocation27_spill] sm:$0xff] %v3251_v8 }
 0x1eb   : > { %v3239_v53 = vpop.permute.xlu1 %1021 }
 0x1ec   : > { %4202 = vst [vmem:[#allocation23_spill] sm:$0xff] %v3239_v53 }
 0x1f1   : > { %1294 = vrot.lane.b32.xlu1 %v1287_v27, %s2779_s27  ;;  %v3258_v27 = vpop.permute.xlu0 %795 }
 0x1f3   : > { %v3242_v63 = vpop.permute.xlu1 %1019 }
 0x1f4   : > { %4203 = vst [vmem:[#allocation24_spill] sm:$0xff] %v3242_v63  ;;  %v3265_v63 = vpop.permute.xlu2 %1135 }
 0x1f5   : > { %4209 = vst [vmem:[#allocation30_spill] sm:$0xff] %v3265_v63 }
 0x1f9   : > { %1312 = vperm.xlu1 %2667, %v1309_v15   ;;  %v3263_v23 = vpop.permute.xlu0 %851  ;;  %v4210_v15 = vmov 2  }
 0x1fb   : > { %v3249_v7 = vpop.permute.xlu1 %1051 }
 0x1fc   : > { %4205 = vst [vmem:[#allocation26_spill] sm:$0xff] %v3249_v7  ;;  %v3273_v53 = vpop.permute.xlu2 %1162 }
 0x1fd   : > { %4212 = vst [vmem:[#allocation32_spill] sm:$0xff] %v3273_v53 }
 0x201   : > { %1629 = vperm.xlu1 %2667, %v3256_v2   ;;  %v3271_v7 = vpop.permute.xlu0 %907 }
 0x203   : > { %v3261_v28 = vpop.permute.xlu1 %1077 }
 0x204   : > { %4208 = vst [vmem:[#allocation29_spill] sm:$0xff] %v3261_v28 }
 0x209   : > { %2670 = vset.pattern.permute.xlu1 %v4210_v15  ;;  %v3279_v28 = vpop.permute.xlu0 %963  ;;  %v3284_v15 = vpop.permute.xlu2 %1194 }
 0x20a   : > { %1683 = vperm.xlu1 %2670, %v3256_v2   ;;  %4215 = vst [vmem:[#allocation34_spill] sm:$0xff] %v3279_v28 }
 0x20b   : > { %v3269_v8 = vpop.permute.xlu1 %1075  ;;  %4217 = vst [vmem:[#allocation36_spill] sm:$0xff] %v3284_v15  ;;  %v697_v15 = vmul.f32 %v3115_v52, %v3031_v44 }
 0x20c   : > { %4211 = vst [vmem:[#allocation31_spill] sm:$0xff] %v3269_v8  ;;  %v641_v8 = vmul.f32 %v3096_v26, %v3069_v60 }
 0x211   : > { %v3286_v63 = vpop.permute.xlu0 %993 }
 0x212   : > { %2689 = vset.pattern.permute.xlu1 %v4213_v35  ;;  %4218 = vst [vmem:[#allocation37_spill] sm:$0xff] %v3286_v63  ;;  %v613_v35 = vmul.f32 %v3021_v22, %v3123_v55 }
 0x213   : > { %v3276_v49 = vpop.permute.xlu1 %1107  ;;  %2276 = vperm.xlu1 %2689, %v3256_v2   ;;  %v669_v2 = vmul.f32 %v3094_v6, %v3134_v4 }
 0x214   : > { %4214 = vst [vmem:[#allocation33_spill] sm:$0xff] %v3276_v49  ;;  %v3296_v49 = vpop.permute.xlu2 %1198 }
 0x215   : > { %4220 = vst [vmem:[#allocation39_spill] sm:$0xff] %v3296_v49 }
 0x219   : > { %v3307_v63 = vpop.permute.xlu0 %991 }
 0x21a   : > { %4222 = vst [vmem:[#allocation41_spill] sm:$0xff] %v3307_v63 }
 0x21b   : > { %v3281_v19 = vpop.permute.xlu1 %1133  ;;  %2693 = vset.pattern.permute.xlu1 %v4198_v12  ;;  %v634_v12 = vsel %vm633_vm10, %v3083_v34, %v3089_v51 }
 0x21c   : > { %4216 = vst [vmem:[#allocation35_spill] sm:$0xff] %v3281_v19  ;;  %v644_v19 = vadd.f32 %v641_v8, %v613_v35  ;;  %v639_v8 = vmul.f32 %v634_v12, %v3069_v60  ;;  %v690_v35 = vsel %vm4173_vm12, %v684_v29, %v3101_v45  ;;  %v718_v29 = vsel %vm4172_vm13, %v3109_v54, %v3131_v42 }
 0x21d   : > { %v612_v12 = vmul.f32 %v3018_v18, %v3123_v55 }
 0x21e   : > { %v672_v41 = vadd.f32 %v669_v2, %v644_v19  ;;  %v635_v19 = vsel %vm633_vm10, %v3089_v51, %v3096_v26  ;;  %v662_v2 = vsel %vm4174_vm11, %v3087_v48, %v3105_v59  ;;  %v3322_v51 = vpop.permute.xlu2 %1228  ;;  %v753_v48 = vmul.f32 %v3141_v30, %v3037_v50 }
 0x21f   : > { %v640_v63 = vmul.f32 %v635_v19, %v3069_v60  ;;  %v667_v28 = vmul.f32 %v662_v2, %v3134_v4  ;;  %v695_v26 = vmul.f32 %v690_v35, %v3031_v44  ;;  %v747_v35 = vsel %vm4171_vm15, %v3129_v32, %v3141_v30 }
 0x220   : > { %v700_v34 = vadd.f32 %v697_v15, %v672_v41  ;;  %v663_v41 = vsel %vm4174_vm11, %v3105_v59, %v3094_v6  ;;  %v691_v6 = vsel %vm4173_vm12, %v3101_v45, %v3115_v52  ;;  %v746_v59 = vsel %vm4171_vm15, %v740_v39, %v3129_v32 }
 0x221   : > { %v668_v19 = vmul.f32 %v663_v41, %v3134_v4  ;;  %v643_v2 = vadd.f32 %v640_v63, %v612_v12  ;;  %v696_v52 = vmul.f32 %v691_v6, %v3031_v44  ;;  %v751_v39 = vmul.f32 %v746_v59, %v3037_v50 }
 0x222   : > { %v719_v4 = vsel %vm4172_vm13, %v3131_v42, %v3118_v43  ;;  %v837_v44 = vmul.f32 %v3173_v14, %v3169_v16  ;;  %v830_v41 = vsel %vm4152_vm2, %v3165_v56, %v3175_v62  ;;  %v752_v30 = vmul.f32 %v747_v35, %v3037_v50 }
 0x223   : > { %v3290_v53 = vpop.permute.xlu1 %1131  ;;  %v671_v63 = vadd.f32 %v668_v19, %v643_v2  ;;  %v724_v42 = vmul.f32 %v719_v4, %v3146_v24  ;;  %v835_v12 = vmul.f32 %v830_v41, %v3169_v16  ;;  %v865_v6 = vmul.f32 %v3184_v9, %v3046_v25 }
 0x224   : > { %4219 = vst [vmem:[#allocation38_spill] sm:$0xff] %v3290_v53  ;;  %v725_v53 = vmul.f32 %v3118_v43, %v3146_v24  ;;  %v831_v19 = vsel %vm4152_vm2, %v3175_v62, %v3173_v14  ;;  %vm4155_vm2 = vcmask 695296   ;;  %v921_v62 = vmul.f32 %v3202_v46, %v3051_v33 }
 0x226   : > { %v728_v49 = vadd.f32 %v725_v53, %v700_v34 }
 0x228   : > { %v756_v53 = vadd.f32 %v753_v48, %v728_v49  ;;  %v3351_v49 = vpop.permute.xlu0 %1047 }
 0x22b   : > { %v3305_v22 = vpop.permute.xlu1 %1164 }
 0x22c   : > { %4221 = vst [vmem:[#allocation40_spill] sm:$0xff] %v3305_v22  ;;  %v611_v22 = vmul.f32 %v3016_v17, %v3123_v55  ;;  %v781_v17 = vmul.f32 %v3144_v36, %v3158_v37  ;;  %v774_v55 = vsel %vm4170_vm0, %v3137_v57, %v3151_v40  ;;  %v802_v57 = vsel %vm4169_vm1, %v3258_v27, %v3154_v31 }
 0x22d   : > { %v807_v48 = vmul.f32 %v802_v57, %v3042_v20 }
 0x22e   : > { %v642_v60 = vadd.f32 %v639_v8, %v611_v22  ;;  %v723_v22 = vmul.f32 %v718_v29, %v3146_v24  ;;  %v784_v18 = vadd.f32 %v781_v17, %v756_v53  ;;  %v779_v8 = vmul.f32 %v774_v55, %v3158_v37  ;;  %v3372_v29 = vpop.permute.xlu2 %1224 }
 0x22f   : > { %v699_v17 = vadd.f32 %v696_v52, %v671_v63  ;;  %v858_v24 = vsel %vm4168_vm3, %v3263_v23, %v3181_v11 }
 0x230   : > { %v670_v54 = vadd.f32 %v667_v28, %v642_v60  ;;  %v809_v28 = vmul.f32 %v3163_v38, %v3042_v20  ;;  %v775_v60 = vsel %vm4170_vm0, %v3151_v40, %v3144_v36  ;;  %v803_v36 = vsel %vm4169_vm1, %v3154_v31, %v3163_v38  ;;  %v3395_v23 = vpop.permute.xlu0 %1103 }
 0x231   : > { %v893_v40 = vmul.f32 %v3196_v61, %v3179_v13  ;;  %v727_v59 = vadd.f32 %v724_v42, %v699_v17  ;;  %v780_v50 = vmul.f32 %v775_v60, %v3158_v37  ;;  %v863_v31 = vmul.f32 %v858_v24, %v3046_v25  ;;  %v4225_v17 = vld [vmem:[#allocation17_spill] sm:$0xff] }
 0x232   : > { %v698_v45 = vadd.f32 %v695_v26, %v670_v54  ;;  %v812_v43 = vadd.f32 %v809_v28, %v784_v18  ;;  %v886_v54 = vsel %vm4153_vm4, %v3188_v21, %v3193_v58  ;;  %v808_v2 = vmul.f32 %v803_v36, %v3042_v20 }
 0x233   : > { %v3342_v15 = vpop.permute.xlu1 %1160  ;;  %v914_v37 = vsel %vm4154_vm5, %v3271_v7, %v3204_v0  ;;  %v859_v21 = vsel %vm4168_vm3, %v3181_v11, %v3184_v9  ;;  %v891_v18 = vmul.f32 %v886_v54, %v3179_v13  ;;  %v942_v20 = vsel %vm4158_vm6, %v3210_v1, %v3212_v47 }
 0x234   : > { %v726_v34 = vadd.f32 %v723_v22, %v698_v45  ;;  %v840_v26 = vadd.f32 %v837_v44, %v812_v43  ;;  %v755_v22 = vadd.f32 %v752_v30, %v727_v59  ;;  %v836_v45 = vmul.f32 %v831_v19, %v3169_v16  ;;  %v4223_v16 = vld [vmem:[#allocation34_spill] sm:$0xff]  ;;  %v4226_v30 = vld [vmem:[#allocation8_spill] sm:$0xff] }
 0x235   : > { %v887_v7 = vsel %vm4153_vm4, %v3193_v58, %v3196_v61  ;;  %v919_v9 = vmul.f32 %v914_v37, %v3051_v33  ;;  %v949_v11 = vmul.f32 %v3217_v5, %v3190_v3  ;;  %v864_v57 = vmul.f32 %v859_v21, %v3046_v25  ;;  %v4231_v59 = vld [vmem:[#allocation24_spill] sm:$0xff] }
 0x236   : > { %v754_v27 = vadd.f32 %v751_v39, %v726_v34  ;;  %v868_v38 = vadd.f32 %v865_v6, %v840_v26  ;;  %v783_v14 = vadd.f32 %v780_v50, %v755_v22  ;;  %v970_v44 = vsel %vm4155_vm2, %v4223_v16, %v3224_v10  ;;  %v3427_v1 = vpop.permute.xlu2 %1260 }
 0x237   : > { %v915_v61 = vsel %vm4154_vm5, %v3204_v0, %v3202_v46  ;;  %v947_v58 = vmul.f32 %v942_v20, %v3190_v3  ;;  %v892_v35 = vmul.f32 %v887_v7, %v3179_v13  ;;  %vm4156_vm4 = vcmask 687104   ;;  %v4235_v20 = vld [vmem:[#allocation22_spill] sm:$0xff]  ;;  %v4236_v7 = vld [vmem:[#allocation9_spill] sm:$0xff] }
 0x238   : > { %v782_v56 = vadd.f32 %v779_v8, %v754_v27  ;;  %v896_v52 = vadd.f32 %v893_v40, %v868_v38  ;;  %v811_v4 = vadd.f32 %v808_v2, %v783_v14  ;;  %v3434_v41 = vpop.permute.xlu0 %1166  ;;  %v943_v43 = vsel %vm4158_vm6, %v3212_v47, %v3217_v5  ;;  %v4224_v27 = vld [vmem:[#allocation7_spill] sm:$0xff]  ;;  %v4228_v47 = vld [vmem:[#allocation37_spill] sm:$0xff] }
 0x239   : > { %v977_v0 = vmul.f32 %v4225_v17, %v4224_v27  ;;  %v920_v60 = vmul.f32 %v915_v61, %v3051_v33  ;;  %v971_v13 = vsel %vm4155_vm2, %v3224_v10, %v4225_v17  ;;  %vm4157_vm5 = vcmask 556032   ;;  %v4229_v5 = vld [vmem:[#allocation41_spill] sm:$0xff]  ;;  %v4230_v40 = vld [vmem:[#allocation23_spill] sm:$0xff] }
 0x23a   : > { %v810_v53 = vadd.f32 %v807_v48, %v782_v56  ;;  %v924_v34 = vadd.f32 %v921_v62, %v896_v52  ;;  %v839_v8 = vadd.f32 %v836_v45, %v811_v4  ;;  %v975_v48 = vmul.f32 %v970_v44, %v4224_v27  ;;  %v4227_v56 = vld [vmem:[#allocation20_spill] sm:$0xff]  ;;  %v4234_v45 = vld [vmem:[#allocation26_spill] sm:$0xff]  ;;  %v4237_v44 = vld [vmem:[#allocation29_spill] sm:$0xff] }
 0x23b   : > { %v3377_v32 = vpop.permute.xlu1 %1226  ;;  %v998_v6 = vsel %vm4156_vm4, %v4229_v5, %v4228_v47  ;;  %v948_v36 = vmul.f32 %v943_v43, %v3190_v3  ;;  %v1026_v33 = vsel %vm4157_vm5, %v4231_v59, %v4230_v40  ;;  %v999_v10 = vsel %vm4156_vm4, %v4228_v47, %v4227_v56  ;;  %v4232_v3 = vld [vmem:[#allocation19_spill] sm:$0xff]  ;;  %v4241_v17 = vld [vmem:[#allocation33_spill] sm:$0xff]  ;;  %v4244_v47 = vld [vmem:[#allocation30_spill] sm:$0xff] }
 0x23c   : > { %v838_v55 = vadd.f32 %v835_v12, %v810_v53  ;;  %v952_v42 = vadd.f32 %v949_v11, %v924_v34  ;;  %v867_v46 = vadd.f32 %v864_v57, %v839_v8  ;;  %v1005_v12 = vmul.f32 %v4227_v56, %v4226_v30  ;;  %v4239_v8 = vld [vmem:[#allocation25_spill] sm:$0xff]  ;;  %v4245_v5 = vld [vmem:[#allocation35_spill] sm:$0xff] }
 0x23d   : > { %vm4159_vm2 = vcmask 547840   ;;  %v1003_v38 = vmul.f32 %v998_v6, %v4226_v30  ;;  %v1027_v2 = vsel %vm4157_vm5, %v4230_v40, %v4232_v3  ;;  %vm4167_vm4 = vcmask 539648  }
 0x23e   : > { %v866_v39 = vadd.f32 %v863_v31, %v838_v55  ;;  %v895_v24 = vadd.f32 %v892_v35, %v867_v46  ;;  %v980_v53 = vadd.f32 %v977_v0, %v952_v42  ;;  %v976_v31 = vmul.f32 %v971_v13, %v4224_v27  ;;  %v4233_v55 = vld [vmem:[#allocation14_spill] sm:$0xff]  ;;  %v3467_v52 = vpop.permute.xlu2 %1256  ;;  %v4240_v27 = vld [vmem:[#allocation15_spill] sm:$0xff] }
 0x23f   : > { %v1031_v37 = vmul.f32 %v1026_v33, %v4233_v55  ;;  %v1033_v14 = vmul.f32 %v4232_v3, %v4233_v55  ;;  %v1054_v11 = vsel %vm4159_vm2, %v3351_v49, %v4235_v20  ;;  %v1032_v57 = vmul.f32 %v1027_v2, %v4233_v55  ;;  %v4242_v0 = vld [vmem:[#allocation27_spill] sm:$0xff]  ;;  %v4246_v33 = vld [vmem:[#allocation38_spill] sm:$0xff]  ;;  %v4249_v2 = vld [vmem:[#allocation16_spill] sm:$0xff] }
 0x240   : > { %v894_v63 = vadd.f32 %v891_v18, %v866_v39  ;;  %v923_v19 = vadd.f32 %v920_v60, %v895_v24  ;;  %v1008_v22 = vadd.f32 %v1005_v12, %v980_v53  ;;  %v1004_v18 = vmul.f32 %v999_v10, %v4226_v30  ;;  %v1197_v16 = vpop.permute.xlu0 %1196  ;;  %v4243_v12 = vld [vmem:[#allocation10_spill] sm:$0xff] }
 0x241   : > { %v1055_v39 = vsel %vm4159_vm2, %v4235_v20, %v4234_v45  ;;  %v1083_v35 = vsel %vm4167_vm4, %v4237_v44, %v4239_v8  ;;  %vm4161_vm5 = vcmask 531456   ;;  %vm4160_vm6 = vcmask 523264   ;;  %v4250_v20 = vld [vmem:[#allocation12_spill] sm:$0xff] }
 0x242   : > { %v922_v25 = vadd.f32 %v919_v9, %v894_v63  ;;  %v951_v21 = vadd.f32 %v948_v36, %v923_v19  ;;  %v1061_v9 = vmul.f32 %v4234_v45, %v4236_v7  ;;  %v4238_v63 = vld [vmem:[#allocation31_spill] sm:$0xff]  ;;  %v1036_v34 = vadd.f32 %v1033_v14, %v1008_v22  ;;  %v4247_v19 = vld [vmem:[#allocation40_spill] sm:$0xff] }
 0x243   : > { %v3421_v28 = vpop.permute.xlu1 %1230  ;;  %v1082_v61 = vsel %vm4167_vm4, %v4238_v63, %v4237_v44  ;;  %v1060_v43 = vmul.f32 %v1055_v39, %v4236_v7  ;;  %v1059_v49 = vmul.f32 %v1054_v11, %v4236_v7  ;;  %v1111_v46 = vsel %vm4161_vm5, %v4242_v0, %v4241_v17  ;;  %v4252_v44 = vld [vmem:[#allocation39_spill] sm:$0xff] }
 0x244   : > { %v950_v26 = vadd.f32 %v947_v58, %v922_v25  ;;  %v979_v4 = vadd.f32 %v976_v31, %v951_v21  ;;  %v1064_v42 = vadd.f32 %v1061_v9, %v1036_v34  ;;  %v1088_v13 = vmul.f32 %v1083_v35, %v4240_v27  ;;  %v4248_v31 = vld [vmem:[#allocation32_spill] sm:$0xff] }
 0x245   : > { %vm4162_vm2 = vcmask 392192   ;;  %v1089_v30 = vmul.f32 %v4239_v8, %v4240_v27  ;;  %v1117_v24 = vmul.f32 %v4241_v17, %v4243_v12  ;;  %v1139_v6 = vsel %vm4160_vm6, %v4245_v5, %v4244_v47 }
 0x246   : > { %v978_v50 = vadd.f32 %v975_v48, %v950_v26  ;;  %v1007_v25 = vadd.f32 %v1004_v18, %v979_v4  ;;  %v1087_v48 = vmul.f32 %v1082_v61, %v4240_v27  ;;  %v1110_v36 = vsel %vm4161_vm5, %v3395_v23, %v4242_v0  ;;  %v1293_v3 = vpop.permute.xlu2 %1292  ;;  %v4251_v4 = vld [vmem:[#allocation36_spill] sm:$0xff] }
 0x247   : > { %v1116_v59 = vmul.f32 %v1111_v46, %v4243_v12  ;;  %v1092_v10 = vadd.f32 %v1089_v30, %v1064_v42  ;;  %v1144_v55 = vmul.f32 %v1139_v6, %v4249_v2  ;;  %v1171_v23 = vsel %vm4162_vm2, %v4247_v19, %v3434_v41  ;;  %v4254_v46 = vld [vmem:[#allocation18_spill] sm:$0xff] }
 0x248   : > { %v1006_v62 = vadd.f32 %v1003_v38, %v978_v50  ;;  %v1035_v26 = vadd.f32 %v1032_v57, %v1007_v25  ;;  %v1138_v50 = vsel %vm4160_vm6, %v4246_v33, %v4245_v5  ;;  %v1170_v38 = vsel %vm4162_vm2, %v4248_v31, %v4247_v19 }
 0x249   : > { %v1115_v21 = vmul.f32 %v1110_v36, %v4243_v12  ;;  %vm4163_vm6 = vcmask 384000   ;;  %v1120_v18 = vadd.f32 %v1117_v24, %v1092_v10  ;;  %v1143_v14 = vmul.f32 %v1138_v50, %v4249_v2 }
 0x24a   : > { %v1034_v58 = vadd.f32 %v1031_v37, %v1006_v62  ;;  %v1063_v40 = vadd.f32 %v1060_v43, %v1035_v26  ;;  %v1169_v37 = vsel %vm4162_vm2, %v3342_v15, %v4248_v31  ;;  %v1193_v62 = vpop.permute.xlu0 %1192  ;;  %v1176_v39 = vmul.f32 %v1170_v38, %v4250_v20 }
 0x24b   : > { %v3458_v54 = vpop.permute.xlu1 %1258  ;;  %vm4166_vm5 = vcmask 375808   ;;  %v1145_v7 = vmul.f32 %v4244_v47, %v4249_v2  ;;  %v1177_v41 = vmul.f32 %v1171_v23, %v4250_v20  ;;  %v1175_v11 = vmul.f32 %v1169_v37, %v4250_v20 }
 0x24c   : > { %v1062_v56 = vadd.f32 %v1059_v49, %v1034_v58  ;;  %v1091_v22 = vadd.f32 %v1088_v13, %v1063_v40  ;;  %v1202_v57 = vsel %vm4163_vm6, %v4251_v4, %v1197_v16  ;;  %v1203_v63 = vsel %vm4163_vm6, %v1197_v16, %v4252_v44  ;;  %v4253_v49 = vld [vmem:[#allocation11_spill] sm:$0xff] }
 0x24d   : > { %v1201_v58 = vsel %vm4163_vm6, %v1193_v62, %v4251_v4  ;;  %v1148_v34 = vadd.f32 %v1145_v7, %v1120_v18  ;;  %v1233_v35 = vsel %vm4166_vm5, %v3372_v29, %v3377_v32  ;;  %v1234_v43 = vsel %vm4166_vm5, %v3377_v32, %v3322_v51 }
 0x24e   : > { %v1090_v53 = vadd.f32 %v1087_v48, %v1062_v56  ;;  %v1119_v45 = vadd.f32 %v1116_v59, %v1091_v22  ;;  %vm4165_vm2 = vcmask 367616   ;;  %v1208_v42 = vmul.f32 %v1202_v57, %v4253_v49 }
 0x24f   : > { %v1180_v27 = vadd.f32 %v1177_v41, %v1148_v34  ;;  %v1235_v48 = vsel %vm4166_vm5, %v3322_v51, %v3421_v28  ;;  %v1209_v17 = vmul.f32 %v1203_v63, %v4253_v49  ;;  %v1207_v0 = vmul.f32 %v1201_v58, %v4253_v49  ;;  %v1289_v28 = vpop.permute.xlu2 %1288 }
 0x250   : > { %v1118_v9 = vadd.f32 %v1115_v21, %v1090_v53  ;;  %v1147_v61 = vadd.f32 %v1144_v55, %v1119_v45  ;;  %v1239_v29 = vmul.f32 %v1233_v35, %v4254_v46  ;;  %vm4164_vm6 = vcmask 359424  }
 0x251   : > { %v1240_v26 = vmul.f32 %v1234_v43, %v4254_v46  ;;  %v1265_v32 = vsel %vm4165_vm2, %v3467_v52, %v3458_v54  ;;  %v1266_v13 = vsel %vm4165_vm2, %v3458_v54, %v3427_v1  ;;  %v1241_v56 = vmul.f32 %v1235_v48, %v4254_v46  ;;  %v4255_v52 = vld [vmem:[#allocation21_spill] sm:$0xff] }
 0x252   : > { %v1146_v8 = vadd.f32 %v1143_v14, %v1118_v9  ;;  %v1179_v25 = vadd.f32 %v1176_v39, %v1147_v61  ;;  %v1212_v24 = vadd.f32 %v1209_v17, %v1180_v27  ;;  %v1280_v6 = vpop.permute.xlu0 %1279  ;;  %v1271_v40 = vmul.f32 %v1265_v32, %v4255_v52 }
 0x253   : > { %v1263_v60 = vpop.permute.xlu1 %1262  ;;  %v1272_v59 = vmul.f32 %v1266_v13, %v4255_v52  ;;  %v2781_v20 = vmov 0.0  }
 0x254   : > { %v1178_v16 = vadd.f32 %v1175_v11, %v1146_v8  ;;  %v1267_v51 = vsel %vm4165_vm2, %v3427_v1, %v1263_v60  ;;  %v1211_v30 = vadd.f32 %v1208_v42, %v1179_v25  ;;  %v1244_v50 = vadd.f32 %v1241_v56, %v1212_v24  ;;  %1378 = vst.msk [vmem:[#allocation3] sm:$0xff] %vm3001_vm9, %v2781_v20 }
 0x255   : > { %v1273_v54 = vmul.f32 %v1267_v51, %v4255_v52 }
 0x256   : > { %v1210_v12 = vadd.f32 %v1207_v0, %v1178_v16  ;;  %v1243_v33 = vadd.f32 %v1240_v26, %v1211_v30 }
 0x257   : > { %v1276_v22 = vadd.f32 %v1273_v54, %v1244_v50  ;;  %v4259_v50 = vmov 5  }
 0x258   : > { %v1242_v60 = vadd.f32 %v1239_v29, %v1210_v12  ;;  %v1275_v38 = vadd.f32 %v1272_v59, %v1243_v33  ;;  %v4258_v33 = vmov 3  }
 0x25a   : > { %v1274_v31 = vadd.f32 %v1271_v40, %v1242_v60  ;;  %v4257_v60 = vld [vmem:[#allocation28_spill] sm:$0xff] }
 0x25b   : > { %v1291_v15 = vpop.permute.xlu1 %1290 }
 0x25c   : > { %v1297_v47 = vsel %vm4164_vm6, %v1289_v28, %v1291_v15  ;;  %v1298_v5 = vsel %vm4164_vm6, %v1291_v15, %v1293_v3 }
 0x25d   : > { %v1303_v53 = vmul.f32 %v1297_v47, %v1280_v6  ;;  %v1304_v10 = vmul.f32 %v1298_v5, %v1280_v6 }
 0x25f   : > { %v1307_v55 = vadd.f32 %v1304_v10, %v1275_v38  ;;  %v1306_v23 = vadd.f32 %v1303_v53, %v1274_v31  ;;  %v4260_v53 = vmov 7   ;;  %v4261_v10 = vmov 9  }
 0x260   : > { %v4263_v31 = vmov 13   ;;  %v4264_v38 = vmov 15  }
 0x263   : > { %v1295_v36 = vpop.permute.xlu1 %1294 }
 0x264   : > { %v1299_v1 = vsel %vm4164_vm6, %v1293_v3, %v1295_v36 }
 0x265   : > { %v1305_v19 = vmul.f32 %v1299_v1, %v1280_v6 }
 0x267   : > { %v1308_v2 = vadd.f32 %v1305_v19, %v1276_v22  ;;  %v4262_v19 = vmov 11   ;;  %v4265_v22 = vmov 17  }
 0x26b   : > { %v1313_v37 = vpop.permute.xlu1 %1312 }
 0x26c   : > { %v3559_v21 = vadd.f32 %v1313_v37, %v1306_v23  ;;  %v1316_v18 = vadd.f32 %v1313_v37, %v1307_v55  ;;  %v1317_v14 = vadd.f32 %v1313_v37, %v1308_v2  ;;  %v4266_v2 = vmov 19   ;;  %v1596_v23 = vld [vmem:[%s4059_s8] sm:$0xf] }
 0x26d   : > { %1599 = vperm.xlu0 %2668, %v1596_v23  }
 0x26e   : > { %v2560_v62 = vmul.f32 -1.442695, %v3559_v21  ;;  %v2561_v3 = vmul.f32 -1.442695, %v1316_v18  ;;  %v2562_v45 = vmul.f32 -1.442695, %v1317_v14 }
 0x270   : > { %2711 = vpow2.f32 %v2560_v62  ;;  %v1399_v62 = vld [vmem:[%s4058_s7] sm:$0xf] }
 0x271   : > { %2713 = vpow2.f32 %v2561_v3  ;;  %v4268_v3 = vmov 6  }
 0x272   : > { %2715 = vpow2.f32 %v2562_v45 }
 0x276   : > { %v2712_v7 = vpop.eup %2711 }
 0x277   : > { %v2714_v9 = vpop.eup %2713  ;;  %v1327_v41 = vadd.f32 1.0, %v2712_v7 }
 0x278   : > { %v2716_v11 = vpop.eup %2715  ;;  %v1328_v15 = vadd.f32 1.0, %v2714_v9  ;;  %v4269_v9 = vld [vmem:[#allocation13_spill] sm:$0xff] }
 0x279   : > { %v1329_v4 = vadd.f32 1.0, %v2716_v11  ;;  %2717 = vrcp.f32 %v1327_v41  ;;  %vm1335_vm6 = vweird.f32 %v1327_v41  ;;  %v1339_v35 = vand.u32 2147483647, %v1327_v41 }
 0x27a   : > { %2719 = vrcp.f32 %v1328_v15  ;;  %v1341_v25 = vand.u32 2147483648, %v1327_v41  ;;  %v1356_v42 = vand.u32 2147483648, %v1328_v15  ;;  %v1354_v48 = vand.u32 2147483647, %v1328_v15 }
 0x27b   : > { %2721 = vrcp.f32 %v1329_v4  ;;  %v1371_v17 = vand.u32 2147483648, %v1329_v4  ;;  %v1369_v29 = vand.u32 2147483647, %v1329_v4  ;;  %vm1350_vm3 = vweird.f32 %v1328_v15 }
 0x27c   : > { %vm1365_vm1 = vweird.f32 %v1329_v4  ;;  %v1342_v13 = vor.u32 1.1754944e-38, %v1341_v25  ;;  %v1357_v51 = vor.u32 1.1754944e-38, %v1356_v42  ;;  %vm1340_vm15 = vcmp.eq.f32.partialorder %v1339_v35, 8.507059e+37 }
 0x27d   : > { %vm1355_vm13 = vcmp.eq.f32.partialorder %v1354_v48, 8.507059e+37  ;;  %v1372_v56 = vor.u32 1.1754944e-38, %v1371_v17  ;;  %vm1370_vm11 = vcmp.eq.f32.partialorder %v1369_v29, 8.507059e+37  ;;  %v4270_v11 = vmov 8  }
 0x27e   : > { %v4276_v35 = vmov 20   ;;  %v4277_v25 = vmov 22  }
 0x27f   : > { %v2718_v57 = vpop.eup %2717 }
 0x280   : > { %v2720_v44 = vpop.eup %2719  ;;  %v1331_v63 = vmul.f32 %v2718_v57, %v1327_v41  ;;  %vm1336_vm9 = vweird.f32 %v2718_v57  ;;  %v1397_v41 = vld [vmem:[%s4057_s6] sm:$0xf] }
 0x281   : > { %v2722_v61 = vpop.eup %2721  ;;  %v1346_v58 = vmul.f32 %v2720_v44, %v1328_v15  ;;  %vm1351_vm2 = vweird.f32 %v2720_v44  ;;  %vm1337_vm4 = vmor %vm1335_vm6, %vm1336_vm9  ;;  %vm4302_vm9 = vcmask 883712  }
 0x282   : > { %v1332_v34 = vsub.f32 1.0, %v1331_v63  ;;  %v1361_v8 = vmul.f32 %v2722_v61, %v1329_v4  ;;  %vm1366_vm5 = vweird.f32 %v2722_v61  ;;  %vm1352_vm0 = vmor %vm1350_vm3, %vm1351_vm2  ;;  %v4271_v63 = vmov 10  }
 0x283   : > { %v1347_v43 = vsub.f32 1.0, %v1346_v58  ;;  %vm1367_vm12 = vmor %vm1365_vm1, %vm1366_vm5  ;;  %v4273_v58 = vmov 14   ;;  %vm2433_vm1 = vcmask 125952   ;;  %vm4294_vm3 = vcmask 1022976  }
 0x284   : > { %v1333_v49 = vmul.f32 %v2718_v57, %v1332_v34  ;;  %v1362_v27 = vsub.f32 1.0, %v1361_v8  ;;  %v4274_v34 = vmov 16   ;;  %v4275_v8 = vmov 18  }
 0x285   : > { %v1348_v16 = vmul.f32 %v2720_v44, %v1347_v43  ;;  %v4278_v43 = vmov 23   ;;  %vm4298_vm5 = vcmask 1014784  }
 0x286   : > { %v1334_v0 = vadd.f32 %v2718_v57, %v1333_v49  ;;  %v1363_v46 = vmul.f32 %v2722_v61, %v1362_v27  ;;  %v4279_v49 = vmov 24   ;;  %vm4299_vm6 = vmmov %vm4298_vm5 }
 0x287   : > { %v1349_v26 = vadd.f32 %v2720_v44, %v1348_v16 }
 0x288   : > { %v1338_v32 = vsel %vm1337_vm4, %v2718_v57, %v1334_v0  ;;  %v1364_v28 = vadd.f32 %v2722_v61, %v1363_v46  ;;  %vm4296_vm4 = vmmov %vm4294_vm3 }
 0x289   : > { %v1353_v30 = vsel %vm1352_vm0, %v2720_v44, %v1349_v26  ;;  %v1343_v12 = vsel %vm1340_vm15, %v1342_v13, %v1338_v32  ;;  %vm1389_vm15 = vcmask 343040   ;;  %v2423_v13 = vld [vmem:[%s2870_s26 + $0x8] sm:$0xf] }
 0x28a   : > { %v1358_v24 = vsel %vm1355_vm13, %v1357_v51, %v1353_v30  ;;  %v1368_v47 = vsel %vm1367_vm12, %v2722_v61, %v1364_v28  ;;  %v1375_v52 = vmul.f32 %v1343_v12, %v3559_v21  ;;  %vm1394_vm13 = vcmask 832516   ;;  %v4280_v28 = vld [vmem:[#allocation5_spill] sm:$0xff]  ;;  %v2422_v12 = vld [vmem:[%s2870_s26] sm:$0xf] }
 0x28b   : > { %v1373_v5 = vsel %vm1370_vm11, %v1372_v56, %v1368_v47  ;;  %v1376_v6 = vmul.f32 %v1358_v24, %v1316_v18  ;;  %vm1392_vm11 = vcmask 1041744   ;;  %v4267_v18 = vmov 4  }
 0x28c   : > { %v1377_v36 = vmul.f32 %v1373_v5, %v1317_v14  ;;  %vm1393_vm12 = vmor %vm590_vm14, %vm1392_vm11  ;;  %2672 = vset.pattern.permute.xlu0 %v4267_v18  ;;  %vm1407_vm14 = vcmask 15360   ;;  %v4272_v61 = vmov 12   ;;  %v4281_v30 = vperm.slane %v4280_v28, 1 }
 0x28d   : > { %v1382_v40 = vrot.slane %v1376_v6, 6  ;;  %vm1395_vm0 = vmor %vm1394_vm13, %vm1393_vm12  ;;  %1745 = vperm.xlu0 %2672, %v4257_v60   ;;  %v4282_v24 = vperm.slane %v4280_v28, 0  ;;  %vm4304_vm12 = vcmask 875520  }
 0x28e   : > { %v1383_v59 = vrot.slane %v1377_v36, 4  ;;  %vm4303_vm11 = vmmov %vm4302_vm9 }
 0x28f   : > { %v1384_v54 = vsel %vm583_vm8, %v1375_v52, %v1382_v40  ;;  %vm4306_vm13 = vmmov %vm4304_vm12 }
 0x290   : > { %v1385_v1 = vsel %vm587_vm7, %v1384_v54, %v1383_v59 }
 0x291   : > { %1386 = vrot.lane.b32.xlu2 %v1385_v1, %s4175_s24  ;;  %s3648_s24 = scalar_lea.vmem %s4062_s11, %s2581_s23  ;;  %s4286_s23 = smov 88  }
 0x295   : > { %2674 = vset.pattern.permute.xlu0 %v4268_v3 }
 0x296   : > { %1807 = vperm.xlu0 %2674, %v4257_v60  }
 0x299   : > { %1652 = vperm.xlu2 %2669, %v4257_v60  }
 0x29e   : > { %2676 = vset.pattern.permute.xlu0 %v4270_v11 }
 0x29f   : > { %1869 = vperm.xlu0 %2676, %v4257_v60  }
 0x2a1   : > { %2671 = vset.pattern.permute.xlu2 %v4258_v33  ;;  %v2425_v33 = vld [vmem:[%s2870_s26 + $0x18] sm:$0xf] }
 0x2a2   : > { %1714 = vperm.xlu2 %2671, %v4257_v60  }
 0x2a7   : > { %2678 = vset.pattern.permute.xlu0 %v4271_v63 }
 0x2a8   : > { %1931 = vperm.xlu0 %2678, %v4257_v60  }
 0x2aa   : > { %2673 = vset.pattern.permute.xlu2 %v4259_v50 }
 0x2ab   : > { %1776 = vperm.xlu2 %2673, %v4257_v60  }
 0x2b0   : > { %2680 = vset.pattern.permute.xlu0 %v4272_v61 }
 0x2b1   : > { %1993 = vperm.xlu0 %2680, %v4257_v60  }
 0x2b3   : > { %2675 = vset.pattern.permute.xlu2 %v4260_v53  ;;  %v4283_v53 = vperm.slane %v4280_v28, 3 }
 0x2b4   : > { %1838 = vperm.xlu2 %2675, %v4257_v60  }
 0x2b9   : > { %2682 = vset.pattern.permute.xlu0 %v4273_v58 }
 0x2ba   : > { %2055 = vperm.xlu0 %2682, %v4257_v60  }
 0x2bc   : > { %2677 = vset.pattern.permute.xlu2 %v4261_v10 }
 0x2bd   : > { %1900 = vperm.xlu2 %2677, %v4257_v60  }
 0x2c2   : > { %2684 = vset.pattern.permute.xlu0 %v4274_v34 }
 0x2c3   : > { %2117 = vperm.xlu0 %2684, %v4257_v60  }
 0x2c5   : > { %2679 = vset.pattern.permute.xlu2 %v4262_v19  ;;  %v2424_v19 = vld [vmem:[%s2870_s26 + $0x10] sm:$0xf] }
 0x2c6   : > { %1962 = vperm.xlu2 %2679, %v4257_v60  }
 0x2cb   : > { %2686 = vset.pattern.permute.xlu0 %v4275_v8 }
 0x2cc   : > { %2179 = vperm.xlu0 %2686, %v4257_v60  }
 0x2ce   : > { %2681 = vset.pattern.permute.xlu2 %v4263_v31  ;;  %v4284_v31 = vperm.slane %v4280_v28, 2 }
 0x2cf   : > { %2024 = vperm.xlu2 %2681, %v4257_v60  }
 0x2d4   : > { %2688 = vset.pattern.permute.xlu0 %v4276_v35 }
 0x2d5   : > { %2241 = vperm.xlu0 %2688, %v4257_v60  }
 0x2d7   : > { %2683 = vset.pattern.permute.xlu2 %v4264_v38 }
 0x2d8   : > { %2086 = vperm.xlu2 %2683, %v4257_v60  }
 0x2dd   : > { %2690 = vset.pattern.permute.xlu0 %v4277_v25 }
 0x2de   : > { %2311 = vperm.xlu0 %2690, %v4257_v60  }
 0x2df   : > { %v1600_v0 = vpop.permute.xlu0 %1599 }
 0x2e0   : > { %2685 = vset.pattern.permute.xlu2 %v4265_v22 }
 0x2e1   : > { %2148 = vperm.xlu2 %2685, %v4257_v60  }
 0x2e6   : > { %2691 = vset.pattern.permute.xlu0 %v4278_v43 }
 0x2e7   : > { %2346 = vperm.xlu0 %2691, %v4257_v60  }
 0x2e9   : > { %2687 = vset.pattern.permute.xlu2 %v4266_v2 }
 0x2ea   : > { %2210 = vperm.xlu2 %2687, %v4257_v60  }
 0x2eb   : > { %v1387_v55 = vpop.permute.xlu2 %1386 }
 0x2ec   : > { %v1388_v37 = vrot.slane %v1387_v55, 6 }
 0x2ee   : > { %v1390_v21 = vsel %vm1389_vm15, %v1388_v37, %v1387_v55 }
 0x2ef   : > { %1396 = vst.msk [vmem:[#allocation3] sm:$0x3f] %vm1395_vm0, %v1390_v21  ;;  %2692 = vset.pattern.permute.xlu0 %v4279_v49  ;;  %vm4307_vm0 = vcmask 867328  }
 0x2f6   : > { %v1400_v14 = vld [vmem:[#allocation3] sm:$0xff] }
 0x2f7   : > { %1402 = vst [vmem:[#allocation1] ss:$4 sm:$0xff] %v1400_v14 }
 0x2fe   : > { %v1403_v45 = vld.sshfl [vmem:[#allocation1] sm:$0xff pattern:$0x73625140]  ;;  %v1404_v20 = vld.sshfl [vmem:[#allocation1 + $0x8] sm:$0xff pattern:$0x73625140] }
 0x2ff   : > { %2563 = vmatpush.msk.msrb.mxu0 %vm583_vm8, %v1403_v45  ;;  %2565 = vmatpush.msk.msrb.mxu1 %vm583_vm8, %v1404_v20  ;;  %v1405_v39 = vld.sshfl [vmem:[#allocation1 + $0x10] sm:$0xff pattern:$0x73625140]  ;;  %v1406_v7 = vld.sshfl [vmem:[#allocation1 + $0x18] sm:$0xff pattern:$0x73625140]  ;;  %v3690_v58 = vpop.permute.xlu0 %1745 }
 0x300   : > { %2567 = vmatpush.msk.msrb.mxu2 %vm583_vm8, %v1405_v39  ;;  %2569 = vmatpush.msk.msrb.mxu3 %vm583_vm8, %v1406_v7  ;;  %1500 = vst [vmem:[#allocation1] ss:$4 sm:$0xff] %v4269_v9 }
 0x301   : > { %2566 = vmatmul.msk.f32.vlgmr.msrb.gmra.mxu1 %vm1407_vm14, %v1399_v62  ;;  %2570 = vmatmul.msk.f32.vlgmr.msrb.gmra.mxu3 %vm1407_vm14, %v1399_v62 }
 0x302   : > { %2568 = vmatmul.msk.f32.vlgmr.msrb.gmra.mxu2 %vm1407_vm14, %v1399_v62  ;;  %2564 = vmatmul.msk.f32.vlgmr.msrb.gmra.mxu0 %vm1407_vm14, %v1399_v62 }
 0x307   : > { %v1501_v15 = vld.sshfl [vmem:[#allocation1] sm:$0xff pattern:$0x73625140]  ;;  %v1502_v4 = vld.sshfl [vmem:[#allocation1 + $0x8] sm:$0xff pattern:$0x73625140] }
 0x308   : > { %2571 = vmatpush.msk.msra.mxu0 %vm583_vm8, %v1501_v15  ;;  %2573 = vmatpush.msk.msra.mxu1 %vm583_vm8, %v1502_v4  ;;  %v1503_v57 = vld.sshfl [vmem:[#allocation1 + $0x10] sm:$0xff pattern:$0x73625140]  ;;  %v1504_v44 = vld.sshfl [vmem:[#allocation1 + $0x18] sm:$0xff pattern:$0x73625140]  ;;  %v3698_v49 = vpop.permute.xlu0 %1807 }
 0x309   : > { %2575 = vmatpush.msk.msra.mxu2 %vm583_vm8, %v1503_v57  ;;  %2577 = vmatpush.msk.msra.mxu3 %vm583_vm8, %v1504_v44  ;;  %vm1621_vm8 = vcmask 130052  }
 0x30a   : > { %2574 = vmatmul.msk.f32.vlgmr.msra.gmra.mxu1 %vm1407_vm14, %v1397_v41  ;;  %2578 = vmatmul.msk.f32.vlgmr.msra.gmra.mxu3 %vm1407_vm14, %v1397_v41  ;;  %vm1622_vm2 = vmor %vm1621_vm8, %vm587_vm7 }
 0x30b   : > { %2576 = vmatmul.msk.f32.vlgmr.msra.gmra.mxu2 %vm1407_vm14, %v1397_v41  ;;  %2572 = vmatmul.msk.f32.vlgmr.msra.gmra.mxu0 %vm1407_vm14, %v1397_v41  ;;  %v3682_v41 = vpop.permute.xlu2 %1652  ;;  %vm4308_vm14 = vmmov %vm4307_vm0 }
 0x313   : > { %v3688_v61 = vpop.permute.xlu2 %1714 }
 0x31b   : > { %v3696_v43 = vpop.permute.xlu2 %1776 }
 0x37e   : > { %v1456_v42 = vpop.f32.mrf.mxu1 }
 0x37f   : > { %v1436_v27 = vpop.f32.mrf.mxu0 }
 0x384   : > { %v1496_v16 = vpop.f32.mrf.mxu3 }
 0x385   : > { %v1476_v48 = vpop.f32.mrf.mxu2 }
 0x387   : > { %v1553_v17 = vpop.f32.mrf.mxu1 }
 0x388   : > { %v1554_v46 = vadd.f32 %v1553_v17, %v1456_v42  ;;  %v1533_v29 = vpop.f32.mrf.mxu0  ;;  %v3704_v17 = vpop.permute.xlu0 %1869 }
 0x389   : > { %v1534_v26 = vadd.f32 %v1533_v29, %v1436_v27  ;;  %v3706_v29 = vpop.permute.xlu2 %1838 }
 0x38a   : > { %v1603_v32 = vadd.f32 %v1600_v0, %v1554_v46 }
 0x38b   : > { %v1602_v51 = vadd.f32 %v1600_v0, %v1534_v26 }
 0x38c   : > { %v1607_v56 = vmul.f32 %v1603_v32, %v4281_v30 }
 0x38d   : > { %v1606_v47 = vmul.f32 %v1602_v51, %v4282_v24  ;;  %v1593_v5 = vpop.f32.mrf.mxu3 }
 0x38e   : > { %v1614_v6 = vrot.slane %v1607_v56, 4  ;;  %v2427_v36 = vadd.f32 %v2423_v13, %v1607_v56  ;;  %v1594_v52 = vadd.f32 %v1593_v5, %v1496_v16  ;;  %v1573_v40 = vpop.f32.mrf.mxu2 }
 0x38f   : > { %v2426_v59 = vadd.f32 %v2422_v12, %v1606_v47  ;;  %v1574_v54 = vadd.f32 %v1573_v40, %v1476_v48 }
 0x390   : > { %2431 = vst [vmem:[%s3648_s24 + $0x8] sm:$0xf] %v2427_v36  ;;  %v3654_v1 = vsel %vm587_vm7, %v1606_v47, %v1614_v6  ;;  %v1605_v60 = vadd.f32 %v1600_v0, %v1594_v52  ;;  %v3712_v13 = vpop.permute.xlu0 %1931 }
 0x391   : > { %v1604_v50 = vadd.f32 %v1600_v0, %v1574_v54  ;;  %1634 = vst [vmem:[#allocation1] ss:$2 sm:$0xff] %v3654_v1  ;;  %v3716_v30 = vpop.permute.xlu2 %1900 }
 0x392   : > { %v1609_v10 = vmul.f32 %v1605_v60, %v4283_v53  ;;  %2430 = vst [vmem:[%s3648_s24] sm:$0xf] %v2426_v59 }
 0x393   : > { %v1608_v38 = vmul.f32 %v1604_v50, %v4284_v31 }
 0x394   : > { %v1615_v22 = vrot.slane %v1609_v10, 4  ;;  %v2429_v2 = vadd.f32 %v2425_v33, %v1609_v10 }
 0x395   : > { %v2428_v55 = vadd.f32 %v2424_v19, %v1608_v38 }
 0x396   : > { %2434 = vst.msk [vmem:[%s3648_s24 + $0x18] sm:$0xf] %vm2433_vm1, %v2429_v2  ;;  %v1617_v23 = vsel %vm587_vm7, %v1608_v38, %v1615_v22  ;;  %vm4292_vm7 = vcmask 1031168  }
 0x397   : > { %1623 = vst.msk [vmem:[#allocation4 + $0x8] sm:$0xff] %vm1622_vm2, %v1617_v23  ;;  %v3744_v23 = vpop.permute.xlu1 %1629  ;;  %vm4313_vm2 = vcmask 850944  }
 0x398   : > { %2432 = vst [vmem:[%s3648_s24 + $0x10] sm:$0xf] %v2428_v55  ;;  %v3669_v37 = vld.sshfl [vmem:[#allocation1] sm:$0xff pattern:$0x75316420]  ;;  %v3719_v24 = vpop.permute.xlu0 %1993 }
 0x399   : > { %v3671_v21 = vld.sshfl [vmem:[#allocation1 + $0x8] sm:$0xff pattern:$0x75316420]  ;;  %v3724_v52 = vpop.permute.xlu2 %1962 }
 0x39a   : > { %1657 = vst [vmem:[#allocation1] ss:$2 sm:$0xff] %v3654_v1 }
 0x39e   : > { %v1626_v18 = vld [vmem:[#allocation4 + $0x8] sm:$0xf] }
 0x39f   : > { %1636 = vst [vmem:[#allocation1 + $0x10] ss:$2 sm:$0xff] %v1626_v18  ;;  %v1650_v45 = vld [vmem:[#allocation4 + $0x8] sm:$0xf] }
 0x3a0   : > { %v1681_v9 = vld [vmem:[#allocation4 + $0x8] sm:$0xf]  ;;  %v3727_v40 = vpop.permute.xlu0 %2055 }
 0x3a1   : > { %v1660_v14 = vld.sshfl [vmem:[#allocation1] sm:$0xff pattern:$0x75316420]  ;;  %v1661_v62 = vld.sshfl [vmem:[#allocation1 + $0x8] sm:$0xff pattern:$0x75316420]  ;;  %v3732_v50 = vpop.permute.xlu2 %2024 }
 0x3a2   : > { %1688 = vst [vmem:[#allocation1] ss:$2 sm:$0xff] %v3654_v1  ;;  %1665 = vrot.lane.b32.xlu2 %v1661_v62, %s2756_s12  ;;  %1663 = vrot.lane.b32.xlu1 %v1660_v14, %s2756_s12  ;;  %v1712_v57 = vld [vmem:[#allocation4 + $0x8] sm:$0xf] }
 0x3a3   : > { %v1743_v8 = vld [vmem:[#allocation4 + $0x8] sm:$0xf] }
 0x3a4   : > { %v1774_v27 = vld [vmem:[#allocation4 + $0x8] sm:$0xf] }
 0x3a5   : > { %v1805_v46 = vld [vmem:[#allocation4 + $0x8] sm:$0xf] }
 0x3a6   : > { %v3677_v3 = vld.sshfl [vmem:[#allocation1 + $0x10] sm:$0xff pattern:$0x75316420]  ;;  %v1836_v28 = vld [vmem:[#allocation4 + $0x8] sm:$0xf] }
 0x3a7   : > { %1659 = vst [vmem:[#allocation1 + $0x10] ss:$2 sm:$0xff] %v1650_v45  ;;  %v1867_v5 = vld [vmem:[#allocation4 + $0x8] sm:$0xf] }
 0x3a8   : > { %v1898_v54 = vld [vmem:[#allocation4 + $0x8] sm:$0xf]  ;;  %v3736_v19 = vpop.permute.xlu0 %2117 }
 0x3a9   : > { %v1691_v20 = vld.sshfl [vmem:[#allocation1] sm:$0xff pattern:$0x75316420]  ;;  %v1692_v39 = vld.sshfl [vmem:[#allocation1 + $0x8] sm:$0xff pattern:$0x75316420]  ;;  %v3740_v55 = vpop.permute.xlu2 %2086 }
 0x3aa   : > { %1719 = vst [vmem:[#allocation1] ss:$2 sm:$0xff] %v3654_v1  ;;  %1694 = vrot.lane.b32.xlu2 %v1691_v20, %s2757_s13  ;;  %v1929_v10 = vld [vmem:[#allocation4 + $0x8] sm:$0xf] }
 0x3ab   : > { %v1960_v2 = vld [vmem:[#allocation4 + $0x8] sm:$0xf] }
 0x3ac   : > { %v1991_v20 = vld [vmem:[#allocation4 + $0x8] sm:$0xf] }
 0x3ae   : > { %v1662_v7 = vld.sshfl [vmem:[#allocation1 + $0x10] sm:$0xff pattern:$0x75316420] }
 0x3af   : > { %1690 = vst [vmem:[#allocation1 + $0x10] ss:$2 sm:$0xff] %v1681_v9  ;;  %1667 = vrot.lane.b32.xlu0 %v1662_v7, %s2756_s12  ;;  %v3755_v7 = vpop.permute.xlu1 %1683  ;;  %s4287_s12 = smov 85  }
 0x3b0   : > { %v3748_v62 = vpop.permute.xlu0 %2179 }
 0x3b1   : > { %v1722_v11 = vld.sshfl [vmem:[#allocation1] sm:$0xff pattern:$0x75316420]  ;;  %v1723_v15 = vld.sshfl [vmem:[#allocation1 + $0x8] sm:$0xff pattern:$0x75316420] }
 0x3b2   : > { %1750 = vst [vmem:[#allocation1] ss:$2 sm:$0xff] %v3654_v1 }
 0x3b6   : > { %v1693_v4 = vld.sshfl [vmem:[#allocation1 + $0x10] sm:$0xff pattern:$0x75316420] }
 0x3b7   : > { %1721 = vst [vmem:[#allocation1 + $0x10] ss:$2 sm:$0xff] %v1712_v57  ;;  %1698 = vrot.lane.b32.xlu1 %v1693_v4, %s2757_s13  ;;  %1696 = vrot.lane.b32.xlu0 %v1692_v39, %s2757_s13  ;;  %v3753_v39 = vpop.permute.xlu2 %2148  ;;  %v2022_v57 = vld [vmem:[#allocation4 + $0x8] sm:$0xf]  ;;  %s4288_s13 = smov 86  }
 0x3b9   : > { %v1753_v44 = vld.sshfl [vmem:[#allocation1] sm:$0xff pattern:$0x75316420]  ;;  %v1754_v63 = vld.sshfl [vmem:[#allocation1 + $0x8] sm:$0xff pattern:$0x75316420] }
 0x3ba   : > { %1781 = vst [vmem:[#allocation1] ss:$2 sm:$0xff] %v3654_v1 }
 0x3be   : > { %v1724_v34 = vld.sshfl [vmem:[#allocation1 + $0x10] sm:$0xff pattern:$0x75316420] }
 0x3bf   : > { %1752 = vst [vmem:[#allocation1 + $0x10] ss:$2 sm:$0xff] %v1743_v8  ;;  %1729 = vrot.lane.b32.xlu2 %v1724_v34, %s2758_s14  ;;  %1727 = vrot.lane.b32.xlu1 %v1723_v15, %s2758_s14  ;;  %v3761_v15 = vpop.permute.xlu0 %2241  ;;  %v3770_v34 = vpop.permute.xlu2 %2210 }
 0x3c0   : > { %1725 = vrot.lane.b32.xlu0 %v1722_v11, %s2758_s14  ;;  %v3772_v8 = vpop.permute.xlu1 %2276  ;;  %s4289_s14 = smov 68  }
 0x3c1   : > { %v1784_v35 = vld.sshfl [vmem:[#allocation1] sm:$0xff pattern:$0x75316420]  ;;  %v1785_v25 = vld.sshfl [vmem:[#allocation1 + $0x8] sm:$0xff pattern:$0x75316420] }
 0x3c2   : > { %1812 = vst [vmem:[#allocation1] ss:$2 sm:$0xff] %v3654_v1 }
 0x3c6   : > { %v1755_v42 = vld.sshfl [vmem:[#allocation1 + $0x10] sm:$0xff pattern:$0x75316420] }
 0x3c7   : > { %1783 = vst [vmem:[#allocation1 + $0x10] ss:$2 sm:$0xff] %v1774_v27  ;;  %1758 = vrot.lane.b32.xlu2 %v1754_v63, %s2759_s15  ;;  %1756 = vrot.lane.b32.xlu1 %v1753_v44, %s2759_s15 }
 0x3c8   : > { %1787 = vrot.lane.b32.xlu0 %v1784_v35, %s2760_s16  ;;  %v3774_v35 = vpop.permute.xlu0 %2311 }
 0x3c9   : > { %v1815_v16 = vld.sshfl [vmem:[#allocation1] sm:$0xff pattern:$0x75316420]  ;;  %v1816_v48 = vld.sshfl [vmem:[#allocation1 + $0x8] sm:$0xff pattern:$0x75316420] }
 0x3ca   : > { %1843 = vst [vmem:[#allocation1] ss:$2 sm:$0xff] %v3654_v1 }
 0x3ce   : > { %v1786_v0 = vld.sshfl [vmem:[#allocation1 + $0x10] sm:$0xff pattern:$0x75316420] }
 0x3cf   : > { %1814 = vst [vmem:[#allocation1 + $0x10] ss:$2 sm:$0xff] %v1805_v46  ;;  %1791 = vrot.lane.b32.xlu2 %v1786_v0, %s2760_s16  ;;  %1760 = vrot.lane.b32.xlu1 %v1755_v42, %s2759_s15  ;;  %v2053_v42 = vld [vmem:[#allocation4 + $0x8] sm:$0xf]  ;;  %s4290_s15 = smov 84  }
 0x3d1   : > { %v1846_v26 = vld.sshfl [vmem:[#allocation1] sm:$0xff pattern:$0x75316420]  ;;  %v1847_v32 = vld.sshfl [vmem:[#allocation1 + $0x8] sm:$0xff pattern:$0x75316420] }
 0x3d2   : > { %1874 = vst [vmem:[#allocation1] ss:$2 sm:$0xff] %v3654_v1  ;;  %1849 = vrot.lane.b32.xlu0 %v1846_v26, %s2762_s20 }
 0x3d6   : > { %v1817_v51 = vld.sshfl [vmem:[#allocation1 + $0x10] sm:$0xff pattern:$0x75316420] }
 0x3d7   : > { %1845 = vst [vmem:[#allocation1 + $0x10] ss:$2 sm:$0xff] %v1836_v28  ;;  %1789 = vrot.lane.b32.xlu1 %v1785_v25, %s2760_s16  ;;  %1820 = vrot.lane.b32.xlu2 %v1816_v48, %s2761_s19  ;;  %s4291_s16 = smov 67  }
 0x3d9   : > { %v1877_v56 = vld.sshfl [vmem:[#allocation1] sm:$0xff pattern:$0x75316420]  ;;  %v1878_v12 = vld.sshfl [vmem:[#allocation1 + $0x8] sm:$0xff pattern:$0x75316420] }
 0x3da   : > { %1905 = vst [vmem:[#allocation1] ss:$2 sm:$0xff] %v3654_v1 }
 0x3de   : > { %v1848_v47 = vld.sshfl [vmem:[#allocation1 + $0x10] sm:$0xff pattern:$0x75316420] }
 0x3df   : > { %1876 = vst [vmem:[#allocation1 + $0x10] ss:$2 sm:$0xff] %v1867_v5  ;;  %1853 = vrot.lane.b32.xlu2 %v1848_v47, %s2762_s20  ;;  %1818 = vrot.lane.b32.xlu1 %v1815_v16, %s2761_s19  ;;  %v2115_v47 = vld [vmem:[#allocation4 + $0x8] sm:$0xf] }
 0x3e1   : > { %v1908_v6 = vld.sshfl [vmem:[#allocation1] sm:$0xff pattern:$0x75316420]  ;;  %v1909_v36 = vld.sshfl [vmem:[#allocation1 + $0x8] sm:$0xff pattern:$0x75316420] }
 0x3e2   : > { %1936 = vst [vmem:[#allocation1] ss:$2 sm:$0xff] %v3654_v1  ;;  %1911 = vrot.lane.b32.xlu0 %v1908_v6, %s2764_s22 }
 0x3e6   : > { %v1879_v59 = vld.sshfl [vmem:[#allocation1 + $0x10] sm:$0xff pattern:$0x75316420] }
 0x3e7   : > { %1907 = vst [vmem:[#allocation1 + $0x10] ss:$2 sm:$0xff] %v1898_v54  ;;  %1822 = vrot.lane.b32.xlu1 %v1817_v51, %s2761_s19  ;;  %1882 = vrot.lane.b32.xlu2 %v1878_v12, %s2763_s21  ;;  %v3787_v51 = vpop.permute.xlu0 %2346  ;;  %s4295_s19 = smov 64  }
 0x3e9   : > { %v1939_v60 = vld.sshfl [vmem:[#allocation1] sm:$0xff pattern:$0x75316420]  ;;  %v1940_v33 = vld.sshfl [vmem:[#allocation1 + $0x8] sm:$0xff pattern:$0x75316420] }
 0x3ea   : > { %1967 = vst [vmem:[#allocation1] ss:$2 sm:$0xff] %v3654_v1 }
 0x3ee   : > { %v1910_v53 = vld.sshfl [vmem:[#allocation1 + $0x10] sm:$0xff pattern:$0x75316420] }
 0x3ef   : > { %1938 = vst [vmem:[#allocation1 + $0x10] ss:$2 sm:$0xff] %v1929_v10  ;;  %1851 = vrot.lane.b32.xlu1 %v1847_v32, %s2762_s20  ;;  %1915 = vrot.lane.b32.xlu2 %v1910_v53, %s2764_s22  ;;  %v2084_v32 = vld [vmem:[#allocation4 + $0x8] sm:$0xf]  ;;  %s4297_s20 = smov 65  }
 0x3f1   : > { %v1970_v31 = vld.sshfl [vmem:[#allocation1] sm:$0xff pattern:$0x75316420]  ;;  %v1971_v38 = vld.sshfl [vmem:[#allocation1 + $0x8] sm:$0xff pattern:$0x75316420] }
 0x3f2   : > { %1998 = vst [vmem:[#allocation1] ss:$2 sm:$0xff] %v3654_v1  ;;  %1973 = vrot.lane.b32.xlu0 %v1970_v31, %s4285_s18 }
 0x3f6   : > { %v1941_v22 = vld.sshfl [vmem:[#allocation1 + $0x10] sm:$0xff pattern:$0x75316420] }
 0x3f7   : > { %1969 = vst [vmem:[#allocation1 + $0x10] ss:$2 sm:$0xff] %v1960_v2  ;;  %1880 = vrot.lane.b32.xlu1 %v1877_v56, %s2763_s21  ;;  %1944 = vrot.lane.b32.xlu2 %v1940_v33, %s4286_s23  ;;  %v2146_v33 = vld [vmem:[#allocation4 + $0x8] sm:$0xf] }
 0x3f9   : > { %v3746_v18 = vld.sshfl [vmem:[#allocation1] sm:$0xff pattern:$0x75316420]  ;;  %v2002_v14 = vld.sshfl [vmem:[#allocation1 + $0x8] sm:$0xff pattern:$0x75316420] }
 0x3fa   : > { %2029 = vst [vmem:[#allocation1] ss:$2 sm:$0xff] %v3654_v1 }
 0x3fc   : > { %v1666_v48 = vpop.permute.xlu2 %1665 }
 0x3fe   : > { %v1972_v45 = vld.sshfl [vmem:[#allocation1 + $0x10] sm:$0xff pattern:$0x75316420] }
 0x3ff   : > { %2000 = vst [vmem:[#allocation1 + $0x10] ss:$2 sm:$0xff] %v1991_v20  ;;  %1884 = vrot.lane.b32.xlu1 %v1879_v59, %s2763_s21  ;;  %1977 = vrot.lane.b32.xlu2 %v1972_v45, %s4285_s18  ;;  %v1643_v45 = vmul.f32 %v3669_v37, %v3744_v23  ;;  %v1644_v20 = vmul.f32 %v3671_v21, %v3744_v23  ;;  %s4300_s21 = smov 47  }
 0x401   : > { %v2032_v9 = vld.sshfl [vmem:[#allocation1] sm:$0xff pattern:$0x75316420]  ;;  %v3757_v11 = vld.sshfl [vmem:[#allocation1 + $0x8] sm:$0xff pattern:$0x75316420] }
 0x402   : > { %2060 = vst [vmem:[#allocation1] ss:$2 sm:$0xff] %v3654_v1  ;;  %2035 = vrot.lane.b32.xlu0 %v2032_v9, %s4287_s12 }
 0x404   : > { %v1695_v5 = vpop.permute.xlu2 %1694 }
 0x406   : > { %v3763_v4 = vld.sshfl [vmem:[#allocation1 + $0x10] sm:$0xff pattern:$0x75316420] }
 0x407   : > { %2031 = vst [vmem:[#allocation1 + $0x10] ss:$2 sm:$0xff] %v2022_v57  ;;  %1913 = vrot.lane.b32.xlu1 %v1909_v36, %s2764_s22  ;;  %2006 = vrot.lane.b32.xlu2 %v2002_v14, %s4288_s13  ;;  %s4301_s22 = smov 48  }
 0x409   : > { %v3767_v44 = vld.sshfl [vmem:[#allocation1] sm:$0xff pattern:$0x75316420]  ;;  %v2064_v63 = vld.sshfl [vmem:[#allocation1 + $0x8] sm:$0xff pattern:$0x75316420] }
 0x40a   : > { %2091 = vst [vmem:[#allocation1] ss:$2 sm:$0xff] %v3654_v1 }
 0x40e   : > { %v2034_v25 = vld.sshfl [vmem:[#allocation1 + $0x10] sm:$0xff pattern:$0x75316420] }
 0x40f   : > { %2062 = vst [vmem:[#allocation1 + $0x10] ss:$2 sm:$0xff] %v2053_v42  ;;  %1942 = vrot.lane.b32.xlu1 %v1939_v60, %s4286_s23  ;;  %2039 = vrot.lane.b32.xlu2 %v2034_v25, %s4287_s12 }
 0x411   : > { %v2094_v27 = vld.sshfl [vmem:[#allocation1] sm:$0xff pattern:$0x75316420]  ;;  %v3778_v16 = vld.sshfl [vmem:[#allocation1 + $0x8] sm:$0xff pattern:$0x75316420] }
 0x412   : > { %2122 = vst [vmem:[#allocation1] ss:$2 sm:$0xff] %v3654_v1  ;;  %2097 = vrot.lane.b32.xlu0 %v2094_v27, %s4289_s14 }
 0x414   : > { %v1664_v0 = vpop.permute.xlu1 %1663 }
 0x415   : > { %v1669_v46 = vsel %vm633_vm10, %v1664_v0, %v1666_v48 }
 0x416   : > { %v3783_v26 = vld.sshfl [vmem:[#allocation1 + $0x10] sm:$0xff pattern:$0x75316420]  ;;  %v1674_v10 = vmul.f32 %v1669_v46, %v3682_v41 }
 0x417   : > { %2093 = vst [vmem:[#allocation1 + $0x10] ss:$2 sm:$0xff] %v2084_v32  ;;  %1946 = vrot.lane.b32.xlu1 %v1941_v22, %s4286_s23  ;;  %2068 = vrot.lane.b32.xlu2 %v2064_v63, %s4290_s15  ;;  %v1645_v22 = vmul.f32 %v3677_v3, %v3744_v23  ;;  %v2177_v32 = vld [vmem:[#allocation4 + $0x8] sm:$0xf] }
 0x418   : > { %v1677_v25 = vadd.f32 %v1674_v10, %v1643_v45  ;;  %v2208_v10 = vld [vmem:[#allocation4 + $0x8] sm:$0xf] }
 0x419   : > { %v3789_v28 = vld.sshfl [vmem:[#allocation1] sm:$0xff pattern:$0x75316420]  ;;  %v2126_v56 = vld.sshfl [vmem:[#allocation1 + $0x8] sm:$0xff pattern:$0x75316420] }
 0x41a   : > { %2153 = vst [vmem:[#allocation1] ss:$2 sm:$0xff] %v3654_v1 }
 0x41e   : > { %v2096_v12 = vld.sshfl [vmem:[#allocation1 + $0x10] sm:$0xff pattern:$0x75316420] }
 0x41f   : > { %2124 = vst [vmem:[#allocation1 + $0x10] ss:$2 sm:$0xff] %v2115_v47  ;;  %1975 = vrot.lane.b32.xlu1 %v1971_v38, %s4285_s18  ;;  %2101 = vrot.lane.b32.xlu2 %v2096_v12, %s4289_s14  ;;  %v1730_v38 = vpop.permute.xlu2 %1729 }
 0x421   : > { %v2156_v6 = vld.sshfl [vmem:[#allocation1] sm:$0xff pattern:$0x75316420]  ;;  %v3794_v36 = vld.sshfl [vmem:[#allocation1 + $0x8] sm:$0xff pattern:$0x75316420]  ;;  %v1668_v59 = vpop.permute.xlu0 %1667 }
 0x422   : > { %2184 = vst [vmem:[#allocation1] ss:$2 sm:$0xff] %v3654_v1  ;;  %v1670_v54 = vsel %vm633_vm10, %v1666_v48, %v1668_v59  ;;  %2159 = vrot.lane.b32.xlu0 %v2156_v6, %s2772_s25  ;;  %v1676_v53 = vmul.f32 %v1668_v59, %v3682_v41  ;;  %vm4293_vm10 = vmmov %vm4292_vm7  ;;  %v1738_v48 = vmul.f32 %v1730_v38, %v3688_v61 }
 0x423   : > { %v1675_v31 = vmul.f32 %v1670_v54, %v3682_v41 }
 0x425   : > { %v1678_v42 = vadd.f32 %v1675_v31, %v1644_v20 }
 0x426   : > { %v3799_v60 = vld.sshfl [vmem:[#allocation1 + $0x10] sm:$0xff pattern:$0x75316420] }
 0x427   : > { %2155 = vst [vmem:[#allocation1 + $0x10] ss:$2 sm:$0xff] %v2146_v33  ;;  %2004 = vrot.lane.b32.xlu1 %v3746_v18, %s4288_s13  ;;  %2130 = vrot.lane.b32.xlu2 %v2126_v56, %s4291_s16  ;;  %v1679_v18 = vadd.f32 %v1676_v53, %v1645_v22  ;;  %v1759_v22 = vpop.permute.xlu2 %1758 }
 0x429   : > { %v3809_v2 = vld.sshfl [vmem:[#allocation1] sm:$0xff pattern:$0x75316420]  ;;  %v2188_v14 = vld.sshfl [vmem:[#allocation1 + $0x8] sm:$0xff pattern:$0x75316420]  ;;  %v1699_v9 = vpop.permute.xlu1 %1698  ;;  %v1697_v41 = vpop.permute.xlu0 %1696 }
 0x42a   : > { %2215 = vst [vmem:[#allocation1] ss:$2 sm:$0xff] %v3654_v1  ;;  %v1707_v57 = vmul.f32 %v1699_v9, %v3755_v7  ;;  %v1700_v63 = vsel %vm4292_vm7, %v1695_v5, %v1697_v41  ;;  %v1701_v3 = vsel %vm4293_vm10, %v1697_v41, %v1699_v9  ;;  %vm4314_vm7 = vmmov %vm4313_vm2  ;;  %vm4315_vm10 = vcmask 719872  }
 0x42b   : > { %v1705_v27 = vmul.f32 %v1700_v63, %v3755_v7  ;;  %v1706_v37 = vmul.f32 %v1701_v3, %v3755_v7  ;;  %v2438_v63 = vld [vmem:[%s2870_s26 + $0x18] sm:$0xf0] }
 0x42c   : > { %v1710_v21 = vadd.f32 %v1707_v57, %v1679_v18  ;;  %v3843_v57 = vld [vmem:[#allocation4 + $0x8] sm:$0xff]  ;;  %2442 = vst.msk [vmem:[%s3648_s24 + $0x18] sm:$0xf0] %vm1621_vm8, %v2438_v63  ;;  %vm4310_vm8 = vcmask 859136  }
 0x42d   : > { %v1708_v23 = vadd.f32 %v1705_v27, %v1677_v25  ;;  %v1709_v0 = vadd.f32 %v1706_v37, %v1678_v42  ;;  %vm4311_vm1 = vmmov %vm4310_vm8 }
 0x42e   : > { %v2158_v46 = vld.sshfl [vmem:[#allocation1 + $0x10] sm:$0xff pattern:$0x75316420]  ;;  %v1741_v56 = vadd.f32 %v1738_v48, %v1710_v21 }
 0x42f   : > { %2186 = vst [vmem:[#allocation1 + $0x10] ss:$2 sm:$0xff] %v2177_v32  ;;  %2008 = vrot.lane.b32.xlu1 %v3763_v4, %s4288_s13  ;;  %2163 = vrot.lane.b32.xlu2 %v2158_v46, %s2772_s25  ;;  %v1792_v3 = vpop.permute.xlu2 %1791 }
 0x431   : > { %v2218_v12 = vld.sshfl [vmem:[#allocation1] sm:$0xff pattern:$0x75316420]  ;;  %v3825_v47 = vld.sshfl [vmem:[#allocation1 + $0x8] sm:$0xff pattern:$0x75316420]  ;;  %v1728_v5 = vpop.permute.xlu1 %1727 }
 0x432   : > { %2246 = vst [vmem:[#allocation1] ss:$2 sm:$0xff] %v3654_v1  ;;  %v1732_v7 = vsel %vm4294_vm3, %v1728_v5, %v1730_v38  ;;  %v1726_v6 = vpop.permute.xlu0 %1725  ;;  %2221 = vrot.lane.b32.xlu0 %v2218_v12, %s4295_s19  ;;  %vm4316_vm3 = vmmov %vm4315_vm10 }
 0x433   : > { %v1737_v59 = vmul.f32 %v1732_v7, %v3688_v61  ;;  %v1731_v54 = vsel %vm4296_vm4, %v1726_v6, %v1728_v5  ;;  %vm4317_vm4 = vcmask 711680  }
 0x434   : > { %v1736_v33 = vmul.f32 %v1731_v54, %v3688_v61 }
 0x435   : > { %v1740_v4 = vadd.f32 %v1737_v59, %v1709_v0 }
 0x436   : > { %v3833_v53 = vld.sshfl [vmem:[#allocation1 + $0x10] sm:$0xff pattern:$0x75316420]  ;;  %v1739_v31 = vadd.f32 %v1736_v33, %v1708_v23 }
 0x437   : > { %2217 = vst [vmem:[#allocation1 + $0x10] ss:$2 sm:$0xff] %v2208_v10  ;;  %2037 = vrot.lane.b32.xlu1 %v3757_v11, %s4287_s12  ;;  %2192 = vrot.lane.b32.xlu2 %v2188_v14, %s4297_s20  ;;  %v1821_v10 = vpop.permute.xlu2 %1820 }
 0x439   : > { %v3838_v38 = vld.sshfl [vmem:[#allocation1] sm:$0xff pattern:$0x75316420]  ;;  %v2250_v45 = vld.sshfl [vmem:[#allocation1 + $0x8] sm:$0xff pattern:$0x75316420]  ;;  %v1757_v20 = vpop.permute.xlu1 %1756 }
 0x43a   : > { %2281 = vst [vmem:[#allocation1] ss:$2 sm:$0xff] %v3654_v1  ;;  %v1762_v61 = vsel %vm4298_vm5, %v1757_v20, %v1759_v22  ;;  %v1788_v5 = vpop.permute.xlu0 %1787  ;;  %vm4318_vm5 = vmmov %vm4317_vm4 }
 0x43b   : > { %v1767_v9 = vmul.f32 %v1762_v61, %v3690_v58 }
 0x43d   : > { %v1770_v41 = vadd.f32 %v1767_v9, %v1739_v31 }
 0x43e   : > { %v2220_v18 = vld.sshfl [vmem:[#allocation1 + $0x10] sm:$0xff pattern:$0x75316420] }
 0x43f   : > { %2248 = vst [vmem:[#allocation1 + $0x10] ss:$2 sm:$0xff] %v3843_v57  ;;  %2066 = vrot.lane.b32.xlu1 %v3767_v44, %s4290_s15  ;;  %2225 = vrot.lane.b32.xlu2 %v2220_v18, %s4295_s19  ;;  %v1800_v44 = vmul.f32 %v1792_v3, %v3696_v43 }
 0x441   : > { %v2284_v11 = vld.sshfl [vmem:[#allocation1] sm:$0xff pattern:$0x75316420]  ;;  %v3852_v14 = vld.sshfl [vmem:[#allocation1 + $0x8] sm:$0xff pattern:$0x75316420]  ;;  %v1761_v25 = vpop.permute.xlu1 %1760 }
 0x442   : > { %2316 = vst [vmem:[#allocation1] ss:$2 sm:$0xff] %v3654_v1  ;;  %v1763_v42 = vsel %vm4299_vm6, %v1759_v22, %v1761_v25  ;;  %v1769_v27 = vmul.f32 %v1761_v25, %v3690_v58  ;;  %2288 = vrot.lane.b32.xlu0 %v2284_v11, %s4300_s21  ;;  %vm4319_vm6 = vcmask 703488  }
 0x443   : > { %v1768_v37 = vmul.f32 %v1763_v42, %v3690_v58 }
 0x444   : > { %v1772_v48 = vadd.f32 %v1769_v27, %v1741_v56 }
 0x445   : > { %v1771_v21 = vadd.f32 %v1768_v37, %v1740_v4 }
 0x446   : > { %v3860_v23 = vld.sshfl [vmem:[#allocation1 + $0x10] sm:$0xff pattern:$0x75316420]  ;;  %v2252_v0 = vld.sshfl [vmem:[#allocation1 + $0x18] sm:$0xff pattern:$0x75316420]  ;;  %v1803_v46 = vadd.f32 %v1800_v44, %v1772_v48  ;;  %v1850_v48 = vpop.permute.xlu0 %1849 }
 0x447   : > { %2283 = vst [vmem:[#allocation1 + $0x10] ss:$2 sm:$0xff] %v3843_v57  ;;  %2070 = vrot.lane.b32.xlu1 %v3783_v26, %s4290_s15  ;;  %2255 = vrot.lane.b32.xlu2 %v2250_v45, %s4301_s22  ;;  %v2443_v44 = vld [vmem:[%s2870_s26] sm:$0xf0] }
 0x449   : > { %v2319_v32 = vld.sshfl [vmem:[#allocation1] sm:$0xff pattern:$0x75316420]  ;;  %v2320_v12 = vld.sshfl [vmem:[#allocation1 + $0x8] sm:$0xff pattern:$0x75316420]  ;;  %v1790_v7 = vpop.permute.xlu1 %1789 }
 0x44a   : > { %2351 = vst [vmem:[#allocation1] ss:$2 sm:$0xff] %v3654_v1  ;;  %v1793_v58 = vsel %vm4302_vm9, %v1788_v5, %v1790_v7  ;;  %v1794_v56 = vsel %vm4303_vm11, %v1790_v7, %v1792_v3  ;;  %v2449_v5 = vrot.slane %v2443_v44, 4  ;;  %vm4320_vm9 = vmmov %vm4319_vm6  ;;  %vm4321_vm11 = vcmask 695296  }
 0x44b   : > { %v1798_v6 = vmul.f32 %v1793_v58, %v3696_v43  ;;  %v1799_v59 = vmul.f32 %v1794_v56, %v3696_v43  ;;  %v4309_v58 = vmov 0  }
 0x44d   : > { %v1801_v54 = vadd.f32 %v1798_v6, %v1770_v41  ;;  %v1802_v33 = vadd.f32 %v1799_v59, %v1771_v21 }
 0x44e   : > { %v2286_v4 = vld.sshfl [vmem:[#allocation1 + $0x10] sm:$0xff pattern:$0x75316420]  ;;  %v2287_v26 = vld.sshfl [vmem:[#allocation1 + $0x18] sm:$0xff pattern:$0x75316420] }
 0x44f   : > { %2318 = vst [vmem:[#allocation1 + $0x10] ss:$2 sm:$0xff] %v3843_v57  ;;  %2099 = vrot.lane.b32.xlu1 %v3778_v16, %s4289_s14  ;;  %2259 = vrot.lane.b32.xlu2 %v2252_v0, %s4301_s22  ;;  %v1854_v16 = vpop.permute.xlu2 %1853 }
 0x450   : > { %2294 = vrot.lane.b32.xlu0 %v2287_v26, %s4300_s21  ;;  %v1862_v3 = vmul.f32 %v1854_v16, %v3706_v29 }
 0x451   : > { %v3876_v31 = vld.sshfl [vmem:[#allocation1] sm:$0xff pattern:$0x75316420]  ;;  %v1819_v22 = vpop.permute.xlu1 %1818  ;;  %v2355_v45 = vld.sshfl [vmem:[#allocation1 + $0x8] sm:$0xff pattern:$0x75316420] }
 0x452   : > { %v1824_v43 = vsel %vm4304_vm12, %v1819_v22, %v1821_v10  ;;  %2386 = vst [vmem:[#allocation1] ss:$2 sm:$0xff] %v3654_v1  ;;  %vm4322_vm12 = vmmov %vm4321_vm11 }
 0x453   : > { %v1829_v20 = vmul.f32 %v1824_v43, %v3698_v49 }
 0x455   : > { %v1832_v61 = vadd.f32 %v1829_v20, %v1801_v54 }
 0x456   : > { %v3881_v9 = vld.sshfl [vmem:[#allocation1 + $0x10] sm:$0xff pattern:$0x75316420]  ;;  %v2322_v41 = vld.sshfl [vmem:[#allocation1 + $0x18] sm:$0xff pattern:$0x75316420] }
 0x457   : > { %2353 = vst [vmem:[#allocation1 + $0x10] ss:$2 sm:$0xff] %v3843_v57  ;;  %2128 = vrot.lane.b32.xlu1 %v3789_v28, %s4291_s16  ;;  %2292 = vrot.lane.b32.xlu2 %v2286_v4, %s4300_s21 }
 0x458   : > { %2325 = vrot.lane.b32.xlu0 %v2320_v12, %s4305_s28 }
 0x459   : > { %v1823_v18 = vpop.permute.xlu1 %1822 }
 0x45a   : > { %v1825_v1 = vsel %vm4306_vm13, %v1821_v10, %v1823_v18  ;;  %v1831_v63 = vmul.f32 %v1823_v18, %v3698_v49  ;;  %vm4323_vm13 = vcmask 687104  }
 0x45b   : > { %v1830_v11 = vmul.f32 %v1825_v1, %v3698_v49  ;;  %v2723_v49 = vld [vmem:[%s4060_s9] sm:$0xf] }
 0x45c   : > { %v1834_v25 = vadd.f32 %v1831_v63, %v1803_v46 }
 0x45d   : > { %v1833_v42 = vadd.f32 %v1830_v11, %v1802_v33 }
 0x45e   : > { %v3892_v27 = vld.sshfl [vmem:[#allocation1 + $0x10] sm:$0xff pattern:$0x75316420]  ;;  %v1865_v28 = vadd.f32 %v1862_v3, %v1834_v25  ;;  %v2357_v37 = vld.sshfl [vmem:[#allocation1 + $0x18] sm:$0xff pattern:$0x75316420] }
 0x45f   : > { %2132 = vrot.lane.b32.xlu1 %v3799_v60, %s4291_s16  ;;  %2323 = vrot.lane.b32.xlu2 %v2319_v32, %s4305_s28  ;;  %2388 = vst [vmem:[#allocation1 + $0x10] ss:$2 sm:$0xff] %v3843_v57  ;;  %v1883_v32 = vpop.permute.xlu2 %1882 }
 0x460   : > { %2381 = vperm.xlu0 %2692, %v2723_v49  }
 0x461   : > { %v1852_v21 = vpop.permute.xlu1 %1851 }
 0x462   : > { %v1855_v0 = vsel %vm4307_vm0, %v1850_v48, %v1852_v21  ;;  %v1856_v46 = vsel %vm4308_vm14, %v1852_v21, %v1854_v16  ;;  %vm4324_vm0 = vmmov %vm4323_vm13  ;;  %vm4325_vm14 = vcmask 556032  }
 0x463   : > { %v1860_v12 = vmul.f32 %v1855_v0, %v3706_v29  ;;  %v1861_v60 = vmul.f32 %v1856_v46, %v3706_v29 }
 0x465   : > { %v1863_v7 = vadd.f32 %v1860_v12, %v1832_v61  ;;  %v1864_v57 = vadd.f32 %v1861_v60, %v1833_v42  ;;  %v1912_v61 = vpop.permute.xlu0 %1911 }
 0x466   : > { %v2392_v46 = vld.sshfl [vmem:[#allocation1 + $0x18] sm:$0xff pattern:$0x75316420] }
 0x467   : > { %2161 = vrot.lane.b32.xlu1 %v3794_v36, %s2772_s25  ;;  %2452 = vrot.lane.b32.xlu2 %v2449_v5, %s4288_s13  ;;  %v1916_v33 = vpop.permute.xlu2 %1915  ;;  %s4312_s25 = smov 45  }
 0x468   : > { %2694 = vset.pattern.permute.xlu0 %v4309_v58  ;;  %v1924_v10 = vmul.f32 %v1916_v33, %v3716_v30 }
 0x469   : > { %v1881_v56 = vpop.permute.xlu1 %1880 }
 0x46a   : > { %v1886_v6 = vsel %vm4310_vm8, %v1881_v56, %v1883_v32  ;;  %vm4326_vm8 = vmmov %vm4325_vm14 }
 0x46b   : > { %v1891_v59 = vmul.f32 %v1886_v6, %v3704_v17 }
 0x46d   : > { %v1894_v54 = vadd.f32 %v1891_v59, %v1863_v7 }
 0x46f   : > { %2190 = vrot.lane.b32.xlu1 %v3809_v2, %s4297_s20  ;;  %2329 = vrot.lane.b32.xlu2 %v2322_v41, %s4305_s28  ;;  %v1945_v2 = vpop.permute.xlu2 %1944 }
 0x471   : > { %v1885_v29 = vpop.permute.xlu1 %1884 }
 0x472   : > { %v1887_v4 = vsel %vm4311_vm1, %v1883_v32, %v1885_v29  ;;  %v1893_v36 = vmul.f32 %v1885_v29, %v3704_v17  ;;  %vm4327_vm1 = vcmask 547840  }
 0x473   : > { %v1892_v26 = vmul.f32 %v1887_v4, %v3704_v17 }
 0x474   : > { %v1896_v22 = vadd.f32 %v1893_v36, %v1865_v28  ;;  %v2390_v28 = vld.sshfl [vmem:[#allocation1 + $0x8] sm:$0xff pattern:$0x75316420] }
 0x475   : > { %v1895_v43 = vadd.f32 %v1892_v26, %v1864_v57 }
 0x476   : > { %v1927_v20 = vadd.f32 %v1924_v10, %v1896_v22 }
 0x477   : > { %2194 = vrot.lane.b32.xlu1 %v3833_v53, %s4297_s20  ;;  %2360 = vrot.lane.b32.xlu2 %v2355_v45, %s4312_s25  ;;  %v1978_v45 = vpop.permute.xlu2 %1977 }
 0x478   : > { %v1986_v49 = vmul.f32 %v1978_v45, %v3724_v52 }
 0x479   : > { %v1914_v41 = vpop.permute.xlu1 %1913 }
 0x47a   : > { %v1917_v16 = vsel %vm4313_vm2, %v1912_v61, %v1914_v41  ;;  %v1918_v18 = vsel %vm4314_vm7, %v1914_v41, %v1916_v33  ;;  %vm4328_vm2 = vmmov %vm4327_vm1  ;;  %vm4329_vm7 = vcmask 539648  }
 0x47b   : > { %v1922_v1 = vmul.f32 %v1917_v16, %v3716_v30  ;;  %v1923_v17 = vmul.f32 %v1918_v18, %v3716_v30 }
 0x47d   : > { %v1925_v63 = vadd.f32 %v1922_v1, %v1894_v54  ;;  %v1926_v11 = vadd.f32 %v1923_v17, %v1895_v43  ;;  %v2413_v54 = vld [vmem:[%s4061_s10] sm:$0xf] }
 0x47f   : > { %2223 = vrot.lane.b32.xlu1 %v3825_v47, %s4295_s19  ;;  %2364 = vrot.lane.b32.xlu2 %v2357_v37, %s4312_s25  ;;  %v2007_v48 = vpop.permute.xlu2 %2006 }
 0x481   : > { %v1943_v53 = vpop.permute.xlu1 %1942 }
 0x482   : > { %v1948_v3 = vsel %vm4315_vm10, %v1943_v53, %v1945_v2  ;;  %vm4330_vm10 = vmmov %vm4329_vm7 }
 0x483   : > { %v1953_v25 = vmul.f32 %v1948_v3, %v3712_v13 }
 0x485   : > { %v1956_v42 = vadd.f32 %v1953_v25, %v1925_v63 }
 0x487   : > { %2253 = vrot.lane.b32.xlu1 %v3838_v38, %s4301_s22  ;;  %2395 = vrot.lane.b32.xlu2 %v2390_v28, %s2779_s27  ;;  %v1974_v38 = vpop.permute.xlu0 %1973  ;;  %v2040_v56 = vpop.permute.xlu2 %2039 }
 0x489   : > { %v1947_v30 = vpop.permute.xlu1 %1946 }
 0x48a   : > { %v1949_v44 = vsel %vm4316_vm3, %v1945_v2, %v1947_v30  ;;  %v1955_v47 = vmul.f32 %v1947_v30, %v3712_v13  ;;  %vm4331_vm3 = vcmask 531456  }
 0x48b   : > { %v1954_v37 = vmul.f32 %v1949_v44, %v3712_v13  ;;  %v2389_v44 = vld.sshfl [vmem:[#allocation1] sm:$0xff pattern:$0x75316420] }
 0x48c   : > { %v1958_v21 = vadd.f32 %v1955_v47, %v1927_v20 }
 0x48d   : > { %v1957_v0 = vadd.f32 %v1954_v37, %v1926_v11 }
 0x48e   : > { %v1989_v12 = vadd.f32 %v1986_v49, %v1958_v21 }
 0x48f   : > { %2257 = vrot.lane.b32.xlu1 %v3860_v23, %s4301_s22  ;;  %2399 = vrot.lane.b32.xlu2 %v2392_v46, %s2779_s27  ;;  %v2069_v29 = vpop.permute.xlu2 %2068  ;;  %v2036_v20 = vpop.permute.xlu0 %2035 }
 0x491   : > { %v1976_v60 = vpop.permute.xlu1 %1975 }
 0x492   : > { %v1979_v5 = vsel %vm4317_vm4, %v1974_v38, %v1976_v60  ;;  %v1980_v32 = vsel %vm4318_vm5, %v1976_v60, %v1978_v45  ;;  %vm4332_vm4 = vmmov %vm4331_vm3  ;;  %vm4333_vm5 = vcmask 523264  }
 0x493   : > { %v1984_v13 = vmul.f32 %v1979_v5, %v3724_v52  ;;  %v1985_v7 = vmul.f32 %v1980_v32, %v3724_v52  ;;  %v2444_v5 = vld [vmem:[%s2870_s26 + $0x8] sm:$0xf0] }
 0x495   : > { %v1987_v57 = vadd.f32 %v1984_v13, %v1956_v42  ;;  %v1988_v58 = vadd.f32 %v1985_v7, %v1957_v0 }
 0x497   : > { %2290 = vrot.lane.b32.xlu1 %v3852_v14, %s4300_s21  ;;  %v2048_v14 = vmul.f32 %v2040_v56, %v3732_v50  ;;  %v2102_v61 = vpop.permute.xlu2 %2101  ;;  %v2098_v47 = vpop.permute.xlu0 %2097 }
 0x499   : > { %v2005_v6 = vpop.permute.xlu1 %2004 }
 0x49a   : > { %v2010_v23 = vsel %vm4319_vm6, %v2005_v6, %v2007_v48  ;;  %vm4334_vm6 = vmmov %vm4333_vm5 }
 0x49b   : > { %v2015_v59 = vmul.f32 %v2010_v23, %v3719_v24 }
 0x49d   : > { %v2018_v33 = vadd.f32 %v2015_v59, %v1987_v57  ;;  %v2450_v57 = vrot.slane %v2444_v5, 4 }
 0x49f   : > { %2416 = vperm.xlu1 %2693, %v2413_v54   ;;  %v2131_v53 = vpop.permute.xlu2 %2130 }
 0x4a1   : > { %v2009_v4 = vpop.permute.xlu1 %2008 }
 0x4a2   : > { %v2011_v52 = vsel %vm4320_vm9, %v2007_v48, %v2009_v4  ;;  %v2017_v36 = vmul.f32 %v2009_v4, %v3719_v24  ;;  %vm4335_vm9 = vcmask 392192  }
 0x4a3   : > { %v2016_v26 = vmul.f32 %v2011_v52, %v3719_v24 }
 0x4a4   : > { %v2020_v10 = vadd.f32 %v2017_v36, %v1989_v12  ;;  %v2391_v12 = vld.sshfl [vmem:[#allocation1 + $0x10] sm:$0xff pattern:$0x75316420]  ;;  %v2160_v36 = vpop.permute.xlu0 %2159 }
 0x4a5   : > { %v2019_v22 = vadd.f32 %v2016_v26, %v1988_v58 }
 0x4a6   : > { %v2051_v43 = vadd.f32 %v2048_v14, %v2020_v10 }
 0x4a7   : > { %2327 = vrot.lane.b32.xlu1 %v3881_v9, %s4305_s28  ;;  %v2164_v30 = vpop.permute.xlu2 %2163 }
 0x4a9   : > { %v2038_v2 = vpop.permute.xlu1 %2037 }
 0x4aa   : > { %v2041_v41 = vsel %vm4321_vm11, %v2036_v20, %v2038_v2  ;;  %v2042_v16 = vsel %vm4322_vm12, %v2038_v2, %v2040_v56  ;;  %v2110_v56 = vmul.f32 %v2102_v61, %v3740_v55  ;;  %vm4336_vm11 = vmmov %vm4335_vm9 }
 0x4ab   : > { %v2046_v18 = vmul.f32 %v2041_v41, %v3732_v50  ;;  %v2047_v1 = vmul.f32 %v2042_v16, %v3732_v50  ;;  %vm4337_vm12 = vmmov %vm4335_vm9 }
 0x4ad   : > { %v2049_v24 = vadd.f32 %v2046_v18, %v2018_v33  ;;  %v2050_v17 = vadd.f32 %v2047_v1, %v2019_v22  ;;  %v2172_v1 = vmul.f32 %v2164_v30, %v3753_v39 }
 0x4af   : > { %2358 = vrot.lane.b32.xlu1 %v3876_v31, %s4312_s25  ;;  %v2193_v60 = vpop.permute.xlu2 %2192 }
 0x4b1   : > { %v2067_v63 = vpop.permute.xlu1 %2066 }
 0x4b2   : > { %v2072_v11 = vsel %vm4323_vm13, %v2067_v63, %v2069_v29  ;;  %vm4338_vm13 = vcmask 384000  }
 0x4b3   : > { %v2077_v9 = vmul.f32 %v2072_v11, %v3727_v40 }
 0x4b5   : > { %v2080_v45 = vadd.f32 %v2077_v9, %v2049_v24 }
 0x4b7   : > { %2362 = vrot.lane.b32.xlu1 %v3892_v27, %s4312_s25  ;;  %v2226_v23 = vpop.permute.xlu2 %2225 }
 0x4b9   : > { %v2071_v3 = vpop.permute.xlu1 %2070 }
 0x4ba   : > { %v2073_v25 = vsel %vm4324_vm0, %v2069_v29, %v2071_v3  ;;  %v2079_v50 = vmul.f32 %v2071_v3, %v3727_v40  ;;  %vm4339_vm0 = vmmov %vm4338_vm13 }
 0x4bb   : > { %v2078_v42 = vmul.f32 %v2073_v25, %v3727_v40  ;;  %v2445_v40 = vld [vmem:[%s2870_s26 + $0x10] sm:$0xf0]  ;;  %v2222_v25 = vpop.permute.xlu0 %2221 }
 0x4bc   : > { %v2082_v28 = vadd.f32 %v2079_v50, %v2051_v43  ;;  %v2451_v38 = vrot.slane %v2445_v40, 4 }
 0x4bd   : > { %v2081_v31 = vadd.f32 %v2078_v42, %v2050_v17 }
 0x4be   : > { %2456 = vrot.lane.b32.xlu2 %v2451_v38, %s4288_s13  ;;  %v2113_v59 = vadd.f32 %v2110_v56, %v2082_v28 }
 0x4bf   : > { %2393 = vrot.lane.b32.xlu1 %v2389_v44, %s2779_s27  ;;  %v2256_v43 = vpop.permute.xlu2 %2255 }
 0x4c1   : > { %v2100_v37 = vpop.permute.xlu1 %2099 }
 0x4c2   : > { %v2103_v49 = vsel %vm4325_vm14, %v2098_v47, %v2100_v37  ;;  %v2104_v27 = vsel %vm4326_vm8, %v2100_v37, %v2102_v61  ;;  %vm4340_vm14 = vmmov %vm4339_vm0  ;;  %vm4341_vm8 = vcmask 375808  }
 0x4c3   : > { %v2108_v48 = vmul.f32 %v2103_v49, %v3740_v55  ;;  %v2109_v21 = vmul.f32 %v2104_v27, %v3740_v55 }
 0x4c5   : > { %v2111_v0 = vadd.f32 %v2108_v48, %v2080_v45  ;;  %v2112_v46 = vadd.f32 %v2109_v21, %v2081_v31 }
 0x4c7   : > { %2397 = vrot.lane.b32.xlu1 %v2391_v12, %s2779_s27  ;;  %v2260_v18 = vpop.permute.xlu2 %2259  ;;  %s4352_s27 = smov 42  }
 0x4c9   : > { %v2129_v32 = vpop.permute.xlu1 %2128 }
 0x4ca   : > { %v2134_v13 = vsel %vm4327_vm1, %v2129_v32, %v2131_v53  ;;  %vm4342_vm1 = vmmov %vm4341_vm8 }
 0x4cb   : > { %v2139_v7 = vmul.f32 %v2134_v13, %v3736_v19  ;;  %v2289_v13 = vpop.permute.xlu0 %2288 }
 0x4cd   : > { %v2142_v58 = vadd.f32 %v2139_v7, %v2111_v0 }
 0x4cf   : > { %2454 = vrot.lane.b32.xlu1 %v2450_v57, %s4288_s13  ;;  %v2293_v3 = vpop.permute.xlu2 %2292 }
 0x4d1   : > { %v2133_v6 = vpop.permute.xlu1 %2132 }
 0x4d2   : > { %v2135_v54 = vsel %vm4328_vm2, %v2131_v53, %v2133_v6  ;;  %v2141_v33 = vmul.f32 %v2133_v6, %v3736_v19  ;;  %vm4343_vm2 = vmmov %vm4342_vm1 }
 0x4d3   : > { %v2140_v29 = vmul.f32 %v2135_v54, %v3736_v19 }
 0x4d4   : > { %v2144_v4 = vadd.f32 %v2141_v33, %v2113_v59 }
 0x4d5   : > { %v2143_v52 = vadd.f32 %v2140_v29, %v2112_v46  ;;  %v2234_v29 = vmul.f32 %v2226_v23, %v3770_v34 }
 0x4d6   : > { %v2175_v17 = vadd.f32 %v2172_v1, %v2144_v4 }
 0x4d7   : > { %v2324_v37 = vpop.permute.xlu2 %2323 }
 0x4d9   : > { %v2162_v26 = vpop.permute.xlu1 %2161 }
 0x4da   : > { %v2165_v14 = vsel %vm4329_vm7, %v2160_v36, %v2162_v26  ;;  %v2166_v10 = vsel %vm4330_vm10, %v2162_v26, %v2164_v30  ;;  %vm4344_vm7 = vcmask 367616  }
 0x4db   : > { %v2170_v22 = vmul.f32 %v2165_v14, %v3753_v39  ;;  %v2171_v55 = vmul.f32 %v2166_v10, %v3753_v39  ;;  %vm4345_vm10 = vmmov %vm4344_vm7 }
 0x4dd   : > { %v2173_v20 = vadd.f32 %v2170_v22, %v2142_v58  ;;  %v2174_v2 = vadd.f32 %v2171_v55, %v2143_v52  ;;  %v2295_v58 = vpop.permute.xlu0 %2294 }
 0x4de   : > { %v2298_v10 = vsel %vm4340_vm14, %v2293_v3, %v2295_v58  ;;  %v2436_v58 = vld [vmem:[%s2870_s26 + $0x8] sm:$0xf0] }
 0x4df   : > { %v4005_v46 = vpop.permute.xlu2 %2452  ;;  %2440 = vst [vmem:[%s3648_s24 + $0x8] sm:$0xf0] %v2436_v58 }
 0x4e1   : > { %v2191_v61 = vpop.permute.xlu1 %2190 }
 0x4e2   : > { %v2196_v41 = vsel %vm4331_vm3, %v2191_v61, %v2193_v60  ;;  %vm4346_vm3 = vmmov %vm4344_vm7 }
 0x4e3   : > { %v2201_v19 = vmul.f32 %v2196_v41, %v3748_v62  ;;  %v2304_v41 = vmul.f32 %v2298_v10, %v3772_v8 }
 0x4e5   : > { %v2204_v16 = vadd.f32 %v2201_v19, %v2173_v20  ;;  %v2326_v33 = vpop.permute.xlu0 %2325 }
 0x4e7   : > { %v2330_v38 = vpop.permute.xlu2 %2329 }
 0x4e9   : > { %v2195_v24 = vpop.permute.xlu1 %2194 }
 0x4ea   : > { %v2197_v63 = vsel %vm4332_vm4, %v2193_v60, %v2195_v24  ;;  %v2203_v11 = vmul.f32 %v2195_v24, %v3748_v62  ;;  %vm4347_vm4 = vcmask 359424  }
 0x4eb   : > { %v2202_v9 = vmul.f32 %v2197_v63, %v3748_v62 }
 0x4ec   : > { %v2206_v53 = vadd.f32 %v2203_v11, %v2175_v17 }
 0x4ed   : > { %v2205_v45 = vadd.f32 %v2202_v9, %v2174_v2  ;;  %v2382_v63 = vpop.permute.xlu0 %2381 }
 0x4ee   : > { %v2237_v26 = vadd.f32 %v2234_v29, %v2206_v53 }
 0x4ef   : > { %v2361_v5 = vpop.permute.xlu2 %2360 }
 0x4f1   : > { %v2224_v50 = vpop.permute.xlu1 %2223 }
 0x4f2   : > { %v2227_v42 = vsel %vm4333_vm5, %v2222_v25, %v2224_v50  ;;  %v2228_v28 = vsel %vm4334_vm6, %v2224_v50, %v2226_v23  ;;  %vm4348_vm5 = vmmov %vm4347_vm4 }
 0x4f3   : > { %v2232_v31 = vmul.f32 %v2227_v42, %v3770_v34  ;;  %v2233_v39 = vmul.f32 %v2228_v28, %v3770_v34  ;;  %vm4349_vm6 = vmmov %vm4347_vm4 }
 0x4f5   : > { %v2235_v30 = vadd.f32 %v2232_v31, %v2204_v16  ;;  %v2236_v44 = vadd.f32 %v2233_v39, %v2205_v45 }
 0x4f7   : > { %v2365_v57 = vpop.permute.xlu2 %2364 }
 0x4f9   : > { %v2254_v47 = vpop.permute.xlu1 %2253 }
 0x4fa   : > { %v2261_v49 = vsel %vm4335_vm9, %v2254_v47, %v2256_v43  ;;  %vm4350_vm9 = vcmask 703488  }
 0x4fb   : > { %v2267_v62 = vmul.f32 %v2261_v49, %v3761_v15 }
 0x4fd   : > { %v2270_v27 = vadd.f32 %v2267_v62, %v2235_v30 }
 0x4ff   : > { %v2396_v6 = vpop.permute.xlu2 %2395 }
 0x501   : > { %v2258_v48 = vpop.permute.xlu1 %2257 }
 0x502   : > { %v2262_v21 = vsel %vm4336_vm11, %v2256_v43, %v2258_v48  ;;  %v2263_v59 = vsel %vm4337_vm12, %v2258_v48, %v2260_v18  ;;  %v2331_v43 = vsel %vm4343_vm2, %v2324_v37, %v2326_v33  ;;  %vm4351_vm11 = vmmov %vm4350_vm9  ;;  %vm2483_vm12 = vcmask 1047892  }
 0x503   : > { %v2268_v0 = vmul.f32 %v2262_v21, %v3761_v15  ;;  %v2269_v4 = vmul.f32 %v2263_v59, %v3761_v15  ;;  %v2337_v18 = vmul.f32 %v2331_v43, %v3774_v35 }
 0x505   : > { %v2271_v40 = vadd.f32 %v2268_v0, %v2236_v44  ;;  %v2272_v20 = vadd.f32 %v2269_v4, %v2237_v26 }
 0x507   : > { %v2400_v1 = vpop.permute.xlu2 %2399  ;;  %v2307_v9 = vadd.f32 %v2304_v41, %v2272_v20 }
 0x509   : > { %v2291_v12 = vpop.permute.xlu1 %2290 }
 0x50a   : > { %v2296_v54 = vsel %vm4338_vm13, %v2289_v13, %v2291_v12  ;;  %v2297_v52 = vsel %vm4339_vm0, %v2291_v12, %v2293_v3  ;;  %vm2486_vm13 = vcmask 834564  }
 0x50b   : > { %v2302_v36 = vmul.f32 %v2296_v54, %v3772_v8  ;;  %v2303_v2 = vmul.f32 %v2297_v52, %v3772_v8 }
 0x50d   : > { %v2305_v15 = vadd.f32 %v2302_v36, %v2270_v27  ;;  %v2306_v11 = vadd.f32 %v2303_v2, %v2271_v40 }
 0x50f   : > { %v2340_v3 = vadd.f32 %v2337_v18, %v2305_v15 }
 0x511   : > { %v2417_v60 = vpop.permute.xlu1 %2416 }
 0x518   : > { %v2457_v27 = vpop.permute.xlu2 %2456 }
 0x519   : > { %v2328_v32 = vpop.permute.xlu1 %2327 }
 0x51a   : > { %v2332_v22 = vsel %vm4341_vm8, %v2326_v33, %v2328_v32  ;;  %v2333_v55 = vsel %vm4342_vm1, %v2328_v32, %v2330_v38 }
 0x51b   : > { %v2338_v19 = vmul.f32 %v2332_v22, %v3774_v35  ;;  %v2339_v16 = vmul.f32 %v2333_v55, %v3774_v35 }
 0x51d   : > { %v2341_v8 = vadd.f32 %v2338_v19, %v2306_v11  ;;  %v2342_v25 = vadd.f32 %v2339_v16, %v2307_v9 }
 0x521   : > { %v2359_v7 = vpop.permute.xlu1 %2358 }
 0x522   : > { %v2366_v34 = vsel %vm4344_vm7, %v2359_v7, %v2361_v5 }
 0x523   : > { %v2372_v24 = vmul.f32 %v2366_v34, %v3787_v51 }
 0x525   : > { %v2375_v28 = vadd.f32 %v2372_v24, %v2340_v3 }
 0x529   : > { %v2363_v56 = vpop.permute.xlu1 %2362 }
 0x52a   : > { %v2367_v23 = vsel %vm4345_vm10, %v2361_v5, %v2363_v56  ;;  %v2368_v61 = vsel %vm4346_vm3, %v2363_v56, %v2365_v57 }
 0x52b   : > { %v2373_v53 = vmul.f32 %v2367_v23, %v3787_v51  ;;  %v2374_v45 = vmul.f32 %v2368_v61, %v3787_v51 }
 0x52d   : > { %v2376_v39 = vadd.f32 %v2373_v53, %v2341_v8  ;;  %v2377_v30 = vadd.f32 %v2374_v45, %v2342_v25 }
 0x531   : > { %v2394_v14 = vpop.permute.xlu1 %2393 }
 0x532   : > { %v2401_v17 = vsel %vm4347_vm4, %v2394_v14, %v2396_v6 }
 0x533   : > { %v2407_v50 = vmul.f32 %v2401_v17, %v2382_v63 }
 0x535   : > { %v2410_v37 = vadd.f32 %v2407_v50, %v2375_v28 }
 0x537   : > { %v2419_v0 = vadd.f32 %v2417_v60, %v2410_v37 }
 0x539   : > { %v2398_v42 = vpop.permute.xlu1 %2397 }
 0x53a   : > { %v2402_v35 = vsel %vm4348_vm5, %v2396_v6, %v2398_v42  ;;  %v2403_v31 = vsel %vm4349_vm6, %v2398_v42, %v2400_v1 }
 0x53b   : > { %v2408_v44 = vmul.f32 %v2402_v35, %v2382_v63  ;;  %v2409_v47 = vmul.f32 %v2403_v31, %v2382_v63 }
 0x53d   : > { %v2411_v49 = vadd.f32 %v2408_v44, %v2376_v39  ;;  %v2412_v62 = vadd.f32 %v2409_v47, %v2377_v30 }
 0x53f   : > { %v2421_v51 = vadd.f32 %v2417_v60, %v2412_v62  ;;  %v2420_v40 = vadd.f32 %v2417_v60, %v2411_v49  ;;  %v2435_v60 = vld [vmem:[%s2870_s26] sm:$0xf0] }
 0x540   : > { %2439 = vst [vmem:[%s3648_s24] sm:$0xf0] %v2435_v60 }
 0x541   : > { %v2465_v48 = vadd.f32 %v2457_v27, %v2421_v51  ;;  %v2455_v21 = vpop.permute.xlu1 %2454 }
 0x542   : > { %v2458_v12 = vsel %vm4350_vm9, %v4005_v46, %v2455_v21  ;;  %v2459_v38 = vsel %vm4351_vm11, %v2455_v21, %v2457_v27  ;;  %v2437_v46 = vld [vmem:[%s2870_s26 + $0x10] sm:$0xf0] }
 0x543   : > { %v2471_v5 = vrot.slane %v2465_v48, 4  ;;  %v2463_v32 = vadd.f32 %v2458_v12, %v2419_v0  ;;  %v2464_v13 = vadd.f32 %v2459_v38, %v2420_v40  ;;  %2441 = vst [vmem:[%s3648_s24 + $0x10] sm:$0xf0] %v2437_v46 }
 0x545   : > { %v2469_v7 = vrot.slane %v2463_v32, 4  ;;  %v2470_v57 = vrot.slane %v2464_v13, 4  ;;  %2476 = vrot.lane.b32.xlu2 %v2471_v5, %s4352_s27 }
 0x547   : > { %2472 = vrot.lane.b32.xlu0 %v2469_v7, %s4352_s27  ;;  %2474 = vrot.lane.b32.xlu1 %v2470_v57, %s4352_s27 }
 0x59f   : > { %v2477_v56 = vpop.permute.xlu2 %2476 }
 0x5b9   : > { %v2473_v6 = vpop.permute.xlu0 %2472  ;;  %v2475_v59 = vpop.permute.xlu1 %2474 }
 0x5ba   : > { %2484 = vst.msk [vmem:[%s3648_s24] sm:$0xf0] %vm2483_vm12, %v2473_v6  ;;  %v2478_v54 = vsel %vm1389_vm15, %v2473_v6, %v2475_v59  ;;  %v2479_v33 = vsel %vm1389_vm15, %v2475_v59, %v2477_v56 }
 0x5bb   : > { %2485 = vst [vmem:[%s3648_s24 + $0x8] sm:$0xf0] %v2478_v54 }
 0x5bc   : > { %2487 = vst.msk [vmem:[%s3648_s24 + $0x10] sm:$0xf0] %vm2486_vm13, %v2479_v33 }
 0x5bd PF: > { %s21_s17 = sadd.s32 1, %s2730_s17  }
 0x5be   : > { %p18_p4 = scmp.ge.s32.totalorder %s21_s17, 4  }
 0x5c0   :  { %20 = sbr.rel (!%p18_p4) target bundleno = 1 (0x1), region = 119 }

</bundles_post_ra>
